<compile_context>
chip_gen: v5e
topology: v5e:2x2
jax: 0.10.0
libtpu: 0.0.40
codegen_flags: <defaults>
</compile_context>

<pallas_src>
import functools

import jax
import jax.numpy as jnp
from jax.experimental import pallas as pl
from jax.experimental.pallas import tpu as pltpu


N_ENC = 5
N_DEC = 5


# ----------------------------------------------------------------------------
# Fused Pallas kernel: whole VAE forward in one call
# ----------------------------------------------------------------------------
def _vae_fused_kernel(x_ref, eps_ref, *refs, latent_dim):
    # refs = [enc (w,b)*5, heads (w,b), dec (w,b)*5, enc_out, dec_out, mu_out, lv_out]
    n_params = 2 * (N_ENC + N_DEC + 1)  # +1 for the fused mu/log_var head
    param_refs = refs[:n_params]
    enc_ref, dec_ref, mu_ref, lv_ref = refs[n_params:]

    def linear(h, w_ref, b_ref, relu):
        # bf16 MXU matmul with f32 accumulation; bias + ReLU in f32.
        y = jnp.dot(h.astype(jnp.bfloat16), w_ref[...],
                    preferred_element_type=jnp.float32)
        y = y + b_ref[...]
        if relu:
            y = jnp.maximum(y, 0.0)
        return y

    it = iter(param_refs)

    # ---- encoder: Linear+ReLU x5 ----
    h = x_ref[...]
    for _ in range(N_ENC):
        h = linear(h, next(it), next(it), relu=True)
    encoded = h
    enc_ref[...] = encoded.astype(enc_ref.dtype)

    # ---- mu / log_var: one fused (L, 2L) matmul, split on the lane axis ----
    heads = linear(encoded, next(it), next(it), relu=False)
    mu = heads[:, :latent_dim]
    log_var = heads[:, latent_dim:]
    mu_ref[...] = mu.astype(mu_ref.dtype)
    lv_ref[...] = log_var.astype(lv_ref.dtype)

    # ---- reparameterize: z = mu + eps * exp(0.5 * log_var) ----
    z = mu + eps_ref[...] * jnp.exp(0.5 * log_var)

    # ---- decoder: Linear+ReLU x4, final Linear (no activation) ----
    h = z
    for i in range(N_DEC):
        h = linear(h, next(it), next(it), relu=(i < N_DEC - 1))
    dec_ref[...] = h.astype(dec_ref.dtype)


# ----------------------------------------------------------------------------
# Wrapper (glue): pad batch to sublane multiple, single pallas_call, slice back
# ----------------------------------------------------------------------------
def _full_spec(shape):
    nd = len(shape)
    return pl.BlockSpec(shape, lambda *_: (0,) * nd)


def vae_forward(params, x, eps):
    flat = []
    for (w, b) in params["encoder"]:
        flat += [w, b]
    flat += [params["heads"][0], params["heads"][1]]
    for (w, b) in params["decoder"]:
        flat += [w, b]

    B, input_size = x.shape
    latent_dim = eps.shape[1]

    # Pad the batch (sublane) dimension to a multiple of 8 so every tile is a
    # full vreg; padded rows are sliced off after the kernel.
    B_pad = max(8, ((B + 7) // 8) * 8)
    if B_pad != B:
        pad = ((0, B_pad - B), (0, 0))
        x_p = jnp.pad(x, pad)
        eps_p = jnp.pad(eps, pad)
    else:
        x_p, eps_p = x, eps

    out_shapes = (
        jax.ShapeDtypeStruct((B_pad, latent_dim), jnp.float32),   # encoded
        jax.ShapeDtypeStruct((B_pad, input_size), jnp.float32),   # decoded
        jax.ShapeDtypeStruct((B_pad, latent_dim), jnp.float32),   # mu
        jax.ShapeDtypeStruct((B_pad, latent_dim), jnp.float32),   # log_var
    )

    in_specs = [_full_spec(x_p.shape), _full_spec(eps_p.shape)]
    in_specs += [_full_spec(a.shape) for a in flat]
    out_specs = tuple(_full_spec(s.shape) for s in out_shapes)

    kernel = functools.partial(_vae_fused_kernel, latent_dim=latent_dim)

    enc, dec, mu, lv = pl.pallas_call(
        kernel,
        out_shape=out_shapes,
        in_specs=in_specs,
        out_specs=out_specs,
        compiler_params=pltpu.CompilerParams(vmem_limit_bytes=32 * 1024 * 1024),
    )(x_p, eps_p, *flat)

    return enc[:B], dec[:B], mu[:B], lv[:B]


# ----------------------------------------------------------------------------
# Parameter construction (deterministic, PyTorch-default-style init)
# ----------------------------------------------------------------------------
def _init_linear(key, in_features, out_features):
    kw, kb = jax.random.split(key)
    bound = 1.0 / jnp.sqrt(jnp.float32(in_features))
    w = jax.random.uniform(kw, (out_features, in_features), jnp.float32,
                           minval=-bound, maxval=bound)
    b = jax.random.uniform(kb, (out_features,), jnp.float32,
                           minval=-bound, maxval=bound)
    # One-time layout + precision conversion at init (NOT in the hot path):
    # store weight as (In, Out) bf16, bias as (1, Out) f32.
    return w.T.astype(jnp.bfloat16), b.reshape(1, out_features).astype(jnp.float32)


def make_vae_params(key, input_size, latent_dim):
    # Small, lane-aligned (multiples of 128) analogues of the reference
    # 43201 -> 21600 -> 10800 -> 4096 -> latent pyramid.
    h1, h2, h3, h4 = 512, 384, 256, 128
    enc_dims = [(input_size, h1), (h1, h2), (h2, h3), (h3, h4), (h4, latent_dim)]
    dec_dims = [(latent_dim, h4), (h4, h3), (h3, h2), (h2, h1), (h1, input_size)]

    keys = jax.random.split(key, len(enc_dims) + len(dec_dims) + 2)
    ki = iter(keys)

    encoder = [_init_linear(next(ki), i, o) for (i, o) in enc_dims]
    decoder = [_init_linear(next(ki), i, o) for (i, o) in dec_dims]
    w_mu, b_mu = _init_linear(next(ki), latent_dim, latent_dim)
    w_lv, b_lv = _init_linear(next(ki), latent_dim, latent_dim)
    # Fuse the two latent heads into one (L, 2L) matmul: [mu | log_var].
    heads_w = jnp.concatenate([w_mu, w_lv], axis=1)
    heads_b = jnp.concatenate([b_mu, b_lv], axis=1)
    return {"encoder": encoder, "decoder": decoder, "heads": (heads_w, heads_b)}


# ----------------------------------------------------------------------------
if __name__ == "__main__":
    INPUT_SIZE = 128
    LATENT_DIM = 128
    BATCH = 2

    key = jax.random.PRNGKey(0)
    k_params, k_x, k_eps = jax.random.split(key, 3)

    params = make_vae_params(k_params, INPUT_SIZE, LATENT_DIM)
    x = jax.random.normal(k_x, (BATCH, INPUT_SIZE), jnp.float32)
    # eps ~ N(0,1) generated in glue (deterministic stand-in for randn_like).
    eps = jax.random.normal(k_eps, (BATCH, LATENT_DIM), jnp.float32)

    fwd = jax.jit(vae_forward)
    encoded, decoded, mu, log_var = fwd(params, x, eps)
    jax.block_until_ready((encoded, decoded, mu, log_var))

    # light sanity checks
    assert encoded.shape == (BATCH, LATENT_DIM)
    assert decoded.shape == (BATCH, INPUT_SIZE)
    assert mu.shape == (BATCH, LATENT_DIM)
    assert log_var.shape == (BATCH, LATENT_DIM)
    assert bool(jnp.all(jnp.isfinite(decoded)))
    assert bool(jnp.all(encoded >= 0.0))  # encoder ends in ReLU

    print("KERNEL_OK")
</pallas_src>

<mosaic_0001>
module attributes {stable_mosaic.version = 11 : i64} {
  func.func @_vae_fused_kernel(%arg0: memref<8x128xf32, #tpu.memory_space<vmem>>, %arg1: memref<8x128xf32, #tpu.memory_space<vmem>>, %arg2: memref<128x512xbf16, #tpu.memory_space<vmem>>, %arg3: memref<1x512xf32, #tpu.memory_space<vmem>>, %arg4: memref<512x384xbf16, #tpu.memory_space<vmem>>, %arg5: memref<1x384xf32, #tpu.memory_space<vmem>>, %arg6: memref<384x256xbf16, #tpu.memory_space<vmem>>, %arg7: memref<1x256xf32, #tpu.memory_space<vmem>>, %arg8: memref<256x128xbf16, #tpu.memory_space<vmem>>, %arg9: memref<1x128xf32, #tpu.memory_space<vmem>>, %arg10: memref<128x128xbf16, #tpu.memory_space<vmem>>, %arg11: memref<1x128xf32, #tpu.memory_space<vmem>>, %arg12: memref<128x256xbf16, #tpu.memory_space<vmem>>, %arg13: memref<1x256xf32, #tpu.memory_space<vmem>>, %arg14: memref<128x128xbf16, #tpu.memory_space<vmem>>, %arg15: memref<1x128xf32, #tpu.memory_space<vmem>>, %arg16: memref<128x256xbf16, #tpu.memory_space<vmem>>, %arg17: memref<1x256xf32, #tpu.memory_space<vmem>>, %arg18: memref<256x384xbf16, #tpu.memory_space<vmem>>, %arg19: memref<1x384xf32, #tpu.memory_space<vmem>>, %arg20: memref<384x512xbf16, #tpu.memory_space<vmem>>, %arg21: memref<1x512xf32, #tpu.memory_space<vmem>>, %arg22: memref<512x128xbf16, #tpu.memory_space<vmem>>, %arg23: memref<1x128xf32, #tpu.memory_space<vmem>>, %arg24: memref<8x128xf32, #tpu.memory_space<vmem>>, %arg25: memref<8x128xf32, #tpu.memory_space<vmem>>, %arg26: memref<8x128xf32, #tpu.memory_space<vmem>>, %arg27: memref<8x128xf32, #tpu.memory_space<vmem>>) attributes {dimension_semantics = [], scalar_prefetch = 0 : i64, scratch_operands = 0 : i64, tpu.core_type = #tpu.core_type<tc>} {
    %c0 = arith.constant 0 : index
    %c0_0 = arith.constant 0 : index
    %0 = vector.load %arg0[%c0, %c0_0] : memref<8x128xf32, #tpu.memory_space<vmem>>, vector<8x128xf32>
    %1 = arith.truncf %0 : vector<8x128xf32> to vector<8x128xbf16>
    %c0_1 = arith.constant 0 : index
    %c0_2 = arith.constant 0 : index
    %2 = vector.load %arg2[%c0_1, %c0_2] : memref<128x512xbf16, #tpu.memory_space<vmem>>, vector<128x512xbf16>
    %cst = arith.constant dense<0.000000e+00> : vector<8x512xf32>
    %3 = tpu.matmul %1, %2, %cst {dimension_numbers = #tpu.dot_dimension_numbers<[1], [0], [0], [1], [0, 0, 1, 1], [], []>} : vector<8x128xbf16>, vector<128x512xbf16>, vector<8x512xf32> -> vector<8x512xf32>
    %c0_3 = arith.constant 0 : index
    %c0_4 = arith.constant 0 : index
    %4 = vector.load %arg3[%c0_3, %c0_4] : memref<1x512xf32, #tpu.memory_space<vmem>>, vector<1x512xf32>
    %5 = vector.broadcast %4 : vector<1x512xf32> to vector<8x512xf32>
    %6 = arith.addf %3, %5 : vector<8x512xf32>
    %cst_5 = arith.constant 0.000000e+00 : f32
    %7 = vector.broadcast %cst_5 : f32 to vector<8x512xf32>
    %8 = arith.maximumf %6, %7 : vector<8x512xf32>
    %9 = arith.truncf %8 : vector<8x512xf32> to vector<8x512xbf16>
    %c0_6 = arith.constant 0 : index
    %c0_7 = arith.constant 0 : index
    %10 = vector.load %arg4[%c0_6, %c0_7] : memref<512x384xbf16, #tpu.memory_space<vmem>>, vector<512x384xbf16>
    %cst_8 = arith.constant dense<0.000000e+00> : vector<8x384xf32>
    %11 = tpu.matmul %9, %10, %cst_8 {dimension_numbers = #tpu.dot_dimension_numbers<[1], [0], [0], [1], [0, 0, 1, 1], [], []>} : vector<8x512xbf16>, vector<512x384xbf16>, vector<8x384xf32> -> vector<8x384xf32>
    %c0_9 = arith.constant 0 : index
    %c0_10 = arith.constant 0 : index
    %12 = vector.load %arg5[%c0_9, %c0_10] : memref<1x384xf32, #tpu.memory_space<vmem>>, vector<1x384xf32>
    %13 = vector.broadcast %12 : vector<1x384xf32> to vector<8x384xf32>
    %14 = arith.addf %11, %13 : vector<8x384xf32>
    %cst_11 = arith.constant 0.000000e+00 : f32
    %15 = vector.broadcast %cst_11 : f32 to vector<8x384xf32>
    %16 = arith.maximumf %14, %15 : vector<8x384xf32>
    %17 = arith.truncf %16 : vector<8x384xf32> to vector<8x384xbf16>
    %c0_12 = arith.constant 0 : index
    %c0_13 = arith.constant 0 : index
    %18 = vector.load %arg6[%c0_12, %c0_13] : memref<384x256xbf16, #tpu.memory_space<vmem>>, vector<384x256xbf16>
    %cst_14 = arith.constant dense<0.000000e+00> : vector<8x256xf32>
    %19 = tpu.matmul %17, %18, %cst_14 {dimension_numbers = #tpu.dot_dimension_numbers<[1], [0], [0], [1], [0, 0, 1, 1], [], []>} : vector<8x384xbf16>, vector<384x256xbf16>, vector<8x256xf32> -> vector<8x256xf32>
    %c0_15 = arith.constant 0 : index
    %c0_16 = arith.constant 0 : index
    %20 = vector.load %arg7[%c0_15, %c0_16] : memref<1x256xf32, #tpu.memory_space<vmem>>, vector<1x256xf32>
    %21 = vector.broadcast %20 : vector<1x256xf32> to vector<8x256xf32>
    %22 = arith.addf %19, %21 : vector<8x256xf32>
    %cst_17 = arith.constant 0.000000e+00 : f32
    %23 = vector.broadcast %cst_17 : f32 to vector<8x256xf32>
    %24 = arith.maximumf %22, %23 : vector<8x256xf32>
    %25 = arith.truncf %24 : vector<8x256xf32> to vector<8x256xbf16>
    %c0_18 = arith.constant 0 : index
    %c0_19 = arith.constant 0 : index
    %26 = vector.load %arg8[%c0_18, %c0_19] : memref<256x128xbf16, #tpu.memory_space<vmem>>, vector<256x128xbf16>
    %cst_20 = arith.constant dense<0.000000e+00> : vector<8x128xf32>
    %27 = tpu.matmul %25, %26, %cst_20 {dimension_numbers = #tpu.dot_dimension_numbers<[1], [0], [0], [1], [0, 0, 1, 1], [], []>} : vector<8x256xbf16>, vector<256x128xbf16>, vector<8x128xf32> -> vector<8x128xf32>
    %c0_21 = arith.constant 0 : index
    %c0_22 = arith.constant 0 : index
    %28 = vector.load %arg9[%c0_21, %c0_22] : memref<1x128xf32, #tpu.memory_space<vmem>>, vector<1x128xf32>
    %29 = vector.broadcast %28 : vector<1x128xf32> to vector<8x128xf32>
    %30 = arith.addf %27, %29 : vector<8x128xf32>
    %cst_23 = arith.constant 0.000000e+00 : f32
    %31 = vector.broadcast %cst_23 : f32 to vector<8x128xf32>
    %32 = arith.maximumf %30, %31 : vector<8x128xf32>
    %33 = arith.truncf %32 : vector<8x128xf32> to vector<8x128xbf16>
    %c0_24 = arith.constant 0 : index
    %c0_25 = arith.constant 0 : index
    %34 = vector.load %arg10[%c0_24, %c0_25] : memref<128x128xbf16, #tpu.memory_space<vmem>>, vector<128x128xbf16>
    %cst_26 = arith.constant dense<0.000000e+00> : vector<8x128xf32>
    %35 = tpu.matmul %33, %34, %cst_26 {dimension_numbers = #tpu.dot_dimension_numbers<[1], [0], [0], [1], [0, 0, 1, 1], [], []>} : vector<8x128xbf16>, vector<128x128xbf16>, vector<8x128xf32> -> vector<8x128xf32>
    %c0_27 = arith.constant 0 : index
    %c0_28 = arith.constant 0 : index
    %36 = vector.load %arg11[%c0_27, %c0_28] : memref<1x128xf32, #tpu.memory_space<vmem>>, vector<1x128xf32>
    %37 = vector.broadcast %36 : vector<1x128xf32> to vector<8x128xf32>
    %38 = arith.addf %35, %37 : vector<8x128xf32>
    %cst_29 = arith.constant 0.000000e+00 : f32
    %39 = vector.broadcast %cst_29 : f32 to vector<8x128xf32>
    %40 = arith.maximumf %38, %39 : vector<8x128xf32>
    %c0_30 = arith.constant 0 : index
    %c0_31 = arith.constant 0 : index
    %41 = vector.load %arg24[%c0_30, %c0_31] : memref<8x128xf32, #tpu.memory_space<vmem>>, vector<8x128xf32>
    tpu.vector_store %arg24[%c0_30, %c0_31], %40 {strides = array<i32>} : memref<8x128xf32, #tpu.memory_space<vmem>>, vector<8x128xf32>,
    %42 = arith.truncf %40 : vector<8x128xf32> to vector<8x128xbf16>
    %c0_32 = arith.constant 0 : index
    %c0_33 = arith.constant 0 : index
    %43 = vector.load %arg12[%c0_32, %c0_33] : memref<128x256xbf16, #tpu.memory_space<vmem>>, vector<128x256xbf16>
    %cst_34 = arith.constant dense<0.000000e+00> : vector<8x256xf32>
    %44 = tpu.matmul %42, %43, %cst_34 {dimension_numbers = #tpu.dot_dimension_numbers<[1], [0], [0], [1], [0, 0, 1, 1], [], []>} : vector<8x128xbf16>, vector<128x256xbf16>, vector<8x256xf32> -> vector<8x256xf32>
    %c0_35 = arith.constant 0 : index
    %c0_36 = arith.constant 0 : index
    %45 = vector.load %arg13[%c0_35, %c0_36] : memref<1x256xf32, #tpu.memory_space<vmem>>, vector<1x256xf32>
    %46 = vector.broadcast %45 : vector<1x256xf32> to vector<8x256xf32>
    %47 = arith.addf %44, %46 : vector<8x256xf32>
    %48 = vector.extract_strided_slice %47 {offsets = [0, 0], sizes = [8, 128], strides = [1, 1]} : vector<8x256xf32> to vector<8x128xf32>
    %49 = vector.extract_strided_slice %47 {offsets = [0, 128], sizes = [8, 128], strides = [1, 1]} : vector<8x256xf32> to vector<8x128xf32>
    %c0_37 = arith.constant 0 : index
    %c0_38 = arith.constant 0 : index
    %50 = vector.load %arg26[%c0_37, %c0_38] : memref<8x128xf32, #tpu.memory_space<vmem>>, vector<8x128xf32>
    tpu.vector_store %arg26[%c0_37, %c0_38], %48 {strides = array<i32>} : memref<8x128xf32, #tpu.memory_space<vmem>>, vector<8x128xf32>,
    %c0_39 = arith.constant 0 : index
    %c0_40 = arith.constant 0 : index
    %51 = vector.load %arg27[%c0_39, %c0_40] : memref<8x128xf32, #tpu.memory_space<vmem>>, vector<8x128xf32>
    tpu.vector_store %arg27[%c0_39, %c0_40], %49 {strides = array<i32>} : memref<8x128xf32, #tpu.memory_space<vmem>>, vector<8x128xf32>,
    %c0_41 = arith.constant 0 : index
    %c0_42 = arith.constant 0 : index
    %52 = vector.load %arg1[%c0_41, %c0_42] : memref<8x128xf32, #tpu.memory_space<vmem>>, vector<8x128xf32>
    %cst_43 = arith.constant 5.000000e-01 : f32
    %53 = vector.broadcast %cst_43 : f32 to vector<8x128xf32>
    %54 = arith.mulf %53, %49 : vector<8x128xf32>
    %55 = math.exp %54 : vector<8x128xf32>
    %56 = arith.mulf %52, %55 : vector<8x128xf32>
    %57 = arith.addf %48, %56 : vector<8x128xf32>
    %58 = arith.truncf %57 : vector<8x128xf32> to vector<8x128xbf16>
    %c0_44 = arith.constant 0 : index
    %c0_45 = arith.constant 0 : index
    %59 = vector.load %arg14[%c0_44, %c0_45] : memref<128x128xbf16, #tpu.memory_space<vmem>>, vector<128x128xbf16>
    %cst_46 = arith.constant dense<0.000000e+00> : vector<8x128xf32>
    %60 = tpu.matmul %58, %59, %cst_46 {dimension_numbers = #tpu.dot_dimension_numbers<[1], [0], [0], [1], [0, 0, 1, 1], [], []>} : vector<8x128xbf16>, vector<128x128xbf16>, vector<8x128xf32> -> vector<8x128xf32>
    %c0_47 = arith.constant 0 : index
    %c0_48 = arith.constant 0 : index
    %61 = vector.load %arg15[%c0_47, %c0_48] : memref<1x128xf32, #tpu.memory_space<vmem>>, vector<1x128xf32>
    %62 = vector.broadcast %61 : vector<1x128xf32> to vector<8x128xf32>
    %63 = arith.addf %60, %62 : vector<8x128xf32>
    %cst_49 = arith.constant 0.000000e+00 : f32
    %64 = vector.broadcast %cst_49 : f32 to vector<8x128xf32>
    %65 = arith.maximumf %63, %64 : vector<8x128xf32>
    %66 = arith.truncf %65 : vector<8x128xf32> to vector<8x128xbf16>
    %c0_50 = arith.constant 0 : index
    %c0_51 = arith.constant 0 : index
    %67 = vector.load %arg16[%c0_50, %c0_51] : memref<128x256xbf16, #tpu.memory_space<vmem>>, vector<128x256xbf16>
    %cst_52 = arith.constant dense<0.000000e+00> : vector<8x256xf32>
    %68 = tpu.matmul %66, %67, %cst_52 {dimension_numbers = #tpu.dot_dimension_numbers<[1], [0], [0], [1], [0, 0, 1, 1], [], []>} : vector<8x128xbf16>, vector<128x256xbf16>, vector<8x256xf32> -> vector<8x256xf32>
    %c0_53 = arith.constant 0 : index
    %c0_54 = arith.constant 0 : index
    %69 = vector.load %arg17[%c0_53, %c0_54] : memref<1x256xf32, #tpu.memory_space<vmem>>, vector<1x256xf32>
    %70 = vector.broadcast %69 : vector<1x256xf32> to vector<8x256xf32>
    %71 = arith.addf %68, %70 : vector<8x256xf32>
    %cst_55 = arith.constant 0.000000e+00 : f32
    %72 = vector.broadcast %cst_55 : f32 to vector<8x256xf32>
    %73 = arith.maximumf %71, %72 : vector<8x256xf32>
    %74 = arith.truncf %73 : vector<8x256xf32> to vector<8x256xbf16>
    %c0_56 = arith.constant 0 : index
    %c0_57 = arith.constant 0 : index
    %75 = vector.load %arg18[%c0_56, %c0_57] : memref<256x384xbf16, #tpu.memory_space<vmem>>, vector<256x384xbf16>
    %cst_58 = arith.constant dense<0.000000e+00> : vector<8x384xf32>
    %76 = tpu.matmul %74, %75, %cst_58 {dimension_numbers = #tpu.dot_dimension_numbers<[1], [0], [0], [1], [0, 0, 1, 1], [], []>} : vector<8x256xbf16>, vector<256x384xbf16>, vector<8x384xf32> -> vector<8x384xf32>
    %c0_59 = arith.constant 0 : index
    %c0_60 = arith.constant 0 : index
    %77 = vector.load %arg19[%c0_59, %c0_60] : memref<1x384xf32, #tpu.memory_space<vmem>>, vector<1x384xf32>
    %78 = vector.broadcast %77 : vector<1x384xf32> to vector<8x384xf32>
    %79 = arith.addf %76, %78 : vector<8x384xf32>
    %cst_61 = arith.constant 0.000000e+00 : f32
    %80 = vector.broadcast %cst_61 : f32 to vector<8x384xf32>
    %81 = arith.maximumf %79, %80 : vector<8x384xf32>
    %82 = arith.truncf %81 : vector<8x384xf32> to vector<8x384xbf16>
    %c0_62 = arith.constant 0 : index
    %c0_63 = arith.constant 0 : index
    %83 = vector.load %arg20[%c0_62, %c0_63] : memref<384x512xbf16, #tpu.memory_space<vmem>>, vector<384x512xbf16>
    %cst_64 = arith.constant dense<0.000000e+00> : vector<8x512xf32>
    %84 = tpu.matmul %82, %83, %cst_64 {dimension_numbers = #tpu.dot_dimension_numbers<[1], [0], [0], [1], [0, 0, 1, 1], [], []>} : vector<8x384xbf16>, vector<384x512xbf16>, vector<8x512xf32> -> vector<8x512xf32>
    %c0_65 = arith.constant 0 : index
    %c0_66 = arith.constant 0 : index
    %85 = vector.load %arg21[%c0_65, %c0_66] : memref<1x512xf32, #tpu.memory_space<vmem>>, vector<1x512xf32>
    %86 = vector.broadcast %85 : vector<1x512xf32> to vector<8x512xf32>
    %87 = arith.addf %84, %86 : vector<8x512xf32>
    %cst_67 = arith.constant 0.000000e+00 : f32
    %88 = vector.broadcast %cst_67 : f32 to vector<8x512xf32>
    %89 = arith.maximumf %87, %88 : vector<8x512xf32>
    %90 = arith.truncf %89 : vector<8x512xf32> to vector<8x512xbf16>
    %c0_68 = arith.constant 0 : index
    %c0_69 = arith.constant 0 : index
    %91 = vector.load %arg22[%c0_68, %c0_69] : memref<512x128xbf16, #tpu.memory_space<vmem>>, vector<512x128xbf16>
    %cst_70 = arith.constant dense<0.000000e+00> : vector<8x128xf32>
    %92 = tpu.matmul %90, %91, %cst_70 {dimension_numbers = #tpu.dot_dimension_numbers<[1], [0], [0], [1], [0, 0, 1, 1], [], []>} : vector<8x512xbf16>, vector<512x128xbf16>, vector<8x128xf32> -> vector<8x128xf32>
    %c0_71 = arith.constant 0 : index
    %c0_72 = arith.constant 0 : index
    %93 = vector.load %arg23[%c0_71, %c0_72] : memref<1x128xf32, #tpu.memory_space<vmem>>, vector<1x128xf32>
    %94 = vector.broadcast %93 : vector<1x128xf32> to vector<8x128xf32>
    %95 = arith.addf %92, %94 : vector<8x128xf32>
    %c0_73 = arith.constant 0 : index
    %c0_74 = arith.constant 0 : index
    %96 = vector.load %arg25[%c0_73, %c0_74] : memref<8x128xf32, #tpu.memory_space<vmem>>, vector<8x128xf32>
    tpu.vector_store %arg25[%c0_73, %c0_74], %95 {strides = array<i32>} : memref<8x128xf32, #tpu.memory_space<vmem>>, vector<8x128xf32>,
    return
  }
}

</mosaic_0001>

<bundles_post_ra>
// kernel: vae_forward.1
= control target key start
LH: loop header
LB: loop body
LE: loop exit
PB: predicated region body
PF: predicated region fallthrough
CT: control target
= control target key end

     0   :  { %s6553_s0 = inlined_call_operand.vmem [shape: f32[8,128], index: 0, kind: input, shape index: {}]   ;;  %s6554_s1 = inlined_call_operand.vmem [shape: f32[8,128], index: 1, kind: input, shape index: {}]   ;;  %s6555_s2 = inlined_call_operand.hbm [shape: bf16[128,512], index: 2, kind: input, shape index: {}]   ;;  %s6556_s3 = inlined_call_operand.vmem [shape: f32[1,512], index: 3, kind: input, shape index: {}]   ;;  %s6557_s4 = inlined_call_operand.hbm [shape: bf16[512,384], index: 4, kind: input, shape index: {}]   ;;  %s6558_s5 = inlined_call_operand.vmem [shape: f32[1,384], index: 5, kind: input, shape index: {}]   ;;  %s6559_s6 = inlined_call_operand.hbm [shape: bf16[384,256], index: 6, kind: input, shape index: {}]   ;;  %s6560_s7 = inlined_call_operand.vmem [shape: f32[1,256], index: 7, kind: input, shape index: {}]   ;;  %s6561_s8 = inlined_call_operand.hbm [shape: bf16[256,128], index: 8, kind: input, shape index: {}]   ;;  %s6562_s9 = inlined_call_operand.vmem [shape: f32[1,128], index: 9, kind: input, shape index: {}]   ;;  %s6563_s10 = inlined_call_operand.hbm [shape: bf16[128,128], index: 10, kind: input, shape index: {}]   ;;  %s6564_s11 = inlined_call_operand.vmem [shape: f32[1,128], index: 11, kind: input, shape index: {}]   ;;  %s6565_s12 = inlined_call_operand.hbm [shape: bf16[128,256], index: 12, kind: input, shape index: {}]   ;;  %s6566_s13 = inlined_call_operand.vmem [shape: f32[1,256], index: 13, kind: input, shape index: {}]   ;;  %s6567_s14 = inlined_call_operand.hbm [shape: bf16[128,128], index: 14, kind: input, shape index: {}]   ;;  %s6568_s15 = inlined_call_operand.hbm [shape: f32[1,128], index: 15, kind: input, shape index: {}]   ;;  %s6569_s16 = inlined_call_operand.hbm [shape: bf16[128,256], index: 16, kind: input, shape index: {}]   ;;  %s6570_s17 = inlined_call_operand.vmem [shape: f32[1,256], index: 17, kind: input, shape index: {}]   ;;  %s6571_s18 = inlined_call_operand.hbm [shape: bf16[256,384], index: 18, kind: input, shape index: {}]   ;;  %s6572_s19 = inlined_call_operand.vmem [shape: f32[1,384], index: 19, kind: input, shape index: {}]   ;;  %s6573_s20 = inlined_call_operand.hbm [shape: bf16[384,512], index: 20, kind: input, shape index: {}]   ;;  %s6574_s21 = inlined_call_operand.vmem [shape: f32[1,512], index: 21, kind: input, shape index: {}]   ;;  %s6575_s22 = inlined_call_operand.hbm [shape: bf16[512,128], index: 22, kind: input, shape index: {}]   ;;  %s6576_s23 = inlined_call_operand.vmem [shape: f32[1,128], index: 23, kind: input, shape index: {}]   ;;  %s6577_s24 = inlined_call_operand.vmem [shape: f32[8,128], index: 24, kind: output, shape index: {0}]   ;;  %s6578_s25 = inlined_call_operand.vmem [shape: f32[8,128], index: 25, kind: output, shape index: {1}]   ;;  %s6579_s26 = inlined_call_operand.vmem [shape: f32[8,128], index: 26, kind: output, shape index: {2}]   ;;  %s6580_s27 = inlined_call_operand.vmem [shape: f32[8,128], index: 27, kind: output, shape index: {3}]  }
   0x1   :  { %6589 = sst [smem:[#allocation28_spill]] %s6553_s0 }
   0x2   :  { %6590 = sst [smem:[#allocation29_spill]] %s6554_s1 }
   0x3   :  { %6591 = sst [smem:[#allocation30_spill]] %s6555_s2 }
   0x4   :  { %6592 = sst [smem:[#allocation31_spill]] %s6556_s3 }
   0x5   :  { %6593 = sst [smem:[#allocation32_spill]] %s6557_s4 }
   0x6   :  { %6594 = sst [smem:[#allocation33_spill]] %s6558_s5 }
   0x7   :  { %6595 = sst [smem:[#allocation34_spill]] %s6559_s6 }
   0x8   :  { %6596 = sst [smem:[#allocation35_spill]] %s6560_s7 }
   0x9   :  { %6597 = sst [smem:[#allocation36_spill]] %s6561_s8 }
   0xa   :  { %6598 = sst [smem:[#allocation37_spill]] %s6562_s9 }
   0xb   :  { %6599 = sst [smem:[#allocation38_spill]] %s6563_s10 }
   0xc   :  { %6600 = sst [smem:[#allocation39_spill]] %s6564_s11 }
   0xd   :  { %33 = vsyncpa [#allocation3], 0 }
   0xe   :  { %34 = vsyncpa [#allocation5], 0 }
   0xf   :  { %35 = vsyncpa [#allocation8], 0 }
  0x10   :  { %36 = vsyncpa [#allocation11], 0 }
  0x11   :  { %37 = vsyncpa [#allocation14], 0 }
  0x12   :  { %38 = vsyncpa [#allocation17], 0  ;;  %s6601_s8 = sld [smem:[#allocation32_spill]] }
  0x18   :  { %s63_s30 = sshll.u32 %s6601_s8, 4  ;;  %s64_s30 = int_to_ptr.hbm [resolvable:$true] %s63_s30 }
  0x19   :  { %39 = vsyncpa [#allocation20], 0  ;;  %s6218_s9 = smov [#allocation4]   ;;  %s6602_s10 = sld [smem:[#allocation36_spill]] }
  0x1a   :  { %s65_s5 = sshll.u32 %s6218_s9, 4  ;;  %s6581_s1 = smov 192   ;;  %s66_s5 = int_to_ptr.vmem [resolvable:$true] %s65_s5 }
  0x1b   :  { %s6220_s6 = smov 12   ;;  %s6221_s11 = smov [#allocation7]  }
  0x1c   :  { %71 = dma.hbm_to_vmem [thread:$0]  %s64_s30, 12288, %s66_s5, [#allocation5], %s6581_s1, %s6581_s1, %s6220_s6  }
  0x1d   :  { %s95_s2 = sshll.u32 %s6221_s11, 4  ;;  %s6582_s3 = smov 64   ;;  %s96_s2 = int_to_ptr.vmem [resolvable:$true] %s95_s2 }
  0x1e   :  { %s6584_s7 = smov 4   ;;  %s123_s9 = sshll.u32 %s6565_s12, 4  ;;  %s124_s9 = int_to_ptr.hbm [resolvable:$true] %s123_s9 }
  0x1f   :  { %s93_s29 = sshll.u32 %s6602_s10, 4  ;;  %s6224_s28 = smov [#allocation10]   ;;  %s94_s29 = int_to_ptr.hbm [resolvable:$true] %s93_s29 }
  0x20   :  { %101 = dma.hbm_to_vmem [thread:$0]  %s94_s29, 2048, %s96_s2, [#allocation8], %s6582_s3, %s6582_s3, %s6584_s7  }
  0x21   :  { %s125_s0 = sshll.u32 %s6224_s28, 4  ;;  %s152_s5 = sshll.u32 %s6568_s15, 4  ;;  %s126_s0 = int_to_ptr.vmem [resolvable:$true] %s125_s0  ;;  %s153_s5 = int_to_ptr.hbm [resolvable:$true] %s152_s5 }
  0x22   :  { %s6586_s11 = smov 128   ;;  %s6226_s1 = smov 8  }
  0x23   :  { %131 = dma.hbm_to_vmem [thread:$0]  %s124_s9, 2048, %s126_s0, [#allocation11], %s6586_s11, %s6586_s11, %s6226_s1  }
  0x24   :  { %s6227_s29 = smov [#allocation13]   ;;  %s177_s12 = sshll.u32 %s6571_s18, 4  ;;  %s178_s12 = int_to_ptr.hbm [resolvable:$true] %s177_s12 }
  0x25   :  { %s154_s2 = sshll.u32 %s6227_s29, 4  ;;  %s6603_s10 = sld [smem:[#allocation30_spill]]  ;;  %s155_s2 = int_to_ptr.vmem [resolvable:$true] %s154_s2 }
  0x26   :  { %157 = dma.hbm_to_vmem [thread:$0]  %s153_s5, 16, %s155_s2, [#allocation14]  }
  0x27   :  { %s6228_s30 = smov [#allocation16]   ;;  %s6604_s9 = smov 192  }
  0x28   :  { %s179_s7 = sshll.u32 %s6228_s30, 4  ;;  %s6229_s0 = smov [#allocation2]   ;;  %s180_s7 = int_to_ptr.vmem [resolvable:$true] %s179_s7 }
  0x29   :  { %185 = dma.hbm_to_vmem [thread:$0]  %s178_s12, 6144, %s180_s7, [#allocation17], %s6604_s9, %s6604_s9, %s6220_s6  }
  0x2a   :  { %s50_s29 = sshll.u32 %s6229_s0, 4  ;;  %s6588_s3 = smov 256   ;;  %s51_s29 = int_to_ptr.vmem [resolvable:$true] %s50_s29 }
  0x2b   :  { %s48_s15 = sshll.u32 %s6603_s10, 4  ;;  %s6231_s18 = smov 16   ;;  %s49_s15 = int_to_ptr.hbm [resolvable:$true] %s48_s15 }
  0x2c   :  { %56 = dma.hbm_to_vmem [thread:$0]  %s49_s15, 4096, %s51_s29, [#allocation3], %s6588_s3, %s6588_s3, %s6231_s18  }
  0x2d   :  { %s6605_s4 = sld [smem:[#allocation34_spill]]  ;;  %s6232_s28 = smov [#allocation6]  }
  0x2e   :  { %s80_s10 = sshll.u32 %s6232_s28, 4  ;;  %s6606_s6 = sld [smem:[#allocation38_spill]]  ;;  %s81_s10 = int_to_ptr.vmem [resolvable:$true] %s80_s10 }
  0x2f   :  { %s6607_s12 = smov 128   ;;  %s6233_s9 = smov [#allocation9]  }
  0x30   :  { %s110_s0 = sshll.u32 %s6233_s9, 4  ;;  %s138_s5 = sshll.u32 %s6567_s14, 4  ;;  %s111_s0 = int_to_ptr.vmem [resolvable:$true] %s110_s0  ;;  %s139_s5 = int_to_ptr.hbm [resolvable:$true] %s138_s5 }
  0x31   :  { %s6608_s2 = smov 4   ;;  %s162_s30 = sshll.u32 %s6569_s16, 4  ;;  %s163_s30 = int_to_ptr.hbm [resolvable:$true] %s162_s30 }
  0x32   :  { %s192_s15 = sshll.u32 %s6573_s20, 4  ;;  %s6236_s29 = smov [#allocation18]   ;;  %s193_s15 = int_to_ptr.hbm [resolvable:$true] %s192_s15 }
  0x33   :  { %s78_s8 = sshll.u32 %s6605_s4, 4  ;;  %s6609_s4 = smov 64   ;;  %s79_s8 = int_to_ptr.hbm [resolvable:$true] %s78_s8 }
  0x34   :  { %s108_s7 = sshll.u32 %s6606_s6, 4  ;;  %s6234_s6 = smov [#allocation12]   ;;  %s109_s7 = int_to_ptr.hbm [resolvable:$true] %s108_s7 }
  0x35   :  { %86 = dma.hbm_to_vmem [thread:$0]  %s79_s8, 6144, %s81_s10, [#allocation5], %s6607_s12, %s6607_s12, %s6226_s1  }
  0x36   :  { %116 = dma.hbm_to_vmem [thread:$0]  %s109_s7, 1024, %s111_s0, [#allocation8], %s6609_s4, %s6609_s4, %s6608_s2  }
  0x37   :  { %s140_s3 = sshll.u32 %s6234_s6, 4  ;;  %s6235_s8 = smov [#allocation15]   ;;  %s141_s3 = int_to_ptr.vmem [resolvable:$true] %s140_s3 }
  0x38   :  { %146 = dma.hbm_to_vmem [thread:$0]  %s139_s5, 1024, %s141_s3, [#allocation11], %s6609_s4, %s6609_s4, %s6608_s2  }
  0x39   :  { %s164_s14 = sshll.u32 %s6235_s8, 4  ;;  %s207_s0 = sshll.u32 %s6575_s22, 4  ;;  %s165_s14 = int_to_ptr.vmem [resolvable:$true] %s164_s14  ;;  %s208_s0 = int_to_ptr.hbm [resolvable:$true] %s207_s0 }
  0x3a   :  { %170 = dma.hbm_to_vmem [thread:$0]  %s163_s30, 2048, %s165_s14, [#allocation14], %s6607_s12, %s6607_s12, %s6226_s1  }
  0x3b   :  { %s194_s28 = sshll.u32 %s6236_s29, 4  ;;  %s6610_s3 = smov 256   ;;  %s195_s28 = int_to_ptr.vmem [resolvable:$true] %s194_s28 }
  0x3c   :  { %200 = dma.hbm_to_vmem [thread:$0]  %s193_s15, 12288, %s195_s28, [#allocation17], %s6610_s3, %s6610_s3, %s6231_s18  }
  0x3d   :  { %s6237_s5 = smov [#allocation19]  }
  0x3e   :  { %s209_s20 = sshll.u32 %s6237_s5, 4  ;;  %s210_s20 = int_to_ptr.vmem [resolvable:$true] %s209_s20 }
  0x3f   :  { %215 = dma.hbm_to_vmem [thread:$0]  %s208_s0, 4096, %s210_s20, [#allocation20], %s6609_s4, %s6609_s4, %s6608_s2  }
  0x40   :  { %6204 = dma.done.wait [#allocation3], 4096  }
  0x41   :  { %6205 = vsyncadd [#allocation3], 4294963200 }
  0x42   :  { %6206 = dma.done.wait [#allocation5], 18432  }
  0x43   :  { %6207 = vsyncadd [#allocation5], 4294948864 }
  0x44   :  { %6208 = dma.done.wait [#allocation8], 3072  }
  0x45   :  { %6209 = vsyncadd [#allocation8], 4294964224 }
  0x46   :  { %6210 = dma.done.wait [#allocation11], 3072  }
  0x47   :  { %6211 = vsyncadd [#allocation11], 4294964224 }
  0x48   :  { %6212 = dma.done.wait [#allocation14], 2064  }
  0x49   :  { %6213 = vsyncadd [#allocation14], 4294965232 }
  0x4a   :  { %6214 = dma.done.wait [#allocation17], 18432  }
  0x4b   :  { %6215 = vsyncadd [#allocation17], 4294948864 }
  0x4c   :  { %6216 = dma.done.wait [#allocation20], 4096  }
  0x4d   :  { %6217 = vsyncadd [#allocation20], 4294963200  ;;  %v3924_v0 = vld [vmem:[#allocation2 + $0xe0] sm:$0xf]  ;;  %v5504_v1 = vld [vmem:[#allocation2 + $0xec] sm:$0xf0] }
  0x4e   :  { %v5502_v2 = vld [vmem:[#allocation2 + $0xe4] sm:$0xf]  ;;  %v3925_v3 = vor.u32 %v5504_v1, %v3924_v0  ;;  %v3926_v4 = vld [vmem:[#allocation2 + $0xf0] sm:$0xf0]  ;;  %v3932_v5 = vld [vmem:[#allocation2 + $0xe8] sm:$0xf] }
  0x4f   :  { %v5505_v6 = vld [vmem:[#allocation2 + $0xf4] sm:$0xf0]  ;;  %v3929_v7 = vor.u32 %v5502_v2, %v3926_v4  ;;  %v5503_v9 = vld [vmem:[#allocation2 + $0xec] sm:$0xf]  ;;  %v3934_v10 = vld [vmem:[#allocation2 + $0xf8] sm:$0xf0] }
  0x50   :  { %v3933_v8 = vor.u32 %v5505_v6, %v3932_v5  ;;  %v3908_v11 = vld [vmem:[#allocation2 + $0xc0] sm:$0xf]  ;;  %470 = vmatpush.bf16.msra.mxu0 %v3925_v3  ;;  %v3937_v12 = vor.u32 %v5503_v9, %v3934_v10  ;;  %v5500_v13 = vld [vmem:[#allocation2 + $0xcc] sm:$0xf0]  ;;  %v5498_v14 = vld [vmem:[#allocation2 + $0xc4] sm:$0xf] }
  0x51   :  { %v3910_v15 = vld [vmem:[#allocation2 + $0xd0] sm:$0xf0]  ;;  %483 = vmatpush.bf16.msra.mxu1 %v3929_v7  ;;  %v3909_v16 = vor.u32 %v5500_v13, %v3908_v11  ;;  %v3916_v18 = vld [vmem:[#allocation2 + $0xc8] sm:$0xf]  ;;  %v5501_v19 = vld [vmem:[#allocation2 + $0xd4] sm:$0xf0] }
  0x52   :  { %496 = vmatpush.bf16.msra.mxu2 %v3933_v8  ;;  %v3913_v17 = vor.u32 %v5498_v14, %v3910_v15  ;;  %v5499_v20 = vld [vmem:[#allocation2 + $0xcc] sm:$0xf]  ;;  %509 = vmatpush.bf16.msra.mxu3 %v3937_v12  ;;  %v3917_v21 = vor.u32 %v5501_v19, %v3916_v18  ;;  %v3918_v22 = vld [vmem:[#allocation2 + $0xd8] sm:$0xf0]  ;;  %v3892_v23 = vld [vmem:[#allocation2 + $0xa0] sm:$0xf] }
  0x53   :  { %v5496_v24 = vld [vmem:[#allocation2 + $0xac] sm:$0xf0]  ;;  %v3921_v25 = vor.u32 %v5499_v20, %v3918_v22  ;;  %v5494_v26 = vld [vmem:[#allocation2 + $0xa4] sm:$0xf]  ;;  %v3894_v27 = vld [vmem:[#allocation2 + $0xb0] sm:$0xf0] }
  0x54   :  { %v3900_v28 = vld [vmem:[#allocation2 + $0xa8] sm:$0xf]  ;;  %471 = vmatpush.bf16.msra.mxu0 %v3909_v16  ;;  %v3893_v29 = vor.u32 %v5496_v24, %v3892_v23  ;;  %v5497_v30 = vld [vmem:[#allocation2 + $0xb4] sm:$0xf0]  ;;  %v5495_v31 = vld [vmem:[#allocation2 + $0xac] sm:$0xf]  ;;  %v3897_v33 = vor.u32 %v5494_v26, %v3894_v27 }
  0x55   :  { %v3902_v32 = vld [vmem:[#allocation2 + $0xb8] sm:$0xf0]  ;;  %484 = vmatpush.bf16.msra.mxu1 %v3913_v17  ;;  %v3901_v34 = vor.u32 %v5497_v30, %v3900_v28  ;;  %v3876_v35 = vld [vmem:[#allocation2 + $0x80] sm:$0xf]  ;;  %v5492_v36 = vld [vmem:[#allocation2 + $0x8c] sm:$0xf0] }
  0x56   :  { %497 = vmatpush.bf16.msra.mxu2 %v3917_v21  ;;  %v5490_v37 = vld [vmem:[#allocation2 + $0x84] sm:$0xf]  ;;  %510 = vmatpush.bf16.msra.mxu3 %v3921_v25  ;;  %v3905_v38 = vor.u32 %v5495_v31, %v3902_v32  ;;  %v3878_v39 = vld [vmem:[#allocation2 + $0x90] sm:$0xf0]  ;;  %v3884_v40 = vld [vmem:[#allocation2 + $0x88] sm:$0xf]  ;;  %v3877_v44 = vor.u32 %v5492_v36, %v3876_v35 }
  0x57   :  { %v5493_v41 = vld [vmem:[#allocation2 + $0x94] sm:$0xf0]  ;;  %v5491_v42 = vld [vmem:[#allocation2 + $0x8c] sm:$0xf]  ;;  %v3886_v43 = vld [vmem:[#allocation2 + $0x98] sm:$0xf0]  ;;  %v3881_v45 = vor.u32 %v5490_v37, %v3878_v39 }
  0x58   :  { %472 = vmatpush.bf16.msra.mxu0 %v3893_v29  ;;  %v3885_v46 = vor.u32 %v5493_v41, %v3884_v40  ;;  %v3860_v47 = vld [vmem:[#allocation2 + $0x60] sm:$0xf]  ;;  %v5488_v48 = vld [vmem:[#allocation2 + $0x6c] sm:$0xf0]  ;;  %v5486_v49 = vld [vmem:[#allocation2 + $0x64] sm:$0xf]  ;;  %v3889_v50 = vor.u32 %v5491_v42, %v3886_v43 }
  0x59   :  { %485 = vmatpush.bf16.msra.mxu1 %v3897_v33  ;;  %v3862_v51 = vld [vmem:[#allocation2 + $0x70] sm:$0xf0]  ;;  %v3868_v52 = vld [vmem:[#allocation2 + $0x68] sm:$0xf]  ;;  %v5489_v53 = vld [vmem:[#allocation2 + $0x74] sm:$0xf0]  ;;  %v3861_v56 = vor.u32 %v5488_v48, %v3860_v47 }
  0x5a   :  { %498 = vmatpush.bf16.msra.mxu2 %v3901_v34  ;;  %511 = vmatpush.bf16.msra.mxu3 %v3905_v38  ;;  %v5487_v54 = vld [vmem:[#allocation2 + $0x6c] sm:$0xf]  ;;  %v3870_v55 = vld [vmem:[#allocation2 + $0x78] sm:$0xf0]  ;;  %v3865_v57 = vor.u32 %v5486_v49, %v3862_v51  ;;  %v3869_v58 = vor.u32 %v5489_v53, %v3868_v52  ;;  %v3844_v59 = vld [vmem:[#allocation2 + $0x40] sm:$0xf] }
  0x5b   :  { %v5484_v60 = vld [vmem:[#allocation2 + $0x4c] sm:$0xf0]  ;;  %v5482_v61 = vld [vmem:[#allocation2 + $0x44] sm:$0xf]  ;;  %v3873_v62 = vor.u32 %v5487_v54, %v3870_v55  ;;  %v3846_v63 = vld [vmem:[#allocation2 + $0x50] sm:$0xf0] }
  0x5c   :  { %473 = vmatpush.bf16.msra.mxu0 %v3877_v44  ;;  %v3852_v0 = vld [vmem:[#allocation2 + $0x48] sm:$0xf]  ;;  %v5485_v1 = vld [vmem:[#allocation2 + $0x54] sm:$0xf0]  ;;  %v5483_v2 = vld [vmem:[#allocation2 + $0x4c] sm:$0xf]  ;;  %v3845_v4 = vor.u32 %v5484_v60, %v3844_v59  ;;  %v3849_v5 = vor.u32 %v5482_v61, %v3846_v63 }
  0x5d   :  { %486 = vmatpush.bf16.msra.mxu1 %v3881_v45  ;;  %v3854_v3 = vld [vmem:[#allocation2 + $0x58] sm:$0xf0]  ;;  %v3853_v6 = vor.u32 %v5485_v1, %v3852_v0  ;;  %v3828_v7 = vld [vmem:[#allocation2 + $0x20] sm:$0xf]  ;;  %v5480_v8 = vld [vmem:[#allocation2 + $0x2c] sm:$0xf0] }
  0x5e   :  { %499 = vmatpush.bf16.msra.mxu2 %v3885_v46  ;;  %512 = vmatpush.bf16.msra.mxu3 %v3889_v50  ;;  %v5478_v9 = vld [vmem:[#allocation2 + $0x24] sm:$0xf]  ;;  %v3857_v10 = vor.u32 %v5483_v2, %v3854_v3  ;;  %v3830_v11 = vld [vmem:[#allocation2 + $0x30] sm:$0xf0]  ;;  %v3836_v12 = vld [vmem:[#allocation2 + $0x28] sm:$0xf]  ;;  %v3829_v16 = vor.u32 %v5480_v8, %v3828_v7 }
  0x5f   :  { %v5481_v13 = vld [vmem:[#allocation2 + $0x34] sm:$0xf0]  ;;  %v5479_v14 = vld [vmem:[#allocation2 + $0x2c] sm:$0xf]  ;;  %v3838_v15 = vld [vmem:[#allocation2 + $0x38] sm:$0xf0]  ;;  %v3833_v18 = vor.u32 %v5478_v9, %v3830_v11 }
  0x60   :  { %474 = vmatpush.bf16.msra.mxu0 %v3861_v56  ;;  %v3812_v17 = vld [vmem:[#allocation2] sm:$0xf]  ;;  %v3837_v19 = vor.u32 %v5481_v13, %v3836_v12  ;;  %v5476_v20 = vld [vmem:[#allocation2 + $0xc] sm:$0xf0]  ;;  %v5474_v21 = vld [vmem:[#allocation2 + $0x4] sm:$0xf]  ;;  %v3841_v23 = vor.u32 %v5479_v14, %v3838_v15 }
  0x61   :  { %487 = vmatpush.bf16.msra.mxu1 %v3865_v57  ;;  %v3814_v22 = vld [vmem:[#allocation2 + $0x10] sm:$0xf0]  ;;  %v3820_v24 = vld [vmem:[#allocation2 + $0x8] sm:$0xf]  ;;  %v5477_v25 = vld [vmem:[#allocation2 + $0x14] sm:$0xf0]  ;;  %v3813_v30 = vor.u32 %v5476_v20, %v3812_v17 }
  0x62   :  { %500 = vmatpush.bf16.msra.mxu2 %v3869_v58  ;;  %513 = vmatpush.bf16.msra.mxu3 %v3873_v62  ;;  %v5475_v26 = vld [vmem:[#allocation2 + $0xc] sm:$0xf]  ;;  %v3822_v27 = vld [vmem:[#allocation2 + $0x18] sm:$0xf0]  ;;  %v4024_v28 = vld [vmem:[#allocation4 + $0xa8] sm:$0xf]  ;;  %v3817_v34 = vor.u32 %v5474_v21, %v3814_v22  ;;  %v3821_v35 = vor.u32 %v5477_v25, %v3820_v24 }
  0x63   :  { %v5528_v29 = vld [vmem:[#allocation4 + $0xb0] sm:$0xf0]  ;;  %s6611_s18 = sld [smem:[#allocation28_spill]]  ;;  %v4120_v32 = vld [vmem:[#allocation4 + $0x168] sm:$0xf]  ;;  %v3825_v36 = vor.u32 %v5475_v26, %v3822_v27 }
  0x64   :  { %475 = vmatpush.bf16.msra.mxu0 %v3845_v4  ;;  %v5552_v33 = vld [vmem:[#allocation4 + $0x170] sm:$0xf0]  ;;  %v4025_v37 = vor.u32 %v5528_v29, %v4024_v28  ;;  %v4012_v38 = vld [vmem:[#allocation4 + $0x90] sm:$0xf]  ;;  %v4216_v39 = vld [vmem:[#allocation4 + $0x228] sm:$0xf] }
  0x65   :  { %488 = vmatpush.bf16.msra.mxu1 %v3849_v5  ;;  %v5576_v40 = vld [vmem:[#allocation4 + $0x230] sm:$0xf0]  ;;  %v4121_v42 = vor.u32 %v5552_v33, %v4120_v32  ;;  %v5525_v43 = vld [vmem:[#allocation4 + $0x98] sm:$0xf0]  ;;  %v4312_v44 = vld [vmem:[#allocation4 + $0x2e8] sm:$0xf] }
  0x66   :  { %501 = vmatpush.bf16.msra.mxu2 %v3853_v6  ;;  %514 = vmatpush.bf16.msra.mxu3 %v3857_v10  ;;  %v5600_v45 = vld [vmem:[#allocation4 + $0x2f0] sm:$0xf0]  ;;  %v4108_v46 = vld [vmem:[#allocation4 + $0x150] sm:$0xf]  ;;  %v5549_v47 = vld [vmem:[#allocation4 + $0x158] sm:$0xf0]  ;;  %v4217_v48 = vor.u32 %v5576_v40, %v4216_v39  ;;  %v4013_v49 = vor.u32 %v5525_v43, %v4012_v38 }
  0x67   :  { %v4313_v50 = vor.u32 %v5600_v45, %v4312_v44  ;;  %v4000_v51 = vld [vmem:[#allocation4 + $0x78] sm:$0xf]  ;;  %v4204_v52 = vld [vmem:[#allocation4 + $0x210] sm:$0xf]  ;;  %v5573_v53 = vld [vmem:[#allocation4 + $0x218] sm:$0xf0]  ;;  %v4109_v54 = vor.u32 %v5549_v47, %v4108_v46 }
  0x68   :  { %476 = vmatpush.bf16.msra.mxu0 %v3829_v16  ;;  %v5522_v55 = vld [vmem:[#allocation4 + $0x80] sm:$0xf0]  ;;  %v4300_v56 = vld [vmem:[#allocation4 + $0x2d0] sm:$0xf]  ;;  %v5597_v57 = vld [vmem:[#allocation4 + $0x2d8] sm:$0xf0]  ;;  %v4205_v60 = vor.u32 %v5573_v53, %v4204_v52 }
  0x69   :  { %v266_v31 = vld [vmem:[%s6611_s18] sm:$0xff]  ;;  %489 = vmatpush.bf16.msra.mxu1 %v3833_v18  ;;  %v4096_v58 = vld [vmem:[#allocation4 + $0x138] sm:$0xf]  ;;  %v4001_v61 = vor.u32 %v5522_v55, %v4000_v51  ;;  %v4301_v62 = vor.u32 %v5597_v57, %v4300_v56  ;;  %v5519_v3 = vld [vmem:[#allocation4 + $0x68] sm:$0xf0]  ;;  %s6612_s4 = sld [smem:[#allocation31_spill]] }
  0x6a   :  { %502 = vmatpush.bf16.msra.mxu2 %v3837_v19  ;;  %515 = vmatpush.bf16.msra.mxu3 %v3841_v23  ;;  %v267_v41 = vpack.c.bf16 %v266_v31, %v266_v31  ;;  %v5546_v59 = vld [vmem:[#allocation4 + $0x140] sm:$0xf0]  ;;  %v3988_v63 = vld [vmem:[#allocation4 + $0x60] sm:$0xf]  ;;  %v4192_v0 = vld [vmem:[#allocation4 + $0x1f8] sm:$0xf] }
  0x6b   :  { %v5570_v1 = vld [vmem:[#allocation4 + $0x200] sm:$0xf0]  ;;  %v4097_v2 = vor.u32 %v5546_v59, %v4096_v58  ;;  %v4288_v4 = vld [vmem:[#allocation4 + $0x2b8] sm:$0xf]  ;;  %v4084_v6 = vld [vmem:[#allocation4 + $0x120] sm:$0xf]  ;;  %v3989_v9 = vor.u32 %v5519_v3, %v3988_v63 }
  0x6c   :  { %477 = vmatpush.bf16.msra.mxu0 %v3813_v30  ;;  %v5594_v5 = vld [vmem:[#allocation4 + $0x2c0] sm:$0xf0]  ;;  %v5543_v7 = vld [vmem:[#allocation4 + $0x128] sm:$0xf0]  ;;  %v4193_v8 = vor.u32 %v5570_v1, %v4192_v0  ;;  %v3976_v11 = vld [vmem:[#allocation4 + $0x48] sm:$0xf] }
  0x6d   :  { %490 = vmatpush.bf16.msra.mxu1 %v3817_v34  ;;  %v4289_v10 = vor.u32 %v5594_v5, %v4288_v4  ;;  %v4180_v12 = vld [vmem:[#allocation4 + $0x1e0] sm:$0xf]  ;;  %v5567_v13 = vld [vmem:[#allocation4 + $0x1e8] sm:$0xf0]  ;;  %v4085_v14 = vor.u32 %v5543_v7, %v4084_v6  ;;  %v5516_v15 = vld [vmem:[#allocation4 + $0x50] sm:$0xf0] }
  0x6e   :  { %503 = vmatpush.bf16.msra.mxu2 %v3821_v35  ;;  %516 = vmatpush.bf16.msra.mxu3 %v3825_v36  ;;  %v4276_v16 = vld [vmem:[#allocation4 + $0x2a0] sm:$0xf]  ;;  %v5591_v17 = vld [vmem:[#allocation4 + $0x2a8] sm:$0xf0]  ;;  %v4072_v18 = vld [vmem:[#allocation4 + $0x108] sm:$0xf]  ;;  %v4181_v20 = vor.u32 %v5567_v13, %v4180_v12  ;;  %v3977_v21 = vor.u32 %v5516_v15, %v3976_v11 }
  0x6f   :  { %478 = vmatmul.bf16.vlgmr.msra.gmra.mxu0 %v267_v41  ;;  %v5540_v19 = vld [vmem:[#allocation4 + $0x110] sm:$0xf0]  ;;  %v4277_v22 = vor.u32 %v5591_v17, %v4276_v16  ;;  %v3964_v23 = vld [vmem:[#allocation4 + $0x30] sm:$0xf]  ;;  %v4168_v24 = vld [vmem:[#allocation4 + $0x1c8] sm:$0xf] }
  0x70   :  { %1178 = vmatpush.bf16.msrb.mxu0 %v4025_v37  ;;  %491 = vmatmul.bf16.vlgmr.msra.gmra.mxu1 %v267_v41  ;;  %v5564_v25 = vld [vmem:[#allocation4 + $0x1d0] sm:$0xf0]  ;;  %v4073_v26 = vor.u32 %v5540_v19, %v4072_v18  ;;  %v5513_v27 = vld [vmem:[#allocation4 + $0x38] sm:$0xf0]  ;;  %v4264_v28 = vld [vmem:[#allocation4 + $0x288] sm:$0xf] }
  0x71   :  { %1191 = vmatpush.bf16.msrb.mxu1 %v4121_v42  ;;  %504 = vmatmul.bf16.vlgmr.msra.gmra.mxu2 %v267_v41  ;;  %v5588_v29 = vld [vmem:[#allocation4 + $0x290] sm:$0xf0]  ;;  %v4060_v30 = vld [vmem:[#allocation4 + $0xf0] sm:$0xf]  ;;  %v5537_v31 = vld [vmem:[#allocation4 + $0xf8] sm:$0xf0]  ;;  %v4169_v32 = vor.u32 %v5564_v25, %v4168_v24  ;;  %v3965_v33 = vor.u32 %v5513_v27, %v3964_v23 }
  0x72   :  { %517 = vmatmul.bf16.vlgmr.msra.gmra.mxu3 %v267_v41  ;;  %1204 = vmatpush.bf16.msrb.mxu2 %v4217_v48  ;;  %v4265_v34 = vor.u32 %v5588_v29, %v4264_v28  ;;  %v3952_v35 = vld [vmem:[#allocation4 + $0x18] sm:$0xf]  ;;  %v4156_v36 = vld [vmem:[#allocation4 + $0x1b0] sm:$0xf]  ;;  %v5561_v37 = vld [vmem:[#allocation4 + $0x1b8] sm:$0xf0]  ;;  %v4061_v38 = vor.u32 %v5537_v31, %v4060_v30 }
  0x73   :  { %1217 = vmatpush.bf16.msrb.mxu3 %v4313_v50  ;;  %v5510_v39 = vld [vmem:[#allocation4 + $0x20] sm:$0xf0]  ;;  %v4252_v40 = vld [vmem:[#allocation4 + $0x270] sm:$0xf]  ;;  %v5585_v41 = vld [vmem:[#allocation4 + $0x278] sm:$0xf0]  ;;  %v4157_v44 = vor.u32 %v5561_v37, %v4156_v36 }
  0x74   :  { %1179 = vmatpush.bf16.msrb.mxu0 %v4013_v49  ;;  %v4048_v42 = vld [vmem:[#allocation4 + $0xd8] sm:$0xf]  ;;  %v5534_v43 = vld [vmem:[#allocation4 + $0xe0] sm:$0xf0]  ;;  %v3940_v45 = vld [vmem:[#allocation4] sm:$0xf]  ;;  %v3953_v47 = vor.u32 %v5510_v39, %v3952_v35  ;;  %v4253_v48 = vor.u32 %v5585_v41, %v4252_v40 }
  0x75   :  { %1192 = vmatpush.bf16.msrb.mxu1 %v4109_v54  ;;  %v5507_v46 = vld [vmem:[#allocation4 + $0x8] sm:$0xf0]  ;;  %v4036_v49 = vld [vmem:[#allocation4 + $0xc0] sm:$0xf]  ;;  %v4144_v52 = vld [vmem:[#allocation4 + $0x198] sm:$0xf]  ;;  %v4049_v54 = vor.u32 %v5534_v43, %v4048_v42 }
  0x76   :  { %1205 = vmatpush.bf16.msrb.mxu2 %v4205_v60  ;;  %v5531_v50 = vld [vmem:[#allocation4 + $0xc8] sm:$0xf0]  ;;  %v5558_v53 = vld [vmem:[#allocation4 + $0x1a0] sm:$0xf0]  ;;  %v4026_v55 = vld [vmem:[#allocation4 + $0xb4] sm:$0xf0]  ;;  %v3941_v0 = vor.u32 %v5507_v46, %v3940_v45 }
  0x77   :  { %1218 = vmatpush.bf16.msrb.mxu3 %v4301_v62  ;;  %v5527_v51 = vld [vmem:[#allocation4 + $0xac] sm:$0xf]  ;;  %v4240_v56 = vld [vmem:[#allocation4 + $0x258] sm:$0xf]  ;;  %v5582_v57 = vld [vmem:[#allocation4 + $0x260] sm:$0xf0]  ;;  %v4037_v4 = vor.u32 %v5531_v50, %v4036_v49 }
  0x78   :  { %1180 = vmatpush.bf16.msrb.mxu0 %v4001_v61  ;;  %v5551_v58 = vld [vmem:[#allocation4 + $0x16c] sm:$0xf]  ;;  %v4122_v59 = vld [vmem:[#allocation4 + $0x174] sm:$0xf0]  ;;  %v4132_v60 = vld [vmem:[#allocation4 + $0x180] sm:$0xf]  ;;  %v4145_v61 = vor.u32 %v5558_v53, %v4144_v52  ;;  %v4241_v1 = vor.u32 %v5582_v57, %v4240_v56  ;;  %v4029_v5 = vor.u32 %v5527_v51, %v4026_v55 }
  0x79   :  { %1193 = vmatpush.bf16.msrb.mxu1 %v4097_v2  ;;  %v5555_v62 = vld [vmem:[#allocation4 + $0x188] sm:$0xf0]  ;;  %v4228_v63 = vld [vmem:[#allocation4 + $0x240] sm:$0xf]  ;;  %v5524_v2 = vld [vmem:[#allocation4 + $0x94] sm:$0xf] }
  0x7a   :  { %1206 = vmatpush.bf16.msrb.mxu2 %v4193_v8  ;;  %v5579_v3 = vld [vmem:[#allocation4 + $0x248] sm:$0xf0]  ;;  %v4218_v7 = vld [vmem:[#allocation4 + $0x234] sm:$0xf0]  ;;  %v4125_v8 = vor.u32 %v5551_v58, %v4122_v59  ;;  %v5548_v12 = vld [vmem:[#allocation4 + $0x154] sm:$0xf] }
  0x7b   :  { %1219 = vmatpush.bf16.msrb.mxu3 %v4289_v10  ;;  %v5575_v6 = vld [vmem:[#allocation4 + $0x22c] sm:$0xf]  ;;  %v4314_v11 = vld [vmem:[#allocation4 + $0x2f4] sm:$0xf0]  ;;  %v4110_v13 = vld [vmem:[#allocation4 + $0x15c] sm:$0xf0]  ;;  %v4229_v15 = vor.u32 %v5579_v3, %v4228_v63 }
  0x7c   :  { %1181 = vmatpush.bf16.msrb.mxu0 %v3989_v9  ;;  %v4014_v9 = vld [vmem:[#allocation4 + $0x9c] sm:$0xf0]  ;;  %v5599_v10 = vld [vmem:[#allocation4 + $0x2ec] sm:$0xf]  ;;  %v4221_v16 = vor.u32 %v5575_v6, %v4218_v7  ;;  %v5521_v19 = vld [vmem:[#allocation4 + $0x7c] sm:$0xf] }
  0x7d   :  { %1194 = vmatpush.bf16.msrb.mxu1 %v4085_v14  ;;  %v4133_v14 = vor.u32 %v5555_v62, %v4132_v60  ;;  %v4017_v17 = vor.u32 %v5524_v2, %v4014_v9  ;;  %v4317_v18 = vor.u32 %v5599_v10, %v4314_v11  ;;  %v4002_v23 = vld [vmem:[#allocation4 + $0x84] sm:$0xf0]  ;;  %v5596_v24 = vld [vmem:[#allocation4 + $0x2d4] sm:$0xf]  ;;  %v4302_v25 = vld [vmem:[#allocation4 + $0x2dc] sm:$0xf0] }
  0x7e   :  { %1207 = vmatpush.bf16.msrb.mxu2 %v4181_v20  ;;  %v5572_v20 = vld [vmem:[#allocation4 + $0x214] sm:$0xf]  ;;  %v4098_v27 = vld [vmem:[#allocation4 + $0x144] sm:$0xf0]  ;;  %v4005_v29 = vor.u32 %v5521_v19, %v4002_v23  ;;  %v4305_v30 = vor.u32 %v5596_v24, %v4302_v25  ;;  %v5518_v31 = vld [vmem:[#allocation4 + $0x64] sm:$0xf] }
  0x7f   :  { %1220 = vmatpush.bf16.msrb.mxu3 %v4277_v22  ;;  %v4113_v22 = vor.u32 %v5548_v12, %v4110_v13  ;;  %v3990_v35 = vld [vmem:[#allocation4 + $0x6c] sm:$0xf0]  ;;  %v5593_v36 = vld [vmem:[#allocation4 + $0x2bc] sm:$0xf]  ;;  %v4290_v37 = vld [vmem:[#allocation4 + $0x2c4] sm:$0xf0] }
  0x80   :  { %1182 = vmatpush.bf16.msrb.mxu0 %v3977_v21  ;;  %v4206_v21 = vld [vmem:[#allocation4 + $0x21c] sm:$0xf0]  ;;  %v4086_v39 = vld [vmem:[#allocation4 + $0x12c] sm:$0xf0]  ;;  %v3993_v41 = vor.u32 %v5518_v31, %v3990_v35  ;;  %v4293_v42 = vor.u32 %v5593_v36, %v4290_v37  ;;  %v5515_v43 = vld [vmem:[#allocation4 + $0x4c] sm:$0xf] }
  0x81   :  { %1195 = vmatpush.bf16.msrb.mxu1 %v4073_v26  ;;  %v5545_v26 = vld [vmem:[#allocation4 + $0x13c] sm:$0xf]  ;;  %v4209_v28 = vor.u32 %v5572_v20, %v4206_v21  ;;  %v4182_v45 = vld [vmem:[#allocation4 + $0x1ec] sm:$0xf0]  ;;  %v5539_v50 = vld [vmem:[#allocation4 + $0x10c] sm:$0xf] }
  0x82   :  { %1208 = vmatpush.bf16.msrb.mxu2 %v4169_v32  ;;  %v5569_v32 = vld [vmem:[#allocation4 + $0x1fc] sm:$0xf]  ;;  %v4278_v49 = vld [vmem:[#allocation4 + $0x2ac] sm:$0xf0]  ;;  %v4074_v51 = vld [vmem:[#allocation4 + $0x114] sm:$0xf0] }
  0x83   :  { %1221 = vmatpush.bf16.msrb.mxu3 %v4265_v34  ;;  %v4101_v34 = vor.u32 %v5545_v26, %v4098_v27  ;;  %v4077_v55 = vor.u32 %v5539_v50, %v4074_v51  ;;  %v5512_v56 = vld [vmem:[#allocation4 + $0x34] sm:$0xf]  ;;  %v3966_v57 = vld [vmem:[#allocation4 + $0x3c] sm:$0xf0]  ;;  %v5563_v62 = vld [vmem:[#allocation4 + $0x1cc] sm:$0xf] }
  0x84   :  { %1183 = vmatpush.bf16.msrb.mxu0 %v3965_v33  ;;  %v4194_v33 = vld [vmem:[#allocation4 + $0x204] sm:$0xf0]  ;;  %v5536_v58 = vld [vmem:[#allocation4 + $0xf4] sm:$0xf]  ;;  %v4062_v59 = vld [vmem:[#allocation4 + $0xfc] sm:$0xf0]  ;;  %v3969_v60 = vor.u32 %v5512_v56, %v3966_v57 }
  0x85   :  { %1196 = vmatpush.bf16.msrb.mxu1 %v4061_v38  ;;  %v5542_v38 = vld [vmem:[#allocation4 + $0x124] sm:$0xf]  ;;  %v4197_v40 = vor.u32 %v5569_v32, %v4194_v33  ;;  %v4170_v63 = vld [vmem:[#allocation4 + $0x1d4] sm:$0xf0]  ;;  %v5533_v6 = vld [vmem:[#allocation4 + $0xdc] sm:$0xf] }
  0x86   :  { %1209 = vmatpush.bf16.msrb.mxu2 %v4157_v44  ;;  %v5566_v44 = vld [vmem:[#allocation4 + $0x1e4] sm:$0xf]  ;;  %v4089_v46 = vor.u32 %v5542_v38, %v4086_v39  ;;  %v4266_v2 = vld [vmem:[#allocation4 + $0x294] sm:$0xf0]  ;;  %v5560_v10 = vld [vmem:[#allocation4 + $0x1b4] sm:$0xf] }
  0x87   :  { %1222 = vmatpush.bf16.msrb.mxu3 %v4253_v48  ;;  %v5590_v48 = vld [vmem:[#allocation4 + $0x2a4] sm:$0xf]  ;;  %v4185_v52 = vor.u32 %v5566_v44, %v4182_v45  ;;  %v4158_v11 = vld [vmem:[#allocation4 + $0x1bc] sm:$0xf0]  ;;  %v5584_v12 = vld [vmem:[#allocation4 + $0x274] sm:$0xf] }
  0x88   :  { %1184 = vmatpush.bf16.msrb.mxu0 %v3953_v47  ;;  %v3978_v47 = vld [vmem:[#allocation4 + $0x54] sm:$0xf0]  ;;  %v4161_v13 = vor.u32 %v5560_v10, %v4158_v11  ;;  %v5530_v19 = vld [vmem:[#allocation4 + $0xc4] sm:$0xf]  ;;  %v4038_v20 = vld [vmem:[#allocation4 + $0xcc] sm:$0xf0] }
  0x89   :  { %1197 = vmatpush.bf16.msrb.mxu1 %v4049_v54  ;;  %v3981_v53 = vor.u32 %v5515_v43, %v3978_v47  ;;  %v4281_v54 = vor.u32 %v5590_v48, %v4278_v49  ;;  %v4041_v21 = vor.u32 %v5530_v19, %v4038_v20  ;;  %v4146_v23 = vld [vmem:[#allocation4 + $0x1a4] sm:$0xf0]  ;;  %v5581_v25 = vld [vmem:[#allocation4 + $0x25c] sm:$0xf]  ;;  %v5578_v31 = vld [vmem:[#allocation4 + $0x244] sm:$0xf] }
  0x8a   :  { %1210 = vmatpush.bf16.msrb.mxu2 %v4145_v61  ;;  %v4065_v61 = vor.u32 %v5536_v58, %v4062_v59  ;;  %v4242_v26 = vld [vmem:[#allocation4 + $0x264] sm:$0xf0]  ;;  %v4230_v32 = vld [vmem:[#allocation4 + $0x24c] sm:$0xf0]  ;;  %v5553_v44 = vld [vmem:[#allocation4 + $0x178] sm:$0xf0] }
  0x8b   :  { %1223 = vmatpush.bf16.msrb.mxu3 %v4241_v1  ;;  %v4173_v1 = vor.u32 %v5563_v62, %v4170_v63  ;;  %v4245_v27 = vor.u32 %v5581_v25, %v4242_v26  ;;  %v4233_v33 = vor.u32 %v5578_v31, %v4230_v32  ;;  %v4128_v43 = vld [vmem:[#allocation4 + $0x170] sm:$0xf]  ;;  %v5550_v56 = vld [vmem:[#allocation4 + $0x160] sm:$0xf0]  ;;  %v5577_v63 = vld [vmem:[#allocation4 + $0x238] sm:$0xf0] }
  0x8c   :  { %1185 = vmatpush.bf16.msrb.mxu0 %v3941_v0  ;;  %v5587_v0 = vld [vmem:[#allocation4 + $0x28c] sm:$0xf]  ;;  %v4129_v51 = vor.u32 %v5553_v44, %v4128_v43  ;;  %v4224_v62 = vld [vmem:[#allocation4 + $0x230] sm:$0xf]  ;;  %v5598_v20 = vld [vmem:[#allocation4 + $0x2e0] sm:$0xf0] }
  0x8d   :  { %1198 = vmatpush.bf16.msrb.mxu1 %v4037_v4  ;;  %v4269_v3 = vor.u32 %v5587_v0, %v4266_v2  ;;  %v5509_v4 = vld [vmem:[#allocation4 + $0x1c] sm:$0xf]  ;;  %v4320_v0 = vld [vmem:[#allocation4 + $0x2f0] sm:$0xf]  ;;  %v4225_v11 = vor.u32 %v5577_v63, %v4224_v62  ;;  %v5571_v31 = vld [vmem:[#allocation4 + $0x208] sm:$0xf0] }
  0x8e   :  { %1211 = vmatpush.bf16.msrb.mxu2 %v4133_v14  ;;  %v4254_v14 = vld [vmem:[#allocation4 + $0x27c] sm:$0xf0]  ;;  %v5511_v62 = vld [vmem:[#allocation4 + $0x28] sm:$0xf0]  ;;  %s6613_s6 = sld [smem:[#allocation33_spill]] }
  0x8f   :  { %1224 = vmatpush.bf16.msrb.mxu3 %v4229_v15  ;;  %v4257_v15 = vor.u32 %v5584_v12, %v4254_v14  ;;  %v4056_v63 = vld [vmem:[#allocation4 + $0xe0] sm:$0xf]  ;;  %s6614_s10 = sld [smem:[#allocation35_spill]] }
  0x90   :  { %1230 = vmatpush.bf16.msra.mxu0 %v4029_v5  ;;  %v3954_v5 = vld [vmem:[#allocation4 + $0x24] sm:$0xf0]  ;;  %s6615_s16 = sld [smem:[#allocation37_spill]] }
  0x91   :  { %1243 = vmatpush.bf16.msra.mxu1 %v4125_v8  ;;  %v3957_v7 = vor.u32 %v5509_v4, %v3954_v5  ;;  %v4050_v8 = vld [vmem:[#allocation4 + $0xe4] sm:$0xf0]  ;;  %v5601_v4 = vld [vmem:[#allocation4 + $0x2f8] sm:$0xf0]  ;;  %v4008_v5 = vld [vmem:[#allocation4 + $0x80] sm:$0xf] }
  0x92   :  { %1256 = vmatpush.bf16.msra.mxu2 %v4221_v16  ;;  %v4053_v9 = vor.u32 %v5533_v6, %v4050_v8  ;;  %v5506_v16 = vld [vmem:[#allocation4 + $0x4] sm:$0xf]  ;;  %v5523_v6 = vld [vmem:[#allocation4 + $0x88] sm:$0xf0]  ;;  %v4104_v8 = vld [vmem:[#allocation4 + $0x140] sm:$0xf] }
  0x93   :  { %1269 = vmatpush.bf16.msra.mxu3 %v4317_v18  ;;  %v4009_v14 = vor.u32 %v5523_v6, %v4008_v5  ;;  %v4260_v5 = vld [vmem:[#allocation4 + $0x278] sm:$0xf]  ;;  %s6616_s29 = sld [smem:[#allocation39_spill]] }
  0x94   :  { %1231 = vmatpush.bf16.msra.mxu0 %v4017_v17  ;;  %v3942_v17 = vld [vmem:[#allocation4 + $0xc] sm:$0xf0]  ;;  %s6617_s12 = sld [smem:[#allocation29_spill]] }
  0x95   :  { %1244 = vmatpush.bf16.msra.mxu1 %v4113_v22  ;;  %v3945_v18 = vor.u32 %v5506_v16, %v3942_v17  ;;  %v5557_v22 = vld [vmem:[#allocation4 + $0x19c] sm:$0xf]  ;;  %v5574_v16 = vld [vmem:[#allocation4 + $0x220] sm:$0xf0]  ;;  %v4308_v17 = vld [vmem:[#allocation4 + $0x2d8] sm:$0xf] }
  0x96   :  { %1257 = vmatpush.bf16.msra.mxu2 %v4209_v28  ;;  %v4149_v24 = vor.u32 %v5557_v22, %v4146_v23  ;;  %v5554_v28 = vld [vmem:[#allocation4 + $0x184] sm:$0xf]  ;;  %v5520_v22 = vld [vmem:[#allocation4 + $0x70] sm:$0xf0]  ;;  %v4092_v23 = vld [vmem:[#allocation4 + $0x128] sm:$0xf] }
  0x97   :  { %1270 = vmatpush.bf16.msra.mxu3 %v4305_v30 }
  0x98   :  { %1232 = vmatpush.bf16.msra.mxu0 %v4005_v29  ;;  %v4134_v29 = vld [vmem:[#allocation4 + $0x18c] sm:$0xf0] }
  0x99   :  { %1245 = vmatpush.bf16.msra.mxu1 %v4101_v34  ;;  %v4137_v30 = vor.u32 %v5554_v28, %v4134_v29  ;;  %v300_v34 = vld [vmem:[%s6612_s4] sm:$0xf]  ;;  %v4309_v28 = vor.u32 %v5598_v20, %v4308_v17  ;;  %v4444_v17 = vld [vmem:[#allocation6 + $0xf0] sm:$0xf] }
  0x9a   :  { %1258 = vmatpush.bf16.msra.mxu2 %v4197_v40  ;;  %v302_v35 = vperm.slane %v300_v34, 0  ;;  %v303_v36 = vperm.slane %v300_v34, 1  ;;  %v4032_v40 = vld [vmem:[#allocation4 + $0xb0] sm:$0xf]  ;;  %v304_v47 = vperm.slane %v300_v34, 2  ;;  %v305_v50 = vperm.slane %v300_v34, 3 }
  0x9b   :  { %1271 = vmatpush.bf16.msra.mxu3 %v4293_v42  ;;  %v5595_v34 = vld [vmem:[#allocation4 + $0x2c8] sm:$0xf0] }
  0x9c   :  { %1233 = vmatpush.bf16.msra.mxu0 %v3993_v41  ;;  %v5529_v41 = vld [vmem:[#allocation4 + $0xb8] sm:$0xf0] }
  0x9d   :  { %1246 = vmatpush.bf16.msra.mxu1 %v4089_v46  ;;  %v4033_v48 = vor.u32 %v5529_v41, %v4032_v40  ;;  %v4188_v41 = vld [vmem:[#allocation4 + $0x1e8] sm:$0xf] }
  0x9e   :  { %1259 = vmatpush.bf16.msra.mxu2 %v4185_v52  ;;  %v4020_v52 = vld [vmem:[#allocation4 + $0x98] sm:$0xf] }
  0x9f   :  { %1272 = vmatpush.bf16.msra.mxu3 %v4281_v54 }
  0xa0   :  { %1234 = vmatpush.bf16.msra.mxu0 %v3981_v53  ;;  %v5526_v53 = vld [vmem:[#allocation4 + $0xa0] sm:$0xf0] }
  0xa1   :  { %1247 = vmatpush.bf16.msra.mxu1 %v4077_v55  ;;  %v4116_v55 = vld [vmem:[#allocation4 + $0x158] sm:$0xf] }
  0xa2   :  { %1260 = vmatpush.bf16.msra.mxu2 %v4173_v1 }
  0xa3   :  { %1273 = vmatpush.bf16.msra.mxu3 %v4269_v3  ;;  %v4117_v3 = vor.u32 %v5550_v56, %v4116_v55  ;;  %v4176_v55 = vld [vmem:[#allocation4 + $0x1d0] sm:$0xf]  ;;  %v5565_v56 = vld [vmem:[#allocation4 + $0x1d8] sm:$0xf0] }
  0xa4   :  { %1235 = vmatpush.bf16.msra.mxu0 %v3969_v60 }
  0xa5   :  { %1248 = vmatpush.bf16.msra.mxu1 %v4065_v61  ;;  %v4021_v61 = vor.u32 %v5526_v53, %v4020_v52 }
  0xa6   :  { %1261 = vmatpush.bf16.msra.mxu2 %v4161_v13  ;;  %v4321_v13 = vor.u32 %v5601_v4, %v4320_v0  ;;  %v5535_v0 = vld [vmem:[#allocation4 + $0xe8] sm:$0xf0]  ;;  %v5562_v4 = vld [vmem:[#allocation4 + $0x1c0] sm:$0xf0] }
  0xa7   :  { %1274 = vmatpush.bf16.msra.mxu3 %v4257_v15  ;;  %v4212_v15 = vld [vmem:[#allocation4 + $0x218] sm:$0xf] }
  0xa8   :  { %1236 = vmatpush.bf16.msra.mxu0 %v3957_v7  ;;  %v4213_v26 = vor.u32 %v5574_v16, %v4212_v15  ;;  %v5617_v16 = vld [vmem:[#allocation6 + $0x74] sm:$0xf0] }
  0xa9   :  { %1249 = vmatpush.bf16.msra.mxu1 %v4053_v9  ;;  %v5547_v9 = vld [vmem:[#allocation4 + $0x148] sm:$0xf0] }
  0xaa   :  { %1262 = vmatpush.bf16.msra.mxu2 %v4149_v24  ;;  %v4105_v19 = vor.u32 %v5547_v9, %v4104_v8  ;;  %v5544_v24 = vld [vmem:[#allocation4 + $0x130] sm:$0xf0]  ;;  %v5586_v8 = vld [vmem:[#allocation4 + $0x280] sm:$0xf0]  ;;  %v3948_v9 = vld [vmem:[#allocation4 + $0x8] sm:$0xf] }
  0xab   :  { %1275 = vmatpush.bf16.msra.mxu3 %v4245_v27  ;;  %v4093_v32 = vor.u32 %v5544_v24, %v4092_v23  ;;  %v4261_v20 = vor.u32 %v5586_v8, %v4260_v5  ;;  %v4358_v5 = vld [vmem:[#allocation6 + $0x48] sm:$0xf0]  ;;  %v5603_v8 = vld [vmem:[#allocation6 + $0x4] sm:$0xf0] }
  0xac   :  { %1237 = vmatpush.bf16.msra.mxu0 %v3945_v18 }
  0xad   :  { %1250 = vmatpush.bf16.msra.mxu1 %v4041_v21  ;;  %v3996_v21 = vld [vmem:[#allocation4 + $0x68] sm:$0xf] }
  0xae   :  { %1263 = vmatpush.bf16.msra.mxu2 %v4137_v30  ;;  %v3997_v29 = vor.u32 %v5520_v22, %v3996_v21  ;;  %v4200_v30 = vld [vmem:[#allocation4 + $0x200] sm:$0xf]  ;;  %v5559_v22 = vld [vmem:[#allocation4 + $0x1a8] sm:$0xf0] }
  0xaf   :  { %1276 = vmatpush.bf16.msra.mxu3 %v4233_v33  ;;  %v4296_v33 = vld [vmem:[#allocation4 + $0x2c0] sm:$0xf] }
  0xb0   :  { %v4297_v40 = vor.u32 %v5595_v34, %v4296_v33  ;;  %v4152_v21 = vld [vmem:[#allocation4 + $0x1a0] sm:$0xf]  ;;  %v5631_v33 = vld [vmem:[#allocation6 + $0xe4] sm:$0xf0] }
  0xec   :  { %v479_v37 = vpop.f32.mrf.mxu0 }
  0xed   :  { %v480_v38 = vadd.f32 %v479_v37, %v302_v35  ;;  %v492_v39 = vpop.f32.mrf.mxu1  ;;  %v3984_v35 = vld [vmem:[#allocation4 + $0x50] sm:$0xf] }
  0xee   :  { %v493_v42 = vadd.f32 %v492_v39, %v303_v36  ;;  %v5517_v36 = vld [vmem:[#allocation4 + $0x58] sm:$0xf0]  ;;  %v4080_v37 = vld [vmem:[#allocation4 + $0x110] sm:$0xf]  ;;  %v4201_v39 = vor.u32 %v5571_v31, %v4200_v30  ;;  %v4153_v30 = vor.u32 %v5559_v22, %v4152_v21  ;;  %v5615_v31 = vld [vmem:[#allocation6 + $0x64] sm:$0xf0] }
  0xef   :  { %v522_v45 = vmax.f32 %v480_v38, 0.0  ;;  %v5541_v38 = vld [vmem:[#allocation4 + $0x118] sm:$0xf0]  ;;  %v3985_v43 = vor.u32 %v5517_v36, %v3984_v35  ;;  %v4140_v35 = vld [vmem:[#allocation4 + $0x188] sm:$0xf] }
  0xf0   :  { %v523_v46 = vmax.f32 %v493_v42, 0.0  ;;  %v5568_v42 = vld [vmem:[#allocation4 + $0x1f0] sm:$0xf0]  ;;  %v4081_v44 = vor.u32 %v5541_v38, %v4080_v37  ;;  %v4236_v37 = vld [vmem:[#allocation4 + $0x248] sm:$0xf] }
  0xf1   :  { %v6453_v49 = vpack.c.bf16 %v522_v45, %v522_v45  ;;  %v4284_v45 = vld [vmem:[#allocation4 + $0x2a8] sm:$0xf]  ;;  %v4189_v52 = vor.u32 %v5568_v42, %v4188_v41  ;;  %v5556_v36 = vld [vmem:[#allocation4 + $0x190] sm:$0xf0]  ;;  %v4382_v41 = vld [vmem:[#allocation6 + $0x78] sm:$0xf0] }
  0xf2   :  { %v6455_v54 = vpack.c.bf16 %v523_v46, %v523_v46  ;;  %v5592_v46 = vld [vmem:[#allocation4 + $0x2b0] sm:$0xf0]  ;;  %v4412_v21 = vld [vmem:[#allocation6 + $0xb0] sm:$0xf]  ;;  %v5625_v22 = vld [vmem:[#allocation6 + $0xb4] sm:$0xf0] }
  0xf3   :  { %1186 = vmatmul.bf16.vlgmr.msrb.gmra.mxu0 %v6453_v49  ;;  %v4285_v53 = vor.u32 %v5592_v46, %v4284_v45  ;;  %v5580_v38 = vld [vmem:[#allocation4 + $0x250] sm:$0xf0]  ;;  %v5613_v45 = vld [vmem:[#allocation6 + $0x54] sm:$0xf0] }
  0xf4   :  { %v505_v57 = vpop.f32.mrf.mxu2  ;;  %1199 = vmatmul.bf16.vlgmr.msrb.gmra.mxu1 %v6455_v54  ;;  %v481_v60 = vpop.f32.mrf.mxu0  ;;  %1282 = vmatpush.bf16.msrb.mxu0 %v4033_v48  ;;  %v5514_v48 = vld [vmem:[#allocation4 + $0x40] sm:$0xf0]  ;;  %v4237_v46 = vor.u32 %v5580_v38, %v4236_v37  ;;  %v4430_v37 = vld [vmem:[#allocation6 + $0xd8] sm:$0xf0] }
  0xf5   :  { %v506_v58 = vadd.f32 %v505_v57, %v304_v47  ;;  %v518_v59 = vpop.f32.mrf.mxu3  ;;  %1295 = vmatpush.bf16.msrb.mxu1 %v4129_v51  ;;  %v494_v2 = vpop.f32.mrf.mxu1  ;;  %v3972_v47 = vld [vmem:[#allocation4 + $0x38] sm:$0xf]  ;;  %v5538_v51 = vld [vmem:[#allocation4 + $0x100] sm:$0xf0]  ;;  %v5589_v60 = vld [vmem:[#allocation4 + $0x298] sm:$0xf0] }
  0xf6   :  { %v519_v1 = vadd.f32 %v518_v59, %v305_v50  ;;  %v4068_v50 = vld [vmem:[#allocation4 + $0xf8] sm:$0xf]  ;;  %v3973_v57 = vor.u32 %v5514_v48, %v3972_v47  ;;  %v4272_v59 = vld [vmem:[#allocation4 + $0x290] sm:$0xf] }
  0xf7   :  { %v524_v7 = vmax.f32 %v506_v58, 0.0  ;;  %v4069_v58 = vor.u32 %v5538_v51, %v4068_v50  ;;  %v4273_v2 = vor.u32 %v5589_v60, %v4272_v59  ;;  %v5614_v50 = vld [vmem:[#allocation6 + $0x64] sm:$0xf]  ;;  %v4374_v51 = vld [vmem:[#allocation6 + $0x68] sm:$0xf0] }
  0xf8   :  { %v525_v10 = vmax.f32 %v519_v1, 0.0  ;;  %1283 = vmatpush.bf16.msrb.mxu0 %v4021_v61  ;;  %v3960_v61 = vld [vmem:[#allocation4 + $0x20] sm:$0xf]  ;;  %v4177_v1 = vor.u32 %v5565_v56, %v4176_v55  ;;  %v4377_v55 = vor.u32 %v5614_v50, %v4374_v51  ;;  %v5619_v50 = vld [vmem:[#allocation6 + $0x84] sm:$0xf0] }
  0xf9   :  { %v6459_v12 = vpack.c.bf16 %v524_v7, %v524_v7  ;;  %1296 = vmatpush.bf16.msrb.mxu1 %v4117_v3  ;;  %v4164_v3 = vld [vmem:[#allocation4 + $0x1b8] sm:$0xf]  ;;  %v3961_v6 = vor.u32 %v5511_v62, %v3960_v61  ;;  %v4057_v7 = vor.u32 %v5535_v0, %v4056_v63  ;;  %v4340_v61 = vld [vmem:[#allocation6 + $0x20] sm:$0xf]  ;;  %v5607_v62 = vld [vmem:[#allocation6 + $0x24] sm:$0xf0] }
  0xfa   :  { %v6461_v18 = vpack.c.bf16 %v525_v10, %v525_v10  ;;  %v5508_v10 = vld [vmem:[#allocation4 + $0x10] sm:$0xf0]  ;;  %v4165_v15 = vor.u32 %v5562_v4, %v4164_v3  ;;  %v4341_v63 = vor.u32 %v5607_v62, %v4340_v61  ;;  %v4332_v0 = vld [vmem:[#allocation6 + $0x10] sm:$0xf]  ;;  %v5629_v3 = vld [vmem:[#allocation6 + $0xd4] sm:$0xf0] }
  0xfb   :  { %1212 = vmatmul.bf16.vlgmr.msrb.gmra.mxu2 %v6459_v12  ;;  %v3949_v23 = vor.u32 %v5508_v10, %v3948_v9  ;;  %v5610_v4 = vld [vmem:[#allocation6 + $0x44] sm:$0xf]  ;;  %v4420_v9 = vld [vmem:[#allocation6 + $0xc0] sm:$0xf]  ;;  %v5647_v61 = vld [vmem:[#allocation6 + $0x164] sm:$0xf0] }
  0xfc   :  { %1225 = vmatmul.bf16.vlgmr.msrb.gmra.mxu3 %v6461_v18  ;;  %v507_v25 = vpop.f32.mrf.mxu2  ;;  %1308 = vmatpush.bf16.msrb.mxu2 %v4225_v11  ;;  %v4044_v11 = vld [vmem:[#allocation4 + $0xc8] sm:$0xf]  ;;  %v5622_v62 = vld [vmem:[#allocation6 + $0xa4] sm:$0xf] }
  0xfd   :  { %v520_v27 = vpop.f32.mrf.mxu3  ;;  %1321 = vmatpush.bf16.msrb.mxu3 %v4321_v13  ;;  %1284 = vmatpush.bf16.msrb.mxu0 %v4009_v14  ;;  %v5532_v13 = vld [vmem:[#allocation4 + $0xd0] sm:$0xf0]  ;;  %v4380_v14 = vld [vmem:[#allocation6 + $0x70] sm:$0xf]  ;;  %v4248_v25 = vld [vmem:[#allocation4 + $0x260] sm:$0xf] }
  0xfe   :  { %1297 = vmatpush.bf16.msrb.mxu1 %v4105_v19  ;;  %v5633_v19 = vld [vmem:[#allocation6 + $0xf4] sm:$0xf0]  ;;  %v4045_v24 = vor.u32 %v5532_v13, %v4044_v11  ;;  %v4381_v27 = vor.u32 %v5617_v16, %v4380_v14  ;;  %v5627_v11 = vld [vmem:[#allocation6 + $0xc4] sm:$0xf0]  ;;  %v5608_v13 = vld [vmem:[#allocation6 + $0x34] sm:$0xf] }
  0xff   :  { %v4350_v14 = vld [vmem:[#allocation6 + $0x38] sm:$0xf0] }
 0x100   :  { %1309 = vmatpush.bf16.msrb.mxu2 %v4213_v26  ;;  %v5583_v26 = vld [vmem:[#allocation4 + $0x268] sm:$0xf0]  ;;  %v4353_v16 = vor.u32 %v5608_v13, %v4350_v14 }
 0x101   :  { %1322 = vmatpush.bf16.msrb.mxu3 %v4309_v28  ;;  %1285 = vmatpush.bf16.msrb.mxu0 %v3997_v29  ;;  %v4372_v28 = vld [vmem:[#allocation6 + $0x60] sm:$0xf]  ;;  %v4445_v29 = vor.u32 %v5633_v19, %v4444_v17  ;;  %v4249_v34 = vor.u32 %v5583_v26, %v4248_v25  ;;  %v5632_v17 = vld [vmem:[#allocation6 + $0xf4] sm:$0xf]  ;;  %v4446_v19 = vld [vmem:[#allocation6 + $0xf8] sm:$0xf0] }
 0x102   :  { %1298 = vmatpush.bf16.msrb.mxu1 %v4093_v32  ;;  %v4436_v32 = vld [vmem:[#allocation6 + $0xe0] sm:$0xf]  ;;  %v4342_v25 = vld [vmem:[#allocation6 + $0x28] sm:$0xf0]  ;;  %v5630_v26 = vld [vmem:[#allocation6 + $0xe4] sm:$0xf] }
 0x103   :  { %1238 = vmatmul.bf16.vlgmr.msra.gmra.mxu0 %v6453_v49  ;;  %v4437_v42 = vor.u32 %v5631_v33, %v4436_v32  ;;  %v5604_v33 = vld [vmem:[#allocation6 + $0x14] sm:$0xf] }
 0x104   :  { %1310 = vmatpush.bf16.msrb.mxu2 %v4201_v39  ;;  %1251 = vmatmul.bf16.vlgmr.msra.gmra.mxu1 %v6455_v54  ;;  %v4373_v39 = vor.u32 %v5615_v31, %v4372_v28  ;;  %v4438_v28 = vld [vmem:[#allocation6 + $0xe8] sm:$0xf0]  ;;  %v5623_v31 = vld [vmem:[#allocation6 + $0xa4] sm:$0xf0] }
 0x105   :  { %1323 = vmatpush.bf16.msrb.mxu3 %v4297_v40  ;;  %1286 = vmatpush.bf16.msrb.mxu0 %v3985_v43  ;;  %v5616_v40 = vld [vmem:[#allocation6 + $0x74] sm:$0xf]  ;;  %v4141_v43 = vor.u32 %v5556_v36, %v4140_v35 }
 0x106   :  { %1299 = vmatpush.bf16.msrb.mxu1 %v4081_v44  ;;  %v4364_v44 = vld [vmem:[#allocation6 + $0x50] sm:$0xf]  ;;  %v4385_v47 = vor.u32 %v5616_v40, %v4382_v41  ;;  %v5628_v35 = vld [vmem:[#allocation6 + $0xd4] sm:$0xf]  ;;  %v5621_v40 = vld [vmem:[#allocation6 + $0x94] sm:$0xf0] }
 0x107   :  { %v4365_v48 = vor.u32 %v5613_v45, %v4364_v44  ;;  %v4433_v38 = vor.u32 %v5628_v35, %v4430_v37  ;;  %v5626_v45 = vld [vmem:[#allocation6 + $0xc4] sm:$0xf]  ;;  %v5639_v37 = vld [vmem:[#allocation6 + $0x124] sm:$0xf0] }
 0x108   :  { %1311 = vmatpush.bf16.msrb.mxu2 %v4189_v52  ;;  %v4356_v52 = vld [vmem:[#allocation6 + $0x40] sm:$0xf] }
 0x109   :  { %1324 = vmatpush.bf16.msrb.mxu3 %v4285_v53  ;;  %1287 = vmatpush.bf16.msrb.mxu0 %v3973_v57  ;;  %v5611_v53 = vld [vmem:[#allocation6 + $0x44] sm:$0xf0]  ;;  %v4366_v57 = vld [vmem:[#allocation6 + $0x58] sm:$0xf0] }
 0x10a   :  { %1300 = vmatpush.bf16.msrb.mxu1 %v4069_v58  ;;  %v4357_v56 = vor.u32 %v5611_v53, %v4356_v52  ;;  %v5609_v58 = vld [vmem:[#allocation6 + $0x34] sm:$0xf0]  ;;  %v4508_v52 = vld [vmem:[#allocation6 + $0x170] sm:$0xf] }
 0x10b   :  { %1264 = vmatmul.bf16.vlgmr.msra.gmra.mxu2 %v6459_v12  ;;  %v5649_v53 = vld [vmem:[#allocation6 + $0x174] sm:$0xf0] }
 0x10c   :  { %1277 = vmatmul.bf16.vlgmr.msra.gmra.mxu3 %v6461_v18  ;;  %1312 = vmatpush.bf16.msrb.mxu2 %v4177_v1  ;;  %v4428_v1 = vld [vmem:[#allocation6 + $0xd0] sm:$0xf] }
 0x10d   :  { %1325 = vmatpush.bf16.msrb.mxu3 %v4273_v2  ;;  %1288 = vmatpush.bf16.msrb.mxu0 %v3961_v6  ;;  %v4361_v6 = vor.u32 %v5610_v4, %v4358_v5  ;;  %v6476_v4 = vld [vmem:[%s6613_s6] sm:$0x7]  ;;  %v4492_v5 = vld [vmem:[#allocation6 + $0x150] sm:$0xf] }
 0x10e   :  { %1301 = vmatpush.bf16.msrb.mxu1 %v4057_v7  ;;  %v4324_v7 = vld [vmem:[#allocation6] sm:$0xf] }
 0x10f   :  { %v4325_v10 = vor.u32 %v5603_v8, %v4324_v7  ;;  %v4398_v8 = vld [vmem:[#allocation6 + $0x98] sm:$0xf0] }
 0x110   :  { %1313 = vmatpush.bf16.msrb.mxu2 %v4165_v15  ;;  %v4421_v15 = vor.u32 %v5627_v11, %v4420_v9  ;;  %v5644_v9 = vld [vmem:[#allocation6 + $0x154] sm:$0xf] }
 0x111   :  { %1326 = vmatpush.bf16.msrb.mxu3 %v4261_v20  ;;  %1289 = vmatpush.bf16.msrb.mxu0 %v3949_v23  ;;  %v4449_v20 = vor.u32 %v5632_v17, %v4446_v19  ;;  %v4413_v23 = vor.u32 %v5625_v22, %v4412_v21  ;;  %v4484_v17 = vld [vmem:[#allocation6 + $0x140] sm:$0xf]  ;;  %v5643_v19 = vld [vmem:[#allocation6 + $0x144] sm:$0xf0]  ;;  %v5618_v21 = vld [vmem:[#allocation6 + $0x84] sm:$0xf] }
 0x112   :  { %1302 = vmatpush.bf16.msrb.mxu1 %v4045_v24  ;;  %v5606_v24 = vld [vmem:[#allocation6 + $0x24] sm:$0xf]  ;;  %v4390_v22 = vld [vmem:[#allocation6 + $0x88] sm:$0xf0] }
 0x114   :  { %1314 = vmatpush.bf16.msrb.mxu2 %v4153_v30  ;;  %1290 = vmatmul.bf16.vlgmr.msrb.gmra.mxu0 %v6453_v49  ;;  %v5612_v49 = vld [vmem:[#allocation6 + $0x54] sm:$0xf]  ;;  %v4404_v30 = vld [vmem:[#allocation6 + $0xa0] sm:$0xf] }
 0x115   :  { %1634 = vmatpush.bf16.msra.mxu0 %v4381_v27  ;;  %1327 = vmatpush.bf16.msrb.mxu3 %v4249_v34  ;;  %v4369_v59 = vor.u32 %v5612_v49, %v4366_v57  ;;  %v4345_v27 = vor.u32 %v5606_v24, %v4342_v25  ;;  %v4405_v32 = vor.u32 %v5623_v31, %v4404_v30  ;;  %v4334_v34 = vld [vmem:[#allocation6 + $0x18] sm:$0xf0]  ;;  %v5648_v57 = vld [vmem:[#allocation6 + $0x174] sm:$0xf]  ;;  %v4486_v25 = vld [vmem:[#allocation6 + $0x148] sm:$0xf0] }
 0x116   :  { %1647 = vmatpush.bf16.msra.mxu1 %v4445_v29  ;;  %v4441_v29 = vor.u32 %v5630_v26, %v4438_v28  ;;  %v4337_v36 = vor.u32 %v5604_v33, %v4334_v34  ;;  %v4414_v49 = vld [vmem:[#allocation6 + $0xb8] sm:$0xf0]  ;;  %v4393_v24 = vor.u32 %v5618_v21, %v4390_v22  ;;  %v5641_v28 = vld [vmem:[#allocation6 + $0x134] sm:$0xf0] }
 0x117   :  { %1303 = vmatmul.bf16.vlgmr.msrb.gmra.mxu1 %v6455_v54  ;;  %v4348_v54 = vld [vmem:[#allocation6 + $0x30] sm:$0xf] }
 0x118   :  { %1315 = vmatpush.bf16.msrb.mxu2 %v4141_v43  ;;  %v4349_v60 = vor.u32 %v5609_v58, %v4348_v54  ;;  %v4326_v43 = vld [vmem:[#allocation6 + $0x8] sm:$0xf0]  ;;  %v4510_v54 = vld [vmem:[#allocation6 + $0x178] sm:$0xf0] }
 0x119   :  { %1635 = vmatpush.bf16.msra.mxu0 %v4373_v39  ;;  %1328 = vmatpush.bf16.msrb.mxu3 %v4237_v46  ;;  %v4396_v39 = vld [vmem:[#allocation6 + $0x90] sm:$0xf]  ;;  %v4422_v46 = vld [vmem:[#allocation6 + $0xc8] sm:$0xf0] }
 0x11a   :  { %1648 = vmatpush.bf16.msra.mxu1 %v4437_v42  ;;  %v4397_v41 = vor.u32 %v5621_v40, %v4396_v39  ;;  %v5602_v42 = vld [vmem:[#allocation6 + $0x4] sm:$0xf] }
 0x11b   :  { %1316 = vmatmul.bf16.vlgmr.msrb.gmra.mxu2 %v6459_v12  ;;  %v5605_v12 = vld [vmem:[#allocation6 + $0x14] sm:$0xf0]  ;;  %v4329_v44 = vor.u32 %v5602_v42, %v4326_v43 }
 0x11c   :  { %1329 = vmatmul.bf16.vlgmr.msrb.gmra.mxu3 %v6461_v18  ;;  %v4333_v2 = vor.u32 %v5605_v12, %v4332_v0  ;;  %v4429_v18 = vor.u32 %v5629_v3, %v4428_v1  ;;  %v4406_v0 = vld [vmem:[#allocation6 + $0xa8] sm:$0xf0]  ;;  %v5646_v12 = vld [vmem:[#allocation6 + $0x164] sm:$0xf] }
 0x11d   :  { %1673 = vmatpush.bf16.msra.mxu3 %v4385_v47  ;;  %1636 = vmatpush.bf16.msra.mxu0 %v4365_v48  ;;  %v4425_v47 = vor.u32 %v5626_v45, %v4422_v46  ;;  %v4388_v48 = vld [vmem:[#allocation6 + $0x80] sm:$0xf]  ;;  %v4502_v1 = vld [vmem:[#allocation6 + $0x168] sm:$0xf0]  ;;  %v5637_v45 = vld [vmem:[#allocation6 + $0x114] sm:$0xf0] }
 0x11e   :  { %1649 = vmatpush.bf16.msra.mxu1 %v4429_v18  ;;  %v4389_v51 = vor.u32 %v5619_v50, %v4388_v48  ;;  %v4505_v3 = vor.u32 %v5646_v12, %v4502_v1  ;;  %v5645_v18 = vld [vmem:[#allocation6 + $0x154] sm:$0xf0]  ;;  %v5636_v46 = vld [vmem:[#allocation6 + $0x114] sm:$0xf] }
 0x11f   :  { %v4493_v7 = vor.u32 %v5645_v18, %v4492_v5 }
 0x121   :  { %1674 = vmatpush.bf16.msra.mxu3 %v4377_v55  ;;  %1637 = vmatpush.bf16.msra.mxu0 %v4357_v56  ;;  %v5624_v55 = vld [vmem:[#allocation6 + $0xb4] sm:$0xf]  ;;  %v4509_v56 = vor.u32 %v5649_v53, %v4508_v52 }
 0x122   :  { %1650 = vmatpush.bf16.msra.mxu1 %v4421_v15  ;;  %v4417_v58 = vor.u32 %v5624_v55, %v4414_v49  ;;  %v660_v15 = vperm.slane %v6476_v4, 0  ;;  %v4452_v49 = vld [vmem:[#allocation6 + $0x100] sm:$0xf] }
 0x123   :  { %1660 = vmatpush.bf16.msra.mxu2 %v4509_v56 }
 0x125   :  { %1675 = vmatpush.bf16.msra.mxu3 %v4369_v59  ;;  %1638 = vmatpush.bf16.msra.mxu0 %v4349_v60  ;;  %v4513_v59 = vor.u32 %v5648_v57, %v4510_v54  ;;  %v4500_v60 = vld [vmem:[#allocation6 + $0x160] sm:$0xf]  ;;  %v5635_v57 = vld [vmem:[#allocation6 + $0x104] sm:$0xf0]  ;;  %v5634_v54 = vld [vmem:[#allocation6 + $0x104] sm:$0xf] }
 0x126   :  { %1651 = vmatpush.bf16.msra.mxu1 %v4413_v23  ;;  %v5642_v23 = vld [vmem:[#allocation6 + $0x144] sm:$0xf] }
 0x127   :  { %v4489_v26 = vor.u32 %v5642_v23, %v4486_v25 }
 0x129   :  { %1639 = vmatpush.bf16.msra.mxu0 %v4341_v63  ;;  %1676 = vmatpush.bf16.msra.mxu3 %v4361_v6  ;;  %v4501_v63 = vor.u32 %v5647_v61, %v4500_v60  ;;  %v5620_v6 = vld [vmem:[#allocation6 + $0x94] sm:$0xf]  ;;  %v4454_v60 = vld [vmem:[#allocation6 + $0x108] sm:$0xf0] }
 0x12a   :  { %1652 = vmatpush.bf16.msra.mxu1 %v4405_v32  ;;  %v4401_v11 = vor.u32 %v5620_v6, %v4398_v8  ;;  %v4478_v32 = vld [vmem:[#allocation6 + $0x138] sm:$0xf0]  ;;  %v4457_v61 = vor.u32 %v5634_v54, %v4454_v60  ;;  %v5670_v54 = vld [vmem:[#allocation9 + $0x20] sm:$0xff] }
 0x12b   :  { %1661 = vmatpush.bf16.msra.mxu2 %v4501_v63  ;;  %v661_v63 = vperm.slane %v6476_v4, 1 }
 0x12d   :  { %1640 = vmatpush.bf16.msra.mxu0 %v4333_v2  ;;  %1677 = vmatpush.bf16.msra.mxu3 %v4353_v16  ;;  %v4409_v2 = vor.u32 %v5622_v62, %v4406_v0 }
 0x12e   :  { %1653 = vmatpush.bf16.msra.mxu1 %v4397_v41  ;;  %v4470_v41 = vld [vmem:[#allocation6 + $0x128] sm:$0xf0] }
 0x12f   :  { %1662 = vmatpush.bf16.msra.mxu2 %v4493_v7 }
 0x131   :  { %1641 = vmatpush.bf16.msra.mxu0 %v4325_v10  ;;  %1678 = vmatpush.bf16.msra.mxu3 %v4345_v27  ;;  %v4494_v10 = vld [vmem:[#allocation6 + $0x158] sm:$0xf0]  ;;  %v4476_v27 = vld [vmem:[#allocation6 + $0x130] sm:$0xf] }
 0x132   :  { %1654 = vmatpush.bf16.msra.mxu1 %v4389_v51  ;;  %v4497_v13 = vor.u32 %v5644_v9, %v4494_v10  ;;  %v4477_v31 = vor.u32 %v5641_v28, %v4476_v27  ;;  %v4462_v51 = vld [vmem:[#allocation6 + $0x118] sm:$0xf0] }
 0x133   :  { %v4465_v52 = vor.u32 %v5636_v46, %v4462_v51 }
 0x135   :  { %1686 = vmatpush.bf16.msrb.mxu0 %v4449_v20  ;;  %1679 = vmatpush.bf16.msra.mxu3 %v4337_v36  ;;  %v4485_v20 = vor.u32 %v5643_v19, %v4484_v17  ;;  %v4468_v36 = vld [vmem:[#allocation6 + $0x120] sm:$0xf] }
 0x136   :  { %1699 = vmatpush.bf16.msrb.mxu1 %v4513_v59  ;;  %v4469_v40 = vor.u32 %v5639_v37, %v4468_v36  ;;  %v4453_v59 = vor.u32 %v5635_v57, %v4452_v49  ;;  %v5661_v36 = vld [vmem:[#allocation7 + $0x58] sm:$0xff]  ;;  %v5654_v37 = vld [vmem:[#allocation7 + $0x20] sm:$0xff] }
 0x137   :  { %1663 = vmatpush.bf16.msra.mxu2 %v4485_v20 }
 0x139   :  { %1687 = vmatpush.bf16.msrb.mxu0 %v4441_v29  ;;  %1680 = vmatpush.bf16.msra.mxu3 %v4329_v44  ;;  %v5640_v29 = vld [vmem:[#allocation6 + $0x134] sm:$0xf]  ;;  %v4460_v44 = vld [vmem:[#allocation6 + $0x110] sm:$0xf] }
 0x13a   :  { %1700 = vmatpush.bf16.msrb.mxu1 %v4505_v3  ;;  %v4481_v33 = vor.u32 %v5640_v29, %v4478_v32  ;;  %v4461_v50 = vor.u32 %v5637_v45, %v4460_v44  ;;  %v5663_v32 = vld [vmem:[#allocation7 + $0x68] sm:$0xff] }
 0x13b   :  { %1664 = vmatpush.bf16.msra.mxu2 %v4477_v31  ;;  %v5657_v31 = vld [vmem:[#allocation7 + $0x38] sm:$0xff]  ;;  %v5651_v44 = vld [vmem:[#allocation7 + $0x8] sm:$0xff] }
 0x13d   :  { %1688 = vmatpush.bf16.msrb.mxu0 %v4433_v38  ;;  %v5638_v38 = vld [vmem:[#allocation6 + $0x124] sm:$0xf] }
 0x13e   :  { %1701 = vmatpush.bf16.msrb.mxu1 %v4497_v13  ;;  %v4473_v42 = vor.u32 %v5638_v38, %v4470_v41  ;;  %v5660_v38 = vld [vmem:[#allocation7 + $0x50] sm:$0xff] }
 0x13f   :  { %1665 = vmatpush.bf16.msra.mxu2 %v4469_v40  ;;  %v5659_v40 = vld [vmem:[#allocation7 + $0x48] sm:$0xff] }
 0x141   :  { %1689 = vmatpush.bf16.msrb.mxu0 %v4425_v47 }
 0x142   :  { %1702 = vmatpush.bf16.msrb.mxu1 %v4489_v26 }
 0x143   :  { %1666 = vmatpush.bf16.msra.mxu2 %v4461_v50  ;;  %v5673_v50 = vld [vmem:[#allocation9 + $0x38] sm:$0xff] }
 0x145   :  { %1690 = vmatpush.bf16.msrb.mxu0 %v4417_v58 }
 0x146   :  { %1703 = vmatpush.bf16.msrb.mxu1 %v4481_v33  ;;  %v5656_v33 = vld [vmem:[#allocation7 + $0x30] sm:$0xff] }
 0x147   :  { %1667 = vmatpush.bf16.msra.mxu2 %v4453_v59 }
 0x149   :  { %1691 = vmatpush.bf16.msrb.mxu0 %v4409_v2 }
 0x14a   :  { %1704 = vmatpush.bf16.msrb.mxu1 %v4473_v42  ;;  %v5652_v42 = vld [vmem:[#allocation7 + $0x10] sm:$0xff] }
 0x14b   :  { %1848 = vmatpush.bf16.msrb.mxu2 %v5657_v31 }
 0x14d   :  { %1692 = vmatpush.bf16.msrb.mxu0 %v4401_v11 }
 0x14e   :  { %1705 = vmatpush.bf16.msrb.mxu1 %v4465_v52 }
 0x14f   :  { %1849 = vmatpush.bf16.msrb.mxu2 %v5656_v33  ;;  %v5683_v33 = vld [vmem:[#allocation10 + $0x44] sm:$0xf0] }
 0x151   :  { %1693 = vmatpush.bf16.msrb.mxu0 %v4393_v24 }
 0x152   :  { %1706 = vmatpush.bf16.msrb.mxu1 %v4457_v61 }
 0x170   :  { %v1187_v14 = vpop.f32.mrf.mxu0 }
 0x171   :  { %v1200_v16 = vpop.f32.mrf.mxu1  ;;  %v1188_v30 = vadd.f32 %v1187_v14, %v660_v15  ;;  %v662_v14 = vperm.slane %v6476_v4, 2  ;;  %v5664_v4 = vld [vmem:[#allocation7 + $0x70] sm:$0xff] }
 0x173   :  { %v1201_v39 = vadd.f32 %v1200_v16, %v1188_v30  ;;  %v5665_v30 = vld [vmem:[#allocation7 + $0x78] sm:$0xff] }
 0x174   :  { %1861 = vmatpush.bf16.msrb.mxu3 %v5665_v30  ;;  %v4654_v30 = vld [vmem:[#allocation10 + $0x58] sm:$0xf0] }
 0x178   :  { %v1189_v34 = vpop.f32.mrf.mxu0  ;;  %1862 = vmatpush.bf16.msrb.mxu3 %v5664_v4 }
 0x179   :  { %v1202_v35 = vpop.f32.mrf.mxu1  ;;  %v5662_v34 = vld [vmem:[#allocation7 + $0x60] sm:$0xff] }
 0x17a   :  { %v5655_v35 = vld [vmem:[#allocation7 + $0x28] sm:$0xff] }
 0x17b   :  { %1850 = vmatpush.bf16.msrb.mxu2 %v5655_v35  ;;  %v4646_v35 = vld [vmem:[#allocation10 + $0x48] sm:$0xf0] }
 0x17c   :  { %1863 = vmatpush.bf16.msrb.mxu3 %v5663_v32  ;;  %v4644_v32 = vld [vmem:[#allocation10 + $0x40] sm:$0xf] }
 0x17e   :  { %v1213_v43 = vpop.f32.mrf.mxu2 }
 0x17f   :  { %v1214_v47 = vadd.f32 %v1213_v43, %v1201_v39  ;;  %v1226_v48 = vpop.f32.mrf.mxu3  ;;  %1851 = vmatpush.bf16.msrb.mxu2 %v5654_v37  ;;  %v5653_v39 = vld [vmem:[#allocation7 + $0x18] sm:$0xff]  ;;  %v5658_v43 = vld [vmem:[#allocation7 + $0x40] sm:$0xff] }
 0x180   :  { %v1239_v55 = vpop.f32.mrf.mxu0  ;;  %1864 = vmatpush.bf16.msrb.mxu3 %v5662_v34  ;;  %v5682_v34 = vld [vmem:[#allocation10 + $0x44] sm:$0xf] }
 0x181   :  { %v1227_v53 = vadd.f32 %v1226_v48, %v1214_v47  ;;  %v1252_v56 = vpop.f32.mrf.mxu1  ;;  %v1240_v1 = vadd.f32 %v1239_v55, %v661_v63  ;;  %v5650_v47 = vld [vmem:[#allocation7] sm:$0xff]  ;;  %v5671_v55 = vld [vmem:[#allocation9 + $0x28] sm:$0xff]  ;;  %v4649_v37 = vor.u32 %v5682_v34, %v4646_v35  ;;  %v4748_v35 = vld [vmem:[#allocation15 + $0x50] sm:$0xf] }
 0x183   :  { %v1334_v58 = vmax.f32 %v1227_v53, 0.0  ;;  %v1253_v5 = vadd.f32 %v1252_v56, %v1240_v1  ;;  %1852 = vmatpush.bf16.msrb.mxu2 %v5653_v39  ;;  %v5672_v53 = vld [vmem:[#allocation9 + $0x30] sm:$0xff]  ;;  %v1388_v56 = vld [vmem:[%s6614_s10] sm:$0x3]  ;;  %v5681_v39 = vld [vmem:[#allocation10 + $0x34] sm:$0xf0] }
 0x184   :  { %1865 = vmatpush.bf16.msrb.mxu3 %v5661_v36  ;;  %v1390_v60 = vperm.slane %v1388_v56, 0  ;;  %v4645_v36 = vor.u32 %v5683_v33, %v4644_v32 }
 0x185   :  { %v1337_v62 = vpack.c.bf16 %v1334_v58, %v1334_v58  ;;  %v1391_v58 = vperm.slane %v1388_v56, 1 }
 0x186   :  { %v1215_v0 = vpop.f32.mrf.mxu2 }
 0x187   :  { %v1228_v12 = vpop.f32.mrf.mxu3  ;;  %1642 = vmatmul.bf16.vlgmr.msra.gmra.mxu0 %v1337_v62  ;;  %1681 = vmatmul.bf16.vlgmr.msra.gmra.mxu3 %v1337_v62 }
 0x188   :  { %v1241_v2 = vpop.f32.mrf.mxu0  ;;  %1866 = vmatpush.bf16.msrb.mxu3 %v5660_v38  ;;  %1853 = vmatpush.bf16.msrb.mxu2 %v5652_v42  ;;  %v4636_v38 = vld [vmem:[#allocation10 + $0x30] sm:$0xf] }
 0x189   :  { %v1254_v3 = vpop.f32.mrf.mxu1  ;;  %1944 = vmatpush.bf16.msra.mxu0 %v5673_v50  ;;  %v4637_v42 = vor.u32 %v5681_v39, %v4636_v38  ;;  %v4750_v38 = vld [vmem:[#allocation15 + $0x58] sm:$0xf0] }
 0x18c   :  { %1867 = vmatpush.bf16.msrb.mxu3 %v5659_v40  ;;  %1854 = vmatpush.bf16.msrb.mxu2 %v5651_v44  ;;  %v5680_v40 = vld [vmem:[#allocation10 + $0x34] sm:$0xf]  ;;  %v4628_v44 = vld [vmem:[#allocation10 + $0x20] sm:$0xf] }
 0x18d   :  { %1945 = vmatpush.bf16.msra.mxu0 %v5672_v53 }
 0x18e   :  { %v1265_v18 = vpop.f32.mrf.mxu2 }
 0x18f   :  { %v1266_v6 = vadd.f32 %v1265_v18, %v1253_v5  ;;  %v1278_v7 = vpop.f32.mrf.mxu3 }
 0x190   :  { %1868 = vmatpush.bf16.msrb.mxu3 %v5658_v43  ;;  %1855 = vmatpush.bf16.msrb.mxu2 %v5650_v47  ;;  %v5678_v47 = vld [vmem:[#allocation10 + $0x24] sm:$0xf] }
 0x191   :  { %v1279_v8 = vadd.f32 %v1278_v7, %v1266_v6  ;;  %v1291_v9 = vpop.f32.mrf.mxu0  ;;  %1946 = vmatpush.bf16.msra.mxu0 %v5671_v55 }
 0x192   :  { %v1292_v17 = vadd.f32 %v1291_v9, %v662_v14  ;;  %v5669_v9 = vld [vmem:[#allocation9 + $0x18] sm:$0xff]  ;;  %v4668_v14 = vld [vmem:[#allocation10 + $0x70] sm:$0xf] }
 0x193   :  { %v1335_v10 = vmax.f32 %v1279_v8, 0.0 }
 0x194   :  { %v1304_v11 = vpop.f32.mrf.mxu1 }
 0x195   :  { %v1338_v13 = vpack.c.bf16 %v1335_v10, %v1335_v10  ;;  %v1305_v21 = vadd.f32 %v1304_v11, %v1292_v17  ;;  %1947 = vmatpush.bf16.msra.mxu0 %v5670_v54  ;;  %v5668_v10 = vld [vmem:[#allocation9 + $0x10] sm:$0xff]  ;;  %v5667_v11 = vld [vmem:[#allocation9 + $0x8] sm:$0xff] }
 0x196   :  { %v1267_v15 = vpop.f32.mrf.mxu2 }
 0x197   :  { %v1280_v16 = vpop.f32.mrf.mxu3  ;;  %1655 = vmatmul.bf16.vlgmr.msra.gmra.mxu1 %v1338_v13  ;;  %1694 = vmatmul.bf16.vlgmr.msrb.gmra.mxu0 %v1338_v13  ;;  %v5666_v13 = vld [vmem:[#allocation9] sm:$0xff]  ;;  %v5689_v15 = vld [vmem:[#allocation10 + $0x74] sm:$0xf0] }
 0x198   :  { %v5688_v16 = vld [vmem:[#allocation10 + $0x74] sm:$0xf]  ;;  %v4669_v17 = vor.u32 %v5689_v15, %v4668_v14  ;;  %v5695_v15 = vld [vmem:[#allocation12 + $0x28] sm:$0xff] }
 0x199   :  { %v1293_v19 = vpop.f32.mrf.mxu0  ;;  %1948 = vmatpush.bf16.msra.mxu0 %v5669_v9 }
 0x19a   :  { %v4670_v19 = vld [vmem:[#allocation10 + $0x78] sm:$0xf0]  ;;  %2062 = vmatpush.bf16.msra.mxu1 %v4669_v17 }
 0x19b   :  { %v5693_v17 = vld [vmem:[#allocation12 + $0x18] sm:$0xff] }
 0x19c   :  { %v1306_v20 = vpop.f32.mrf.mxu1 }
 0x19d   :  { %1949 = vmatpush.bf16.msra.mxu0 %v5668_v10  ;;  %v4660_v20 = vld [vmem:[#allocation10 + $0x60] sm:$0xf] }
 0x19e   :  { %v1317_v22 = vpop.f32.mrf.mxu2 }
 0x19f   :  { %v1318_v23 = vadd.f32 %v1317_v22, %v1305_v21  ;;  %v1330_v24 = vpop.f32.mrf.mxu3  ;;  %v5687_v21 = vld [vmem:[#allocation10 + $0x64] sm:$0xf0]  ;;  %v4673_v22 = vor.u32 %v5688_v16, %v4670_v19  ;;  %v5694_v16 = vld [vmem:[#allocation12 + $0x20] sm:$0xff]  ;;  %v5692_v19 = vld [vmem:[#allocation12 + $0x10] sm:$0xff] }
 0x1a1   :  { %v1331_v25 = vadd.f32 %v1330_v24, %v1318_v23  ;;  %1950 = vmatpush.bf16.msra.mxu0 %v5667_v11  ;;  %v5686_v23 = vld [vmem:[#allocation10 + $0x64] sm:$0xf]  ;;  %v4662_v24 = vld [vmem:[#allocation10 + $0x68] sm:$0xf0] }
 0x1a3   :  { %v1336_v26 = vmax.f32 %v1331_v25, 0.0  ;;  %v4661_v25 = vor.u32 %v5687_v21, %v4660_v20  ;;  %v5691_v20 = vld [vmem:[#allocation12 + $0x8] sm:$0xff]  ;;  %v5690_v21 = vld [vmem:[#allocation12] sm:$0xff] }
 0x1a5   :  { %v1339_v27 = vpack.c.bf16 %v1336_v26, %v1336_v26  ;;  %1951 = vmatpush.bf16.msra.mxu0 %v5666_v13  ;;  %v4665_v26 = vor.u32 %v5686_v23, %v4662_v24  ;;  %2063 = vmatpush.bf16.msra.mxu1 %v4661_v25  ;;  %v4764_v23 = vld [vmem:[#allocation15 + $0x70] sm:$0xf]  ;;  %v5713_v24 = vld [vmem:[#allocation15 + $0x74] sm:$0xf0]  ;;  %v5712_v25 = vld [vmem:[#allocation15 + $0x74] sm:$0xf] }
 0x1a6   :  { %v1319_v28 = vpop.f32.mrf.mxu2 }
 0x1a7   :  { %v1332_v29 = vpop.f32.mrf.mxu3  ;;  %1668 = vmatmul.bf16.vlgmr.msra.gmra.mxu2 %v1339_v27  ;;  %1707 = vmatmul.bf16.vlgmr.msrb.gmra.mxu1 %v1339_v27  ;;  %v4652_v27 = vld [vmem:[#allocation10 + $0x50] sm:$0xf]  ;;  %v5685_v28 = vld [vmem:[#allocation10 + $0x54] sm:$0xf0] }
 0x1a8   :  { %2075 = vmatpush.bf16.msra.mxu2 %v4673_v22  ;;  %v5684_v29 = vld [vmem:[#allocation10 + $0x54] sm:$0xf]  ;;  %v4653_v4 = vor.u32 %v5685_v28, %v4652_v27  ;;  %v1976_v22 = vld [vmem:[%s6566_s13] sm:$0x3]  ;;  %v4756_v28 = vld [vmem:[#allocation15 + $0x60] sm:$0xf] }
 0x1a9   :  { %v4657_v31 = vor.u32 %v5684_v29, %v4654_v30  ;;  %v4766_v27 = vld [vmem:[#allocation15 + $0x78] sm:$0xf0]  ;;  %v5711_v29 = vld [vmem:[#allocation15 + $0x64] sm:$0xf0]  ;;  %v1978_v32 = vperm.slane %v1976_v22, 0 }
 0x1aa   :  { %2064 = vmatpush.bf16.msra.mxu1 %v4653_v4  ;;  %v4769_v30 = vor.u32 %v5712_v25, %v4766_v27  ;;  %v5710_v4 = vld [vmem:[#allocation15 + $0x64] sm:$0xf]  ;;  %v4757_v33 = vor.u32 %v5711_v29, %v4756_v28  ;;  %v4844_v27 = vld [vmem:[#allocation16 + $0x90] sm:$0xf]  ;;  %v5733_v28 = vld [vmem:[#allocation16 + $0x98] sm:$0xf0] }
 0x1ac   :  { %2076 = vmatpush.bf16.msra.mxu2 %v4665_v26  ;;  %v4765_v26 = vor.u32 %v5713_v24, %v4764_v23  ;;  %v5736_v23 = vld [vmem:[#allocation16 + $0xb0] sm:$0xf0]  ;;  %v4952_v24 = vld [vmem:[#allocation16 + $0x168] sm:$0xf] }
 0x1ae   :  { %2065 = vmatpush.bf16.msra.mxu1 %v4645_v36  ;;  %2282 = vmatpush.bf16.msrb.mxu0 %v4765_v26  ;;  %v5709_v36 = vld [vmem:[#allocation15 + $0x54] sm:$0xf0]  ;;  %v5760_v26 = vld [vmem:[#allocation16 + $0x170] sm:$0xf0] }
 0x1af   :  { %v4953_v29 = vor.u32 %v5760_v26, %v4952_v24  ;;  %v5718_v24 = vld [vmem:[#allocation16 + $0x20] sm:$0xf0] }
 0x1b0   :  { %2077 = vmatpush.bf16.msra.mxu2 %v4657_v31  ;;  %v4758_v31 = vld [vmem:[#allocation15 + $0x68] sm:$0xf0] }
 0x1b1   :  { %v4761_v34 = vor.u32 %v5710_v4, %v4758_v31  ;;  %v5757_v4 = vld [vmem:[#allocation16 + $0x158] sm:$0xf0]  ;;  %v4845_v31 = vor.u32 %v5733_v28, %v4844_v27  ;;  %v5742_v27 = vld [vmem:[#allocation16 + $0xe0] sm:$0xf0] }
 0x1b2   :  { %2066 = vmatpush.bf16.msra.mxu1 %v4637_v42  ;;  %2283 = vmatpush.bf16.msrb.mxu0 %v4757_v33  ;;  %v4832_v33 = vld [vmem:[#allocation16 + $0x78] sm:$0xf] }
 0x1b4   :  { %2078 = vmatpush.bf16.msra.mxu2 %v4649_v37  ;;  %v5708_v37 = vld [vmem:[#allocation15 + $0x54] sm:$0xf] }
 0x1b5   :  { %v4753_v42 = vor.u32 %v5708_v37, %v4750_v38  ;;  %v5735_v37 = vld [vmem:[#allocation16 + $0xac] sm:$0xf]  ;;  %v4858_v38 = vld [vmem:[#allocation16 + $0xb4] sm:$0xf0] }
 0x204   :  { %v1643_v41 = vpop.f32.mrf.mxu0 }
 0x205   :  { %v1644_v0 = vadd.f32 %v1643_v41, %v1390_v60  ;;  %v4638_v41 = vld [vmem:[#allocation10 + $0x38] sm:$0xf0]  ;;  %v5677_v60 = vld [vmem:[#allocation10 + $0x14] sm:$0xf0] }
 0x206   :  { %v4641_v43 = vor.u32 %v5680_v40, %v4638_v41  ;;  %v4749_v41 = vor.u32 %v5709_v36, %v4748_v35  ;;  %v4928_v35 = vld [vmem:[#allocation16 + $0x138] sm:$0xf]  ;;  %v5754_v36 = vld [vmem:[#allocation16 + $0x140] sm:$0xf0] }
 0x208   :  { %2079 = vmatpush.bf16.msra.mxu2 %v4641_v43  ;;  %v4740_v43 = vld [vmem:[#allocation15 + $0x40] sm:$0xf]  ;;  %2284 = vmatpush.bf16.msrb.mxu0 %v4749_v41  ;;  %v4954_v41 = vld [vmem:[#allocation16 + $0x174] sm:$0xf0] }
 0x20a   :  { %v1682_v45 = vpop.f32.mrf.mxu3 }
 0x20b   :  { %v1683_v59 = vadd.f32 %v1682_v45, %v1391_v58  ;;  %v5679_v45 = vld [vmem:[#allocation10 + $0x24] sm:$0xf0] }
 0x20c   :  { %v1645_v46 = vpop.f32.mrf.mxu0  ;;  %v4629_v50 = vor.u32 %v5679_v45, %v4628_v44  ;;  %v5707_v44 = vld [vmem:[#allocation15 + $0x44] sm:$0xf0]  ;;  %v1979_v45 = vperm.slane %v1976_v22, 1 }
 0x20d   :  { %v4856_v22 = vld [vmem:[#allocation16 + $0xa8] sm:$0xf] }
 0x20e   :  { %2067 = vmatpush.bf16.msra.mxu1 %v4629_v50  ;;  %v4857_v25 = vor.u32 %v5736_v23, %v4856_v22  ;;  %v4784_v23 = vld [vmem:[#allocation16 + $0x18] sm:$0xf] }
 0x212   :  { %v1684_v48 = vpop.f32.mrf.mxu3 }
 0x213   :  { %v4630_v48 = vld [vmem:[#allocation10 + $0x28] sm:$0xf0] }
 0x214   :  { %v1656_v51 = vpop.f32.mrf.mxu1  ;;  %v1695_v52 = vpop.f32.mrf.mxu0 }
 0x215   :  { %v1696_v61 = vadd.f32 %v1695_v52, %v1683_v59  ;;  %v1657_v1 = vadd.f32 %v1656_v51, %v1644_v0  ;;  %v5910_v51 = vld [vmem:[%s6615_s16] ss:$0 sm:$0xff]  ;;  %v4633_v52 = vor.u32 %v5678_v47, %v4630_v48  ;;  %v4620_v59 = vld [vmem:[#allocation10 + $0x10] sm:$0xf]  ;;  %v4741_v48 = vor.u32 %v5707_v44, %v4740_v43  ;;  %v4820_v43 = vld [vmem:[#allocation16 + $0x60] sm:$0xf] }
 0x216   :  { %v4742_v47 = vld [vmem:[#allocation15 + $0x48] sm:$0xf0] }
 0x217   :  { %2080 = vmatpush.bf16.msra.mxu2 %v4633_v52  ;;  %v4732_v52 = vld [vmem:[#allocation15 + $0x30] sm:$0xf]  ;;  %2285 = vmatpush.bf16.msrb.mxu0 %v4741_v48  ;;  %v5727_v44 = vld [vmem:[#allocation16 + $0x68] sm:$0xf0]  ;;  %v4846_v48 = vld [vmem:[#allocation16 + $0x9c] sm:$0xf0] }
 0x21c   :  { %v1658_v49 = vpop.f32.mrf.mxu1  ;;  %v1697_v57 = vpop.f32.mrf.mxu0 }
 0x224   :  { %v1708_v62 = vpop.f32.mrf.mxu1 }
 0x225   :  { %v1709_v63 = vadd.f32 %v1708_v62, %v1696_v61  ;;  %v5676_v61 = vld [vmem:[#allocation10 + $0x14] sm:$0xf]  ;;  %v4621_v62 = vor.u32 %v5677_v60, %v4620_v59  ;;  %v4724_v60 = vld [vmem:[#allocation15 + $0x20] sm:$0xf] }
 0x227   :  { %v1713_v12 = vmax.f32 %v1709_v63, 0.0  ;;  %v4622_v63 = vld [vmem:[#allocation10 + $0x18] sm:$0xf0]  ;;  %2068 = vmatpush.bf16.msra.mxu1 %v4621_v62 }
 0x228   :  { %v4625_v0 = vor.u32 %v5676_v61, %v4622_v63  ;;  %v5703_v61 = vld [vmem:[#allocation15 + $0x24] sm:$0xf0]  ;;  %v5702_v63 = vld [vmem:[#allocation15 + $0x24] sm:$0xf] }
 0x229   :  { %v1715_v2 = vpack.c.bf16 %v1713_v12, %v1713_v12  ;;  %v4612_v12 = vld [vmem:[#allocation10] sm:$0xf] }
 0x22a   :  { %v1669_v3 = vpop.f32.mrf.mxu2  ;;  %2081 = vmatpush.bf16.msra.mxu2 %v4625_v0  ;;  %v4726_v0 = vld [vmem:[#allocation15 + $0x28] sm:$0xf0] }
 0x22b   :  { %v1670_v5 = vadd.f32 %v1669_v3, %v1657_v1  ;;  %1869 = vmatmul.bf16.vlgmr.msrb.gmra.mxu3 %v1715_v2  ;;  %v5675_v1 = vld [vmem:[#allocation10 + $0x4] sm:$0xf0]  ;;  %v5674_v2 = vld [vmem:[#allocation10 + $0x4] sm:$0xf] }
 0x22c   :  { %v1710_v18 = vpop.f32.mrf.mxu1  ;;  %v4613_v3 = vor.u32 %v5675_v1, %v4612_v12  ;;  %v4725_v12 = vor.u32 %v5703_v61, %v4724_v60  ;;  %v4808_v61 = vld [vmem:[#allocation16 + $0x48] sm:$0xf] }
 0x22d   :  { %v1712_v6 = vmax.f32 %v1670_v5, 0.0  ;;  %v4614_v5 = vld [vmem:[#allocation10 + $0x8] sm:$0xf0] }
 0x22e   :  { %v4617_v18 = vor.u32 %v5674_v2, %v4614_v5  ;;  %2069 = vmatpush.bf16.msra.mxu1 %v4613_v3  ;;  %v4729_v2 = vor.u32 %v5702_v63, %v4726_v0  ;;  %v2090_v3 = vld [vmem:[%s6617_s12] sm:$0xff]  ;;  %v4904_v63 = vld [vmem:[#allocation16 + $0x108] sm:$0xf] }
 0x22f   :  { %v1714_v7 = vpack.c.bf16 %v1712_v6, %v1712_v6  ;;  %v5697_v6 = vld [vmem:[#allocation12 + $0x38] sm:$0xff] }
 0x230   :  { %2082 = vmatpush.bf16.msra.mxu2 %v4617_v18  ;;  %2165 = vmatpush.bf16.msra.mxu3 %v5697_v6 }
 0x231   :  { %1856 = vmatmul.bf16.vlgmr.msrb.gmra.mxu2 %v1714_v7  ;;  %v5696_v7 = vld [vmem:[#allocation12 + $0x30] sm:$0xff] }
 0x232   :  { %v1671_v8 = vpop.f32.mrf.mxu2  ;;  %2295 = vmatpush.bf16.msrb.mxu1 %v4769_v30  ;;  %v4940_v30 = vld [vmem:[#allocation16 + $0x150] sm:$0xf] }
 0x233   :  { %v5911_v8 = vld [vmem:[%s6616_s29] ss:$0 sm:$0xff] }
 0x234   :  { %2166 = vmatpush.bf16.msra.mxu3 %v5696_v7  ;;  %2640 = vmatpush.bf16.msrb.mxu2 %v4857_v25  ;;  %v4880_v25 = vld [vmem:[#allocation16 + $0xd8] sm:$0xf] }
 0x236   :  { %2296 = vmatpush.bf16.msrb.mxu1 %v4761_v34  ;;  %v5730_v34 = vld [vmem:[#allocation16 + $0x80] sm:$0xf0] }
 0x238   :  { %2167 = vmatpush.bf16.msra.mxu3 %v5695_v15  ;;  %v4708_v15 = vld [vmem:[#allocation15] sm:$0xf]  ;;  %2641 = vmatpush.bf16.msrb.mxu2 %v4845_v31 }
 0x239   :  { %v4894_v31 = vld [vmem:[#allocation16 + $0xfc] sm:$0xf0] }
 0x23a   :  { %2297 = vmatpush.bf16.msrb.mxu1 %v4753_v42  ;;  %v4833_v42 = vor.u32 %v5730_v34, %v4832_v33  ;;  %v4881_v34 = vor.u32 %v5742_v27, %v4880_v25  ;;  %v5722_v27 = vld [vmem:[#allocation16 + $0x40] sm:$0xf0] }
 0x23c   :  { %2168 = vmatpush.bf16.msra.mxu3 %v5694_v16  ;;  %v5699_v16 = vld [vmem:[#allocation15 + $0x4] sm:$0xf0]  ;;  %2642 = vmatpush.bf16.msrb.mxu2 %v4833_v42 }
 0x240   :  { %2169 = vmatpush.bf16.msra.mxu3 %v5693_v17  ;;  %v5698_v17 = vld [vmem:[#allocation15 + $0x4] sm:$0xf] }
 0x244   :  { %2170 = vmatpush.bf16.msra.mxu3 %v5692_v19  ;;  %v4709_v19 = vor.u32 %v5699_v16, %v4708_v15  ;;  %v5723_v15 = vld [vmem:[#allocation16 + $0x4c] sm:$0xf]  ;;  %v4810_v16 = vld [vmem:[#allocation16 + $0x54] sm:$0xf0] }
 0x245   :  { %v4813_v26 = vor.u32 %v5723_v15, %v4810_v16  ;;  %v4924_v16 = vld [vmem:[#allocation16 + $0x128] sm:$0xf] }
 0x248   :  { %2171 = vmatpush.bf16.msra.mxu3 %v5691_v20  ;;  %v4710_v20 = vld [vmem:[#allocation15 + $0x8] sm:$0xf0] }
 0x24c   :  { %2172 = vmatpush.bf16.msra.mxu3 %v5690_v21  ;;  %v4713_v21 = vor.u32 %v5698_v17, %v4710_v20  ;;  %v5747_v17 = vld [vmem:[#allocation16 + $0x10c] sm:$0xf]  ;;  %v5912_v20 = vld [vmem:[#allocation13] ss:$0 sm:$0xff] }
 0x250   :  { %2653 = vmatpush.bf16.msrb.mxu3 %v4953_v29  ;;  %v5720_v29 = vld [vmem:[#allocation16 + $0x34] sm:$0xf] }
 0x2ae   :  { %v1870_v46 = vpop.f32.mrf.mxu3 }
 0x2b4   :  { %v1857_v53 = vpop.f32.mrf.mxu2 }
 0x2b5   :  { %v1858_v55 = vadd.f32 %v5910_v51, %v1857_v53  ;;  %v5705_v53 = vld [vmem:[#allocation15 + $0x34] sm:$0xf0] }
 0x2b6   :  { %v1872_v56 = vpop.f32.mrf.mxu3 }
 0x2b7   :  { %v1871_v49 = vadd.f32 %v1870_v46, %v1858_v55  ;;  %v5706_v46 = vld [vmem:[#allocation15 + $0x44] sm:$0xf]  ;;  %v5704_v56 = vld [vmem:[#allocation15 + $0x34] sm:$0xf] }
 0x2b8   :  { %v4745_v51 = vor.u32 %v5706_v46, %v4742_v47  ;;  %v4929_v46 = vor.u32 %v5754_v36, %v4928_v35  ;;  %v5732_v47 = vld [vmem:[#allocation16 + $0x94] sm:$0xf]  ;;  %v4772_v35 = vld [vmem:[#allocation16] sm:$0xf]  ;;  %v5715_v36 = vld [vmem:[#allocation16 + $0x8] sm:$0xf0] }
 0x2b9   :  { %v1874_v57 = vmax.f32 %v1871_v49, 0.0  ;;  %v4734_v49 = vld [vmem:[#allocation15 + $0x38] sm:$0xf0] }
 0x2ba   :  { %2298 = vmatpush.bf16.msrb.mxu1 %v4745_v51  ;;  %v4737_v59 = vor.u32 %v5704_v56, %v4734_v49  ;;  %v4916_v51 = vld [vmem:[#allocation16 + $0x120] sm:$0xf]  ;;  %v5729_v49 = vld [vmem:[#allocation16 + $0x7c] sm:$0xf] }
 0x2bb   :  { %v1875_v54 = vpack.c.bf16 %v1874_v57, %v1874_v57 }
 0x2bc   :  { %v1859_v58 = vpop.f32.mrf.mxu2 }
 0x2bd   :  { %1952 = vmatmul.bf16.vlgmr.msra.gmra.mxu0 %v1875_v54  ;;  %v4733_v58 = vor.u32 %v5705_v53, %v4732_v52  ;;  %v5751_v52 = vld [vmem:[#allocation16 + $0x128] sm:$0xf0]  ;;  %v4849_v53 = vor.u32 %v5732_v47, %v4846_v48  ;;  %v4773_v47 = vor.u32 %v5715_v36, %v4772_v35 }
 0x2be   :  { %2299 = vmatpush.bf16.msrb.mxu1 %v4737_v59  ;;  %v4930_v59 = vld [vmem:[#allocation16 + $0x144] sm:$0xf0]  ;;  %v4917_v60 = vor.u32 %v5751_v52, %v4916_v51 }
 0x2bf   :  { %2286 = vmatpush.bf16.msrb.mxu0 %v4733_v58  ;;  %v5753_v58 = vld [vmem:[#allocation16 + $0x13c] sm:$0xf] }
 0x2c2   :  { %2300 = vmatpush.bf16.msrb.mxu1 %v4729_v2  ;;  %v5726_v2 = vld [vmem:[#allocation16 + $0x64] sm:$0xf] }
 0x2c3   :  { %2287 = vmatpush.bf16.msrb.mxu0 %v4725_v12  ;;  %v5748_v12 = vld [vmem:[#allocation16 + $0x110] sm:$0xf0] }
 0x33a   :  { %v1953_v9 = vpop.f32.mrf.mxu0 }
 0x33b   :  { %v1954_v10 = vadd.f32 %v5911_v8, %v1953_v9  ;;  %v4716_v8 = vld [vmem:[#allocation15 + $0x10] sm:$0xf]  ;;  %v5701_v9 = vld [vmem:[#allocation15 + $0x14] sm:$0xf0] }
 0x33d   :  { %v1957_v11 = vmax.f32 %v1954_v10, 0.0  ;;  %v5700_v10 = vld [vmem:[#allocation15 + $0x14] sm:$0xf] }
 0x33f   :  { %1958 = vst [vmem:[%s6577_s24] sm:$0xff] %v1957_v11  ;;  %v1959_v13 = vpack.c.bf16 %v1957_v11, %v1957_v11  ;;  %v4717_v11 = vor.u32 %v5701_v9, %v4716_v8  ;;  %v4796_v8 = vld [vmem:[#allocation16 + $0x30] sm:$0xf]  ;;  %v5721_v9 = vld [vmem:[#allocation16 + $0x38] sm:$0xf0] }
 0x341   :  { %2070 = vmatmul.bf16.vlgmr.msra.gmra.mxu1 %v1959_v13  ;;  %2083 = vmatmul.bf16.vlgmr.msra.gmra.mxu2 %v1959_v13  ;;  %v4718_v13 = vld [vmem:[#allocation15 + $0x18] sm:$0xf0] }
 0x342   :  { %v1955_v14 = vpop.f32.mrf.mxu0  ;;  %2288 = vmatpush.bf16.msrb.mxu0 %v4717_v11 }
 0x343   :  { %v4721_v14 = vor.u32 %v5700_v10, %v4718_v13  ;;  %v4892_v10 = vld [vmem:[#allocation16 + $0xf0] sm:$0xf]  ;;  %v5745_v13 = vld [vmem:[#allocation16 + $0xf8] sm:$0xf0] }
 0x344   :  { %v4893_v22 = vor.u32 %v5745_v13, %v4892_v10  ;;  %v4870_v10 = vld [vmem:[#allocation16 + $0xcc] sm:$0xf0]  ;;  %v5728_v13 = vld [vmem:[#allocation16 + $0x70] sm:$0xf0] }
 0x345   :  { %2301 = vmatpush.bf16.msrb.mxu1 %v4721_v14 }
 0x346   :  { %2289 = vmatpush.bf16.msrb.mxu0 %v4709_v19  ;;  %v4906_v19 = vld [vmem:[#allocation16 + $0x114] sm:$0xf0] }
 0x347   :  { %v4909_v28 = vor.u32 %v5747_v17, %v4906_v19  ;;  %v5752_v17 = vld [vmem:[#allocation16 + $0x130] sm:$0xf0] }
 0x348   :  { %v4925_v19 = vor.u32 %v5752_v17, %v4924_v16  ;;  %v5856_v16 = vld [vmem:[#allocation18 + $0x2ec] sm:$0xf0] }
 0x349   :  { %2302 = vmatpush.bf16.msrb.mxu1 %v4713_v21  ;;  %v4797_v21 = vor.u32 %v5721_v9, %v4796_v8  ;;  %v5738_v8 = vld [vmem:[#allocation16 + $0xc4] sm:$0xf] }
 0x3be   :  { %v2071_v39 = vpop.f32.mrf.mxu1 }
 0x3bf   :  { %v2072_v40 = vadd.f32 %v2071_v39, %v1978_v32  ;;  %v4941_v32 = vor.u32 %v5757_v4, %v4940_v30  ;;  %v4861_v39 = vor.u32 %v5735_v37, %v4858_v38  ;;  %v4798_v30 = vld [vmem:[#allocation16 + $0x3c] sm:$0xf0]  ;;  %v5744_v4 = vld [vmem:[#allocation16 + $0xf4] sm:$0xf] }
 0x3c0   :  { %v4801_v37 = vor.u32 %v5720_v29, %v4798_v30  ;;  %v4897_v42 = vor.u32 %v5744_v4, %v4894_v31  ;;  %v5746_v29 = vld [vmem:[#allocation16 + $0x100] sm:$0xf0]  ;;  %v4792_v31 = vld [vmem:[#allocation16 + $0x20] sm:$0xf] }
 0x3c1   :  { %2088 = vst [vmem:[%s6579_s26] sm:$0xff] %v2072_v40  ;;  %2654 = vmatpush.bf16.msrb.mxu3 %v4941_v32  ;;  %2666 = vmatpush.bf16.msra.mxu0 %v4861_v39  ;;  %v4785_v32 = vor.u32 %v5718_v24, %v4784_v23  ;;  %v4868_v39 = vld [vmem:[#allocation16 + $0xc0] sm:$0xf]  ;;  %v5749_v24 = vld [vmem:[#allocation16 + $0x118] sm:$0xf0] }
 0x3c4   :  { %v2084_v50 = vpop.f32.mrf.mxu2 }
 0x3c5   :  { %v2085_v55 = vadd.f32 %v2084_v50, %v1979_v45  ;;  %v5756_v50 = vld [vmem:[#allocation16 + $0x154] sm:$0xf]  ;;  %2655 = vmatpush.bf16.msrb.mxu3 %v4929_v46  ;;  %2667 = vmatpush.bf16.msra.mxu0 %v4849_v53  ;;  %v4852_v53 = vld [vmem:[#allocation16 + $0x98] sm:$0xf] }
 0x3c6   :  { %v2073_v57 = vpop.f32.mrf.mxu1 }
 0x3c7   :  { %2089 = vst [vmem:[%s6580_s27] sm:$0xff] %v2085_v55  ;;  %v2091_v54 = vmul.f32 0.5, %v2085_v55  ;;  %v4942_v55 = vld [vmem:[#allocation16 + $0x15c] sm:$0xf0]  ;;  %v4821_v57 = vor.u32 %v5727_v44, %v4820_v43  ;;  %v5737_v43 = vld [vmem:[#allocation16 + $0xb8] sm:$0xf0] }
 0x3c8   :  { %v4945_v56 = vor.u32 %v5756_v50, %v4942_v55  ;;  %v4960_v44 = vld [vmem:[#allocation16 + $0x170] sm:$0xf]  ;;  %v5734_v55 = vld [vmem:[#allocation16 + $0xa0] sm:$0xf0] }
 0x3c9   :  { %v2092_v62 = vmul.f32 1.442695, %v2091_v54  ;;  %v4834_v54 = vld [vmem:[#allocation16 + $0x84] sm:$0xf0]  ;;  %2643 = vmatpush.bf16.msrb.mxu2 %v4821_v57  ;;  %2656 = vmatpush.bf16.msrb.mxu3 %v4917_v60 }
 0x3ca   :  { %v4837_v0 = vor.u32 %v5729_v49, %v4834_v54  ;;  %v5758_v49 = vld [vmem:[#allocation16 + $0x160] sm:$0xf0]  ;;  %v4853_v54 = vor.u32 %v5734_v55, %v4852_v53  ;;  %v4786_v60 = vld [vmem:[#allocation16 + $0x24] sm:$0xf0]  ;;  %v2196_v53 = vld [vmem:[%s6570_s17] sm:$0x3] }
 0x3cb   :  { %5914 = vpow2.f32 %v2092_v62  ;;  %v5724_v62 = vld [vmem:[#allocation16 + $0x50] sm:$0xf0] }
 0x3cc   :  { %v2086_v1 = vpop.f32.mrf.mxu2  ;;  %2668 = vmatpush.bf16.msra.mxu0 %v4837_v0  ;;  %v4840_v0 = vld [vmem:[#allocation16 + $0x80] sm:$0xf] }
 0x3cd   :  { %v4933_v1 = vor.u32 %v5753_v58, %v4930_v59  ;;  %v5717_v59 = vld [vmem:[#allocation16 + $0x1c] sm:$0xf] }
 0x3d1   :  { %v5915_v5 = vpop.eup %5914 }
 0x3d2   :  { %v2094_v18 = vmul.f32 %v5915_v5, %v2090_v3  ;;  %v4822_v3 = vld [vmem:[#allocation16 + $0x6c] sm:$0xf0]  ;;  %v5750_v5 = vld [vmem:[#allocation16 + $0x124] sm:$0xf] }
 0x3d3   :  { %v4825_v11 = vor.u32 %v5726_v2, %v4822_v3  ;;  %v4936_v3 = vld [vmem:[#allocation16 + $0x140] sm:$0xf] }
 0x3d4   :  { %v2095_v6 = vadd.f32 %v2094_v18, %v2072_v40  ;;  %v5759_v40 = vld [vmem:[#allocation16 + $0x16c] sm:$0xf]  ;;  %v4918_v18 = vld [vmem:[#allocation16 + $0x12c] sm:$0xf0] }
 0x3d5   :  { %v4957_v45 = vor.u32 %v5759_v40, %v4954_v41  ;;  %v4921_v14 = vor.u32 %v5750_v5, %v4918_v18  ;;  %2669 = vmatpush.bf16.msra.mxu0 %v4825_v11  ;;  %v5739_v40 = vld [vmem:[#allocation16 + $0xc8] sm:$0xf0]  ;;  %v4864_v41 = vld [vmem:[#allocation16 + $0xb0] sm:$0xf]  ;;  %v4828_v11 = vld [vmem:[#allocation16 + $0x68] sm:$0xf] }
 0x3d6   :  { %v2096_v7 = vpack.c.bf16 %v2095_v6, %v2095_v6  ;;  %v4809_v6 = vor.u32 %v5724_v62, %v4808_v61  ;;  %v4869_v48 = vor.u32 %v5739_v40, %v4868_v39  ;;  %v4865_v51 = vor.u32 %v5737_v43, %v4864_v41  ;;  %v5741_v61 = vld [vmem:[#allocation16 + $0xdc] sm:$0xf]  ;;  %v5755_v5 = vld [vmem:[#allocation16 + $0x148] sm:$0xf0]  ;;  %v4876_v39 = vld [vmem:[#allocation16 + $0xc8] sm:$0xf] }
 0x3d7   :  { %2679 = vmatpush.bf16.msra.mxu1 %v4957_v45  ;;  %v5761_v45 = vld [vmem:[#allocation16 + $0x178] sm:$0xf0]  ;;  %v4789_v62 = vor.u32 %v5717_v59, %v4786_v60  ;;  %v4937_v18 = vor.u32 %v5755_v5, %v4936_v3  ;;  %v4829_v15 = vor.u32 %v5728_v13, %v4828_v11  ;;  %v5740_v40 = vld [vmem:[#allocation16 + $0xd0] sm:$0xf0]  ;;  %v5076_v43 = vld [vmem:[#allocation18 + $0xe0] sm:$0xf] }
 0x3d8   :  { %2173 = vmatmul.bf16.vlgmr.msra.gmra.mxu3 %v2096_v7  ;;  %v4905_v7 = vor.u32 %v5748_v12, %v4904_v63  ;;  %2644 = vmatpush.bf16.msrb.mxu2 %v4809_v6  ;;  %v4961_v52 = vor.u32 %v5761_v45, %v4960_v44  ;;  %v4882_v63 = vld [vmem:[#allocation16 + $0xe4] sm:$0xf0]  ;;  %v5731_v12 = vld [vmem:[#allocation16 + $0x88] sm:$0xf0]  ;;  %v5714_v6 = vld [vmem:[#allocation16 + $0x4] sm:$0xf] }
 0x3d9   :  { %2670 = vmatpush.bf16.msra.mxu0 %v4813_v26  ;;  %v4841_v2 = vor.u32 %v5731_v12, %v4840_v0  ;;  %v4804_v26 = vld [vmem:[#allocation16 + $0x38] sm:$0xf]  ;;  %v5792_v44 = vld [vmem:[#allocation18 + $0xec] sm:$0xf0]  ;;  %v5204_v45 = vld [vmem:[#allocation18 + $0x1e0] sm:$0xf] }
 0x3da   :  { %2657 = vmatpush.bf16.msrb.mxu3 %v4905_v7  ;;  %v4774_v7 = vld [vmem:[#allocation16 + $0xc] sm:$0xf0]  ;;  %v4805_v30 = vor.u32 %v5722_v27, %v4804_v26  ;;  %v2198_v60 = vperm.slane %v2196_v53, 0  ;;  %v5028_v0 = vld [vmem:[#allocation18 + $0x80] sm:$0xf] }
 0x3db   :  { %2680 = vmatpush.bf16.msra.mxu1 %v4945_v56  ;;  %v4948_v56 = vld [vmem:[#allocation16 + $0x158] sm:$0xf]  ;;  %v4777_v9 = vor.u32 %v5714_v6, %v4774_v7  ;;  %v5816_v59 = vld [vmem:[#allocation18 + $0x1ac] sm:$0xf0]  ;;  %v5078_v6 = vld [vmem:[#allocation18 + $0xf0] sm:$0xf0] }
 0x3dc   :  { %2645 = vmatpush.bf16.msrb.mxu2 %v4797_v21  ;;  %v4949_v58 = vor.u32 %v5758_v49, %v4948_v56  ;;  %v5725_v21 = vld [vmem:[#allocation16 + $0x58] sm:$0xf0]  ;;  %v5820_v56 = vld [vmem:[#allocation18 + $0x1cc] sm:$0xf0]  ;;  %v5156_v7 = vld [vmem:[#allocation18 + $0x180] sm:$0xf] }
 0x3dd   :  { %2671 = vmatpush.bf16.msra.mxu0 %v4801_v37  ;;  %v4780_v37 = vld [vmem:[#allocation16 + $0x8] sm:$0xf]  ;;  %v5780_v12 = vld [vmem:[#allocation18 + $0x8c] sm:$0xf0] }
 0x3de   :  { %2658 = vmatpush.bf16.msrb.mxu3 %v4893_v22  ;;  %v4912_v22 = vld [vmem:[#allocation16 + $0x110] sm:$0xf] }
 0x3df   :  { %2681 = vmatpush.bf16.msra.mxu1 %v4933_v1  ;;  %v4885_v1 = vor.u32 %v5741_v61, %v4882_v63  ;;  %v4913_v25 = vor.u32 %v5749_v24, %v4912_v22  ;;  %v2199_v61 = vperm.slane %v2196_v53, 1  ;;  %v5776_v11 = vld [vmem:[#allocation18 + $0x6c] sm:$0xf0]  ;;  %v5062_v22 = vld [vmem:[#allocation18 + $0xd0] sm:$0xf0] }
 0x3e0   :  { %2646 = vmatpush.bf16.msrb.mxu2 %v4785_v32  ;;  %v5719_v32 = vld [vmem:[#allocation16 + $0x28] sm:$0xf0]  ;;  %v5808_v26 = vld [vmem:[#allocation18 + $0x16c] sm:$0xf0] }
 0x3e1   :  { %2672 = vmatpush.bf16.msra.mxu0 %v4789_v62  ;;  %v4793_v35 = vor.u32 %v5719_v32, %v4792_v31 }
 0x3e2   :  { %2659 = vmatpush.bf16.msrb.mxu3 %v4881_v34  ;;  %v5743_v34 = vld [vmem:[#allocation16 + $0xe8] sm:$0xf0] }
 0x3e3   :  { %2682 = vmatpush.bf16.msra.mxu1 %v4921_v14  ;;  %v4873_v14 = vor.u32 %v5738_v8, %v4870_v10  ;;  %v5029_v8 = vor.u32 %v5780_v12, %v5028_v0  ;;  %v5012_v10 = vld [vmem:[#allocation18 + $0x60] sm:$0xf]  ;;  %v5796_v12 = vld [vmem:[#allocation18 + $0x10c] sm:$0xf0] }
 0x3e4   :  { %2647 = vmatpush.bf16.msrb.mxu2 %v4773_v47  ;;  %v5824_v47 = vld [vmem:[#allocation18 + $0x1ec] sm:$0xf0]  ;;  %v5013_v24 = vor.u32 %v5776_v11, %v5012_v10  ;;  %v5092_v0 = vld [vmem:[#allocation18 + $0x100] sm:$0xf]  ;;  %v5190_v10 = vld [vmem:[#allocation18 + $0x1d0] sm:$0xf0] }
 0x3e5   :  { %2673 = vmatpush.bf16.msra.mxu0 %v4777_v9  ;;  %v5812_v9 = vld [vmem:[#allocation18 + $0x18c] sm:$0xf0]  ;;  %v5770_v11 = vld [vmem:[#allocation18 + $0x44] sm:$0xf] }
 0x3e6   :  { %2660 = vmatpush.bf16.msrb.mxu3 %v4869_v48  ;;  %v5205_v48 = vor.u32 %v5824_v47, %v5204_v45  ;;  %v5030_v47 = vld [vmem:[#allocation18 + $0x90] sm:$0xf0] }
 0x3e7   :  { %2683 = vmatpush.bf16.msra.mxu1 %v4909_v28  ;;  %v4900_v28 = vld [vmem:[#allocation16 + $0xf8] sm:$0xf] }
 0x3e8   :  { %2692 = vmatpush.bf16.msra.mxu2 %v4865_v51  ;;  %v4901_v4 = vor.u32 %v5746_v29, %v4900_v28  ;;  %v5788_v51 = vld [vmem:[#allocation18 + $0xcc] sm:$0xf0]  ;;  %v4996_v28 = vld [vmem:[#allocation18 + $0x40] sm:$0xf] }
 0x3e9   :  { %v5772_v29 = vld [vmem:[#allocation18 + $0x4c] sm:$0xf0] }
 0x3ea   :  { %2705 = vmatpush.bf16.msra.mxu3 %v4961_v52  ;;  %v5188_v52 = vld [vmem:[#allocation18 + $0x1c0] sm:$0xf] }
 0x3eb   :  { %2684 = vmatpush.bf16.msra.mxu1 %v4897_v42  ;;  %v4877_v42 = vor.u32 %v5740_v40, %v4876_v39  ;;  %v5189_v49 = vor.u32 %v5820_v56, %v5188_v52  ;;  %v5804_v39 = vld [vmem:[#allocation18 + $0x14c] sm:$0xf0] }
 0x3ec   :  { %2693 = vmatpush.bf16.msra.mxu2 %v4853_v54  ;;  %v5784_v54 = vld [vmem:[#allocation18 + $0xac] sm:$0xf0] }
 0x3ed   :  { %v5800_v52 = vld [vmem:[#allocation18 + $0x12c] sm:$0xf0] }
 0x3ee   :  { %2706 = vmatpush.bf16.msra.mxu3 %v4949_v58  ;;  %v5172_v58 = vld [vmem:[#allocation18 + $0x1a0] sm:$0xf]  ;;  %v5764_v56 = vld [vmem:[#allocation18 + $0xc] sm:$0xf0] }
 0x3ef   :  { %2685 = vmatpush.bf16.msra.mxu1 %v4885_v1  ;;  %v5173_v63 = vor.u32 %v5816_v59, %v5172_v58  ;;  %v5014_v59 = vld [vmem:[#allocation18 + $0x70] sm:$0xf0] }
 0x3f0   :  { %2694 = vmatpush.bf16.msra.mxu2 %v4841_v2 }
 0x3f2   :  { %2707 = vmatpush.bf16.msra.mxu3 %v4937_v18  ;;  %v5790_v18 = vld [vmem:[#allocation18 + $0xe4] sm:$0xf] }
 0x3f3   :  { %2686 = vmatpush.bf16.msra.mxu1 %v4873_v14 }
 0x3f4   :  { %2695 = vmatpush.bf16.msra.mxu2 %v4829_v15  ;;  %v5332_v15 = vld [vmem:[#allocation18 + $0x2e0] sm:$0xf] }
 0x3f5   :  { %v5333_v27 = vor.u32 %v5856_v16, %v5332_v15  ;;  %v5850_v16 = vld [vmem:[#allocation18 + $0x2c4] sm:$0xf] }
 0x3f6   :  { %2708 = vmatpush.bf16.msra.mxu3 %v4925_v19 }
 0x3fa   :  { %2709 = vmatpush.bf16.msra.mxu3 %v4913_v25  ;;  %v5140_v25 = vld [vmem:[#allocation18 + $0x160] sm:$0xf] }
 0x3fe   :  { %2710 = vmatpush.bf16.msra.mxu3 %v4901_v4  ;;  %v5852_v4 = vld [vmem:[#allocation18 + $0x2cc] sm:$0xf0] }
 0x45b   :  { %v2174_v33 = vpop.f32.mrf.mxu3 }
 0x45c   :  { %v2175_v38 = vadd.f32 %v5912_v20, %v2174_v33  ;;  %v4816_v20 = vld [vmem:[#allocation16 + $0x50] sm:$0xf]  ;;  %v4888_v33 = vld [vmem:[#allocation16 + $0xe0] sm:$0xf] }
 0x45d   :  { %v4817_v23 = vor.u32 %v5725_v21, %v4816_v20  ;;  %v4889_v36 = vor.u32 %v5743_v34, %v4888_v33  ;;  %v5081_v20 = vor.u32 %v5790_v18, %v5078_v6  ;;  %v5786_v21 = vld [vmem:[#allocation18 + $0xc4] sm:$0xf]  ;;  %v5840_v18 = vld [vmem:[#allocation18 + $0x26c] sm:$0xf0] }
 0x45e   :  { %v2178_v46 = vmax.f32 %v2175_v38, 0.0  ;;  %v5716_v38 = vld [vmem:[#allocation16 + $0x10] sm:$0xf0]  ;;  %v5065_v33 = vor.u32 %v5786_v21, %v5062_v22  ;;  %v5782_v34 = vld [vmem:[#allocation18 + $0xa4] sm:$0xf] }
 0x45f   :  { %2696 = vmatpush.bf16.msra.mxu2 %v4817_v23  ;;  %v4781_v41 = vor.u32 %v5716_v38, %v4780_v37  ;;  %2711 = vmatpush.bf16.msra.mxu3 %v4889_v36  ;;  %v5157_v23 = vor.u32 %v5812_v9, %v5156_v7  ;;  %v5141_v36 = vor.u32 %v5808_v26, %v5140_v25  ;;  %v5124_v38 = vld [vmem:[#allocation18 + $0x140] sm:$0xf]  ;;  %v5818_v9 = vld [vmem:[#allocation18 + $0x1c4] sm:$0xf]  ;;  %v5836_v22 = vld [vmem:[#allocation18 + $0x24c] sm:$0xf0] }
 0x460   :  { %v2179_v50 = vpack.c.bf16 %v2178_v46, %v2178_v46  ;;  %v5077_v46 = vor.u32 %v5792_v44, %v5076_v43  ;;  %v4997_v37 = vor.u32 %v5772_v29, %v4996_v28  ;;  %v5300_v43 = vld [vmem:[#allocation18 + $0x2a0] sm:$0xf]  ;;  %v5848_v44 = vld [vmem:[#allocation18 + $0x2ac] sm:$0xf0]  ;;  %v5814_v25 = vld [vmem:[#allocation18 + $0x1a4] sm:$0xf] }
 0x461   :  { %v5301_v53 = vor.u32 %v5848_v44, %v5300_v43  ;;  %v5252_v21 = vld [vmem:[#allocation18 + $0x240] sm:$0xf]  ;;  %v5174_v26 = vld [vmem:[#allocation18 + $0x1b0] sm:$0xf0] }
 0x462   :  { %2290 = vmatmul.bf16.vlgmr.msrb.gmra.mxu0 %v2179_v50  ;;  %2303 = vmatmul.bf16.vlgmr.msrb.gmra.mxu1 %v2179_v50  ;;  %v5060_v50 = vld [vmem:[#allocation18 + $0xc0] sm:$0xf]  ;;  %v4982_v28 = vld [vmem:[#allocation18 + $0x30] sm:$0xf0] }
 0x463   :  { %v2176_v57 = vpop.f32.mrf.mxu3  ;;  %2697 = vmatpush.bf16.msra.mxu2 %v4805_v30  ;;  %2712 = vmatpush.bf16.msra.mxu3 %v4877_v42  ;;  %v5061_v55 = vor.u32 %v5788_v51, %v5060_v50  ;;  %v5316_v30 = vld [vmem:[#allocation18 + $0x2c0] sm:$0xf]  ;;  %v5768_v42 = vld [vmem:[#allocation18 + $0x2c] sm:$0xf0]  ;;  %v5286_v43 = vld [vmem:[#allocation18 + $0x290] sm:$0xf0] }
 0x464   :  { %3310 = vmatpush.bf16.msrb.mxu0 %v5077_v46  ;;  %3323 = vmatpush.bf16.msrb.mxu1 %v5205_v48  ;;  %v5044_v57 = vld [vmem:[#allocation18 + $0xa0] sm:$0xf]  ;;  %v5317_v40 = vor.u32 %v5852_v4, %v5316_v30  ;;  %v5778_v46 = vld [vmem:[#allocation18 + $0x84] sm:$0xf]  ;;  %v5125_v48 = vor.u32 %v5804_v39, %v5124_v38  ;;  %v5253_v30 = vor.u32 %v5836_v22, %v5252_v21  ;;  %v5212_v38 = vld [vmem:[#allocation18 + $0x1e8] sm:$0xf] }
 0x465   :  { %v5045_v62 = vor.u32 %v5784_v54, %v5044_v57  ;;  %v5108_v51 = vld [vmem:[#allocation18 + $0x120] sm:$0xf]  ;;  %v5844_v57 = vld [vmem:[#allocation18 + $0x28c] sm:$0xf0]  ;;  %v5774_v54 = vld [vmem:[#allocation18 + $0x64] sm:$0xf]  ;;  %v5033_v58 = vor.u32 %v5778_v46, %v5030_v47 }
 0x466   :  { %v5017_v7 = vor.u32 %v5774_v54, %v5014_v59  ;;  %v5846_v4 = vld [vmem:[#allocation18 + $0x2a4] sm:$0xf]  ;;  %v5220_v54 = vld [vmem:[#allocation18 + $0x200] sm:$0xf] }
 0x467   :  { %2698 = vmatpush.bf16.msra.mxu2 %v4793_v35  ;;  %v5046_v35 = vld [vmem:[#allocation18 + $0xb0] sm:$0xf0] }
 0x468   :  { %3311 = vmatpush.bf16.msrb.mxu0 %v5061_v55  ;;  %3324 = vmatpush.bf16.msrb.mxu1 %v5189_v49  ;;  %v5049_v45 = vor.u32 %v5782_v34, %v5046_v35  ;;  %v4964_v55 = vld [vmem:[#allocation18] sm:$0xf]  ;;  %v5810_v34 = vld [vmem:[#allocation18 + $0x184] sm:$0xf]  ;;  %v5158_v35 = vld [vmem:[#allocation18 + $0x190] sm:$0xf0] }
 0x469   :  { %v5284_v49 = vld [vmem:[#allocation18 + $0x280] sm:$0xf]  ;;  %v5161_v44 = vor.u32 %v5810_v34, %v5158_v35  ;;  %v5826_v34 = vld [vmem:[#allocation18 + $0x204] sm:$0xf] }
 0x46b   :  { %2699 = vmatpush.bf16.msra.mxu2 %v4781_v41  ;;  %v4980_v41 = vld [vmem:[#allocation18 + $0x20] sm:$0xf] }
 0x46c   :  { %3312 = vmatpush.bf16.msrb.mxu0 %v5045_v62  ;;  %3325 = vmatpush.bf16.msrb.mxu1 %v5173_v63  ;;  %v4981_v50 = vor.u32 %v5768_v42, %v4980_v41  ;;  %v5206_v62 = vld [vmem:[#allocation18 + $0x1f0] sm:$0xf0]  ;;  %v4965_v63 = vor.u32 %v5764_v56, %v4964_v55  ;;  %v5825_v41 = vld [vmem:[#allocation18 + $0x1f4] sm:$0xf0]  ;;  %v5842_v42 = vld [vmem:[#allocation18 + $0x284] sm:$0xf] }
 0x46d   :  { %v5213_v46 = vor.u32 %v5825_v41, %v5212_v38  ;;  %v5289_v47 = vor.u32 %v5842_v42, %v5286_v43  ;;  %v5164_v56 = vld [vmem:[#allocation18 + $0x188] sm:$0xf]  ;;  %v5781_v38 = vld [vmem:[#allocation18 + $0x94] sm:$0xf0] }
 0x46e   :  { %v5100_v41 = vld [vmem:[#allocation18 + $0x108] sm:$0xf]  ;;  %v5797_v42 = vld [vmem:[#allocation18 + $0x114] sm:$0xf0] }
 0x46f   :  { %v5101_v43 = vor.u32 %v5797_v42, %v5100_v41  ;;  %v5292_v41 = vld [vmem:[#allocation18 + $0x288] sm:$0xf]  ;;  %v5845_v42 = vld [vmem:[#allocation18 + $0x294] sm:$0xf0] }
 0x470   :  { %3313 = vmatpush.bf16.msrb.mxu0 %v5029_v8  ;;  %3326 = vmatpush.bf16.msrb.mxu1 %v5157_v23  ;;  %v5093_v8 = vor.u32 %v5796_v12, %v5092_v0  ;;  %v5193_v23 = vor.u32 %v5818_v9, %v5190_v10  ;;  %v5270_v0 = vld [vmem:[#allocation18 + $0x270] sm:$0xf0]  ;;  %v5084_v12 = vld [vmem:[#allocation18 + $0xe8] sm:$0xf]  ;;  %v5834_v9 = vld [vmem:[#allocation18 + $0x244] sm:$0xf] }
 0x474   :  { %3314 = vmatpush.bf16.msrb.mxu0 %v5013_v24  ;;  %3327 = vmatpush.bf16.msrb.mxu1 %v5141_v36  ;;  %v5762_v36 = vld [vmem:[#allocation18 + $0x4] sm:$0xf] }
 0x478   :  { %3315 = vmatpush.bf16.msrb.mxu0 %v4997_v37  ;;  %3328 = vmatpush.bf16.msrb.mxu1 %v5125_v48  ;;  %v4966_v37 = vld [vmem:[#allocation18 + $0x10] sm:$0xf0]  ;;  %v5196_v48 = vld [vmem:[#allocation18 + $0x1c8] sm:$0xf] }
 0x47c   :  { %3316 = vmatpush.bf16.msrb.mxu0 %v4981_v50  ;;  %v5821_v50 = vld [vmem:[#allocation18 + $0x1d4] sm:$0xf0] }
 0x480   :  { %3317 = vmatpush.bf16.msrb.mxu0 %v4965_v63 }
 0x4df   :  { %v2291_v1 = vpop.f32.mrf.mxu0  ;;  %v2304_v2 = vpop.f32.mrf.mxu1 }
 0x4e0   :  { %v2292_v3 = vadd.f32 %v2291_v1, %v2198_v60  ;;  %v2305_v5 = vadd.f32 %v2304_v2, %v2199_v61  ;;  %v5109_v60 = vor.u32 %v5800_v52, %v5108_v51  ;;  %v5822_v61 = vld [vmem:[#allocation18 + $0x1e4] sm:$0xf]  ;;  %v5285_v1 = vor.u32 %v5844_v57, %v5284_v49  ;;  %v5180_v52 = vld [vmem:[#allocation18 + $0x1a8] sm:$0xf]  ;;  %v5813_v49 = vld [vmem:[#allocation18 + $0x194] sm:$0xf0] }
 0x4e1   :  { %v5854_v2 = vld [vmem:[#allocation18 + $0x2e4] sm:$0xf]  ;;  %v5209_v6 = vor.u32 %v5822_v61, %v5206_v62  ;;  %v5197_v51 = vor.u32 %v5821_v50, %v5196_v48  ;;  %v5165_v57 = vor.u32 %v5813_v49, %v5164_v56  ;;  %v5142_v61 = vld [vmem:[#allocation18 + $0x170] sm:$0xf0]  ;;  %v5773_v48 = vld [vmem:[#allocation18 + $0x54] sm:$0xf0] }
 0x4e2   :  { %v2308_v13 = vmax.f32 %v2292_v3, 0.0  ;;  %v2309_v14 = vmax.f32 %v2305_v5, 0.0  ;;  %v5334_v3 = vld [vmem:[#allocation18 + $0x2f0] sm:$0xf0]  ;;  %v5268_v5 = vld [vmem:[#allocation18 + $0x260] sm:$0xf]  ;;  %3329 = vmatpush.bf16.msrb.mxu1 %v5109_v60 }
 0x4e3   :  { %v5269_v15 = vor.u32 %v5840_v18, %v5268_v5  ;;  %v5806_v60 = vld [vmem:[#allocation18 + $0x164] sm:$0xf]  ;;  %v5148_v5 = vld [vmem:[#allocation18 + $0x168] sm:$0xf]  ;;  %v5809_v18 = vld [vmem:[#allocation18 + $0x174] sm:$0xf0] }
 0x4e4   :  { %v6508_v17 = vpack.c.bf16 %v2308_v13, %v2308_v13  ;;  %v6510_v19 = vpack.c.bf16 %v2309_v14, %v2309_v14  ;;  %v4998_v13 = vld [vmem:[#allocation18 + $0x50] sm:$0xf0]  ;;  %v5337_v14 = vor.u32 %v5854_v2, %v5334_v3  ;;  %v5838_v62 = vld [vmem:[#allocation18 + $0x264] sm:$0xf]  ;;  %v5145_v63 = vor.u32 %v5806_v60, %v5142_v61  ;;  %v4972_v56 = vld [vmem:[#allocation18 + $0x8] sm:$0xf] }
 0x4e5   :  { %v5001_v24 = vor.u32 %v5770_v11, %v4998_v13  ;;  %v5273_v2 = vor.u32 %v5838_v62, %v5270_v0  ;;  %v5254_v11 = vld [vmem:[#allocation18 + $0x250] sm:$0xf0]  ;;  %v5068_v13 = vld [vmem:[#allocation18 + $0xc8] sm:$0xf]  ;;  %v5765_v49 = vld [vmem:[#allocation18 + $0x14] sm:$0xf0] }
 0x4e6   :  { %2648 = vmatmul.bf16.vlgmr.msrb.gmra.mxu2 %v6508_v17  ;;  %2661 = vmatmul.bf16.vlgmr.msrb.gmra.mxu3 %v6510_v19  ;;  %v5086_v0 = vld [vmem:[#allocation18 + $0xf8] sm:$0xf0] }
 0x4e7   :  { %2674 = vmatmul.bf16.vlgmr.msra.gmra.mxu0 %v6508_v17  ;;  %2687 = vmatmul.bf16.vlgmr.msra.gmra.mxu1 %v6510_v19  ;;  %v2293_v31 = vpop.f32.mrf.mxu0  ;;  %v2306_v32 = vpop.f32.mrf.mxu1 }
 0x4e8   :  { %3349 = vmatpush.bf16.msrb.mxu3 %v5081_v20  ;;  %3336 = vmatpush.bf16.msrb.mxu2 %v5333_v27  ;;  %v5318_v20 = vld [vmem:[#allocation18 + $0x2d0] sm:$0xf0]  ;;  %v5766_v27 = vld [vmem:[#allocation18 + $0x24] sm:$0xf]  ;;  %v5236_v31 = vld [vmem:[#allocation18 + $0x220] sm:$0xf]  ;;  %v5177_v32 = vor.u32 %v5814_v25, %v5174_v26 }
 0x4e9   :  { %3362 = vmatpush.bf16.msra.mxu0 %v5209_v6  ;;  %3330 = vmatpush.bf16.msrb.mxu1 %v5093_v8  ;;  %v5321_v29 = vor.u32 %v5850_v16, %v5318_v20  ;;  %v5149_v6 = vor.u32 %v5809_v18, %v5148_v5  ;;  %v5126_v8 = vld [vmem:[#allocation18 + $0x150] sm:$0xf0]  ;;  %v5132_v16 = vld [vmem:[#allocation18 + $0x148] sm:$0xf]  ;;  %v5805_v20 = vld [vmem:[#allocation18 + $0x154] sm:$0xf0] }
 0x4ea   :  { %v5133_v22 = vor.u32 %v5805_v20, %v5132_v16  ;;  %v5830_v25 = vld [vmem:[#allocation18 + $0x224] sm:$0xf] }
 0x4ec   :  { %3350 = vmatpush.bf16.msrb.mxu3 %v5065_v33  ;;  %3337 = vmatpush.bf16.msrb.mxu2 %v5317_v40  ;;  %v4985_v33 = vor.u32 %v5766_v27, %v4982_v28  ;;  %v5238_v27 = vld [vmem:[#allocation18 + $0x230] sm:$0xf0]  ;;  %v5052_v28 = vld [vmem:[#allocation18 + $0xa8] sm:$0xf] }
 0x4ed   :  { %3375 = vmatpush.bf16.msra.mxu1 %v5337_v14  ;;  %3363 = vmatpush.bf16.msra.mxu0 %v5193_v23  ;;  %v5257_v14 = vor.u32 %v5834_v9, %v5254_v11  ;;  %v5798_v23 = vld [vmem:[#allocation18 + $0x124] sm:$0xf]  ;;  %v5855_v11 = vld [vmem:[#allocation18 + $0x2ec] sm:$0xf] }
 0x4f0   :  { %3351 = vmatpush.bf16.msrb.mxu3 %v5049_v45  ;;  %3338 = vmatpush.bf16.msrb.mxu2 %v5301_v53  ;;  %v4969_v45 = vor.u32 %v5762_v36, %v4966_v37  ;;  %v5817_v53 = vld [vmem:[#allocation18 + $0x1b4] sm:$0xf0]  ;;  %v5222_v36 = vld [vmem:[#allocation18 + $0x210] sm:$0xf0]  ;;  %v5036_v37 = vld [vmem:[#allocation18 + $0x88] sm:$0xf] }
 0x4f1   :  { %3376 = vmatpush.bf16.msra.mxu1 %v5321_v29  ;;  %3364 = vmatpush.bf16.msra.mxu0 %v5177_v32  ;;  %v5181_v55 = vor.u32 %v5817_v53, %v5180_v52  ;;  %v5785_v29 = vld [vmem:[#allocation18 + $0xb4] sm:$0xf0]  ;;  %v5794_v32 = vld [vmem:[#allocation18 + $0x104] sm:$0xf] }
 0x4f2   :  { %v5769_v52 = vld [vmem:[#allocation18 + $0x34] sm:$0xf0] }
 0x4f4   :  { %3352 = vmatpush.bf16.msrb.mxu3 %v5033_v58  ;;  %3339 = vmatpush.bf16.msrb.mxu2 %v5285_v1  ;;  %v5828_v58 = vld [vmem:[#allocation18 + $0x20c] sm:$0xf0]  ;;  %v5793_v1 = vld [vmem:[#allocation18 + $0xf4] sm:$0xf0] }
 0x4f5   :  { %3365 = vmatpush.bf16.msra.mxu0 %v5161_v44  ;;  %v5221_v59 = vor.u32 %v5828_v58, %v5220_v54  ;;  %v5085_v3 = vor.u32 %v5793_v1, %v5084_v12  ;;  %v5020_v44 = vld [vmem:[#allocation18 + $0x68] sm:$0xf]  ;;  %v4973_v54 = vor.u32 %v5765_v49, %v4972_v56  ;;  %v5841_v49 = vld [vmem:[#allocation18 + $0x274] sm:$0xf0] }
 0x4f6   :  { %2700 = vmatmul.bf16.vlgmr.msra.gmra.mxu2 %v6508_v17  ;;  %2713 = vmatmul.bf16.vlgmr.msra.gmra.mxu3 %v6510_v19  ;;  %v5302_v17 = vld [vmem:[#allocation18 + $0x2b0] sm:$0xf0]  ;;  %v5832_v19 = vld [vmem:[#allocation18 + $0x22c] sm:$0xf0]  ;;  %v5276_v56 = vld [vmem:[#allocation18 + $0x268] sm:$0xf] }
 0x4f7   :  { %v5305_v39 = vor.u32 %v5846_v4, %v5302_v17  ;;  %v5237_v40 = vor.u32 %v5832_v19, %v5236_v31  ;;  %v5053_v4 = vor.u32 %v5785_v29, %v5052_v28  ;;  %v5116_v17 = vld [vmem:[#allocation18 + $0x128] sm:$0xf]  ;;  %v5801_v31 = vld [vmem:[#allocation18 + $0x134] sm:$0xf0] }
 0x4f8   :  { %3353 = vmatpush.bf16.msrb.mxu3 %v5017_v7  ;;  %3340 = vmatpush.bf16.msrb.mxu2 %v5269_v15  ;;  %v5802_v7 = vld [vmem:[#allocation18 + $0x144] sm:$0xf]  ;;  %v5789_v15 = vld [vmem:[#allocation18 + $0xd4] sm:$0xf0]  ;;  %v5117_v19 = vor.u32 %v5801_v31, %v5116_v17 }
 0x4f9   :  { %3377 = vmatpush.bf16.msra.mxu1 %v5305_v39  ;;  %3366 = vmatpush.bf16.msra.mxu0 %v5145_v63  ;;  %v5129_v10 = vor.u32 %v5802_v7, %v5126_v8  ;;  %v5069_v21 = vor.u32 %v5789_v15, %v5068_v13  ;;  %v5225_v39 = vor.u32 %v5826_v34, %v5222_v36  ;;  %v5791_v63 = vld [vmem:[#allocation18 + $0xec] sm:$0xf]  ;;  %v5342_v13 = vld [vmem:[#allocation18 + $0x2f8] sm:$0xf0] }
 0x4fa   :  { %v5089_v5 = vor.u32 %v5791_v63, %v5086_v0  ;;  %v5070_v15 = vld [vmem:[#allocation18 + $0xd8] sm:$0xf0]  ;;  %v5847_v34 = vld [vmem:[#allocation18 + $0x2ac] sm:$0xf] }
 0x4fb   :  { %v5779_v36 = vld [vmem:[#allocation18 + $0x8c] sm:$0xf]  ;;  %v5006_v63 = vld [vmem:[#allocation18 + $0x58] sm:$0xf0] }
 0x4fc   :  { %3354 = vmatpush.bf16.msrb.mxu3 %v5001_v24  ;;  %3341 = vmatpush.bf16.msrb.mxu2 %v5253_v30  ;;  %v5110_v24 = vld [vmem:[#allocation18 + $0x130] sm:$0xf0]  ;;  %v5241_v30 = vor.u32 %v5830_v25, %v5238_v27  ;;  %v5326_v27 = vld [vmem:[#allocation18 + $0x2d8] sm:$0xf0] }
 0x4fd   :  { %3378 = vmatpush.bf16.msra.mxu1 %v5289_v47  ;;  %3367 = vmatpush.bf16.msra.mxu0 %v5129_v10  ;;  %v5113_v26 = vor.u32 %v5798_v23, %v5110_v24  ;;  %v5004_v47 = vld [vmem:[#allocation18 + $0x48] sm:$0xf]  ;;  %v5857_v10 = vld [vmem:[#allocation18 + $0x2f4] sm:$0xf0] }
 0x4fe   :  { %v5005_v50 = vor.u32 %v5773_v48, %v5004_v47  ;;  %v5853_v24 = vld [vmem:[#allocation18 + $0x2d4] sm:$0xf0]  ;;  %v5775_v48 = vld [vmem:[#allocation18 + $0x6c] sm:$0xf] }
 0x500   :  { %3355 = vmatpush.bf16.msrb.mxu3 %v4985_v33  ;;  %3342 = vmatpush.bf16.msrb.mxu2 %v5237_v40  ;;  %v5094_v33 = vld [vmem:[#allocation18 + $0x110] sm:$0xf0]  ;;  %v5037_v40 = vor.u32 %v5781_v38, %v5036_v37  ;;  %v5038_v37 = vld [vmem:[#allocation18 + $0x98] sm:$0xf0] }
 0x501   :  { %3379 = vmatpush.bf16.msra.mxu1 %v5273_v2  ;;  %3368 = vmatpush.bf16.msra.mxu0 %v5113_v26  ;;  %v5097_v35 = vor.u32 %v5794_v32, %v5094_v33  ;;  %v5851_v26 = vld [vmem:[#allocation18 + $0x2cc] sm:$0xf]  ;;  %v5849_v32 = vld [vmem:[#allocation18 + $0x2b4] sm:$0xf0] }
 0x502   :  { %v5329_v31 = vor.u32 %v5851_v26, %v5326_v27  ;;  %v5815_v26 = vld [vmem:[#allocation18 + $0x1ac] sm:$0xf]  ;;  %v5182_v27 = vld [vmem:[#allocation18 + $0x1b8] sm:$0xf0] }
 0x504   :  { %3356 = vmatpush.bf16.msrb.mxu3 %v4969_v45  ;;  %3343 = vmatpush.bf16.msrb.mxu2 %v5221_v59  ;;  %v5777_v45 = vld [vmem:[#allocation18 + $0x74] sm:$0xf0] }
 0x505   :  { %3380 = vmatpush.bf16.msra.mxu1 %v5257_v14  ;;  %3369 = vmatpush.bf16.msra.mxu0 %v5097_v35  ;;  %v5787_v14 = vld [vmem:[#allocation18 + $0xcc] sm:$0xf]  ;;  %v5310_v35 = vld [vmem:[#allocation18 + $0x2b8] sm:$0xf0] }
 0x506   :  { %v5073_v25 = vor.u32 %v5787_v14, %v5070_v15  ;;  %v5767_v14 = vld [vmem:[#allocation18 + $0x2c] sm:$0xf]  ;;  %v4990_v15 = vld [vmem:[#allocation18 + $0x38] sm:$0xf0] }
 0x508   :  { %3401 = vmatpush.bf16.msra.mxu3 %v5213_v46  ;;  %3388 = vmatpush.bf16.msra.mxu2 %v5085_v3  ;;  %v5021_v46 = vor.u32 %v5777_v45, %v5020_v44  ;;  %v5843_v44 = vld [vmem:[#allocation18 + $0x28c] sm:$0xf]  ;;  %v5294_v45 = vld [vmem:[#allocation18 + $0x298] sm:$0xf0] }
 0x509   :  { %3381 = vmatpush.bf16.msra.mxu1 %v5241_v30  ;;  %v5783_v30 = vld [vmem:[#allocation18 + $0xac] sm:$0xf] }
 0x50c   :  { %3402 = vmatpush.bf16.msra.mxu3 %v5197_v51  ;;  %3389 = vmatpush.bf16.msra.mxu2 %v5069_v21  ;;  %v4988_v51 = vld [vmem:[#allocation18 + $0x28] sm:$0xf]  ;;  %v5345_v21 = vor.u32 %v5855_v11, %v5342_v13  ;;  %v5835_v11 = vld [vmem:[#allocation18 + $0x24c] sm:$0xf]  ;;  %v5262_v13 = vld [vmem:[#allocation18 + $0x258] sm:$0xf0] }
 0x50d   :  { %3382 = vmatpush.bf16.msra.mxu1 %v5225_v39  ;;  %v4989_v53 = vor.u32 %v5769_v52, %v4988_v51  ;;  %v5293_v52 = vor.u32 %v5845_v42, %v5292_v41  ;;  %v5807_v42 = vld [vmem:[#allocation18 + $0x16c] sm:$0xf] }
 0x510   :  { %3403 = vmatpush.bf16.msra.mxu3 %v5181_v55  ;;  %3390 = vmatpush.bf16.msra.mxu2 %v5053_v4  ;;  %v6521_v55 = vld [vmem:[%s6572_s19] sm:$0x7] }
 0x511   :  { %v2378_v61 = vperm.slane %v6521_v55, 0  ;;  %v5054_v4 = vld [vmem:[#allocation18 + $0xb8] sm:$0xf0]  ;;  %v2380_v38 = vperm.slane %v6521_v55, 2 }
 0x512   :  { %v5057_v33 = vor.u32 %v5783_v30, %v5054_v4  ;;  %v5763_v30 = vld [vmem:[#allocation18 + $0xc] sm:$0xf]  ;;  %v4974_v4 = vld [vmem:[#allocation18 + $0x18] sm:$0xf0] }
 0x514   :  { %3404 = vmatpush.bf16.msra.mxu3 %v5165_v57  ;;  %3391 = vmatpush.bf16.msra.mxu2 %v5037_v40  ;;  %v2379_v57 = vperm.slane %v6521_v55, 1  ;;  %v5313_v40 = vor.u32 %v5847_v34, %v5310_v35  ;;  %v4977_v34 = vor.u32 %v5763_v30, %v4974_v4  ;;  %v5811_v35 = vld [vmem:[#allocation18 + $0x18c] sm:$0xf] }
 0x518   :  { %3405 = vmatpush.bf16.msra.mxu3 %v5149_v6  ;;  %3392 = vmatpush.bf16.msra.mxu2 %v5021_v46  ;;  %v5340_v6 = vld [vmem:[#allocation18 + $0x2e8] sm:$0xf] }
 0x519   :  { %v5341_v20 = vor.u32 %v5857_v10, %v5340_v6  ;;  %v5198_v10 = vld [vmem:[#allocation18 + $0x1d8] sm:$0xf0] }
 0x51c   :  { %3406 = vmatpush.bf16.msra.mxu3 %v5133_v22  ;;  %3393 = vmatpush.bf16.msra.mxu2 %v5005_v50  ;;  %v5324_v22 = vld [vmem:[#allocation18 + $0x2c8] sm:$0xf]  ;;  %v5022_v50 = vld [vmem:[#allocation18 + $0x78] sm:$0xf0] }
 0x51d   :  { %v5325_v17 = vor.u32 %v5853_v24, %v5324_v22  ;;  %v5833_v22 = vld [vmem:[#allocation18 + $0x234] sm:$0xf0]  ;;  %v5265_v24 = vor.u32 %v5835_v11, %v5262_v13  ;;  %v5888_v13 = vld [vmem:[#allocation19 + $0xf0] sm:$0xff] }
 0x51e   :  { %v5877_v11 = vld [vmem:[#allocation19 + $0x98] sm:$0xff] }
 0x520   :  { %3407 = vmatpush.bf16.msra.mxu3 %v5117_v19  ;;  %3394 = vmatpush.bf16.msra.mxu2 %v4989_v53  ;;  %v5308_v19 = vld [vmem:[#allocation18 + $0x2a8] sm:$0xf]  ;;  %v5297_v53 = vor.u32 %v5843_v44, %v5294_v45  ;;  %v5803_v45 = vld [vmem:[#allocation18 + $0x14c] sm:$0xf] }
 0x521   :  { %v5309_v39 = vor.u32 %v5849_v32, %v5308_v19  ;;  %v5228_v19 = vld [vmem:[#allocation18 + $0x208] sm:$0xf] }
 0x524   :  { %3408 = vmatpush.bf16.msra.mxu3 %v5101_v43  ;;  %3395 = vmatpush.bf16.msra.mxu2 %v4973_v54  ;;  %v5041_v43 = vor.u32 %v5779_v36, %v5038_v37  ;;  %v5823_v54 = vld [vmem:[#allocation18 + $0x1ec] sm:$0xf]  ;;  %v5166_v36 = vld [vmem:[#allocation18 + $0x198] sm:$0xf0] }
 0x525   :  { %v5827_v37 = vld [vmem:[#allocation18 + $0x20c] sm:$0xf] }
 0x564   :  { %v2675_v58 = vpop.f32.mrf.mxu0  ;;  %v2688_v59 = vpop.f32.mrf.mxu1 }
 0x565   :  { %v2676_v60 = vadd.f32 %v2675_v58, %v2379_v57  ;;  %v5025_v57 = vor.u32 %v5775_v48, %v5022_v50  ;;  %v5214_v58 = vld [vmem:[#allocation18 + $0x1f8] sm:$0xf0]  ;;  %v5799_v48 = vld [vmem:[#allocation18 + $0x12c] sm:$0xf] }
 0x566   :  { %v5118_v50 = vld [vmem:[#allocation18 + $0x138] sm:$0xf0] }
 0x567   :  { %v2689_v62 = vadd.f32 %v2688_v59, %v2676_v60  ;;  %v5839_v59 = vld [vmem:[#allocation18 + $0x26c] sm:$0xf]  ;;  %v5278_v60 = vld [vmem:[#allocation18 + $0x278] sm:$0xf0] }
 0x569   :  { %v2719_v12 = vmax.f32 %v2689_v62, 0.0  ;;  %v2649_v1 = vpop.f32.mrf.mxu2  ;;  %v2662_v2 = vpop.f32.mrf.mxu3  ;;  %v5771_v62 = vld [vmem:[#allocation18 + $0x4c] sm:$0xf] }
 0x56a   :  { %v2650_v3 = vadd.f32 %v2649_v1, %v2378_v61  ;;  %v5217_v1 = vor.u32 %v5823_v54, %v5214_v58  ;;  %v5871_v54 = vld [vmem:[#allocation19 + $0x68] sm:$0xff] }
 0x56b   :  { %v6525_v18 = vpack.c.bf16 %v2719_v12, %v2719_v12  ;;  %v5277_v12 = vor.u32 %v5841_v49, %v5276_v56  ;;  %v5873_v56 = vld [vmem:[#allocation19 + $0x78] sm:$0xff]  ;;  %v5863_v58 = vld [vmem:[#allocation19 + $0x28] sm:$0xff] }
 0x56c   :  { %v2663_v7 = vadd.f32 %v2662_v2, %v2650_v3  ;;  %v2677_v8 = vpop.f32.mrf.mxu0  ;;  %v2690_v9 = vpop.f32.mrf.mxu1  ;;  %v5260_v2 = vld [vmem:[#allocation18 + $0x248] sm:$0xf]  ;;  %v5837_v3 = vld [vmem:[#allocation18 + $0x254] sm:$0xf0] }
 0x56d   :  { %3331 = vmatmul.bf16.vlgmr.msrb.gmra.mxu1 %v6525_v18  ;;  %v5009_v8 = vor.u32 %v5771_v62, %v5006_v63  ;;  %v5819_v9 = vld [vmem:[#allocation18 + $0x1cc] sm:$0xf]  ;;  %v5865_v49 = vld [vmem:[#allocation19 + $0x38] sm:$0xff]  ;;  %v5860_v63 = vld [vmem:[#allocation19 + $0x10] sm:$0xff] }
 0x56e   :  { %v2718_v16 = vmax.f32 %v2663_v7, 0.0  ;;  %3427 = vmatpush.bf16.msrb.mxu1 %v5089_v5  ;;  %v5281_v7 = vor.u32 %v5839_v59, %v5278_v60  ;;  %v5870_v59 = vld [vmem:[#allocation19 + $0x60] sm:$0xff]  ;;  %v5861_v62 = vld [vmem:[#allocation19 + $0x18] sm:$0xff] }
 0x56f   :  { %v5862_v60 = vld [vmem:[#allocation19 + $0x20] sm:$0xff] }
 0x570   :  { %v6528_v23 = vpack.c.bf16 %v2718_v16, %v2718_v16  ;;  %v5261_v16 = vor.u32 %v5837_v3, %v5260_v2  ;;  %v5866_v2 = vld [vmem:[#allocation19 + $0x40] sm:$0xff]  ;;  %v5880_v3 = vld [vmem:[#allocation19 + $0xb0] sm:$0xff] }
 0x571   :  { %v2651_v28 = vpop.f32.mrf.mxu2  ;;  %v2664_v29 = vpop.f32.mrf.mxu3 }
 0x572   :  { %3318 = vmatmul.bf16.vlgmr.msrb.gmra.mxu0 %v6528_v23  ;;  %3357 = vmatmul.bf16.vlgmr.msrb.gmra.mxu3 %v6528_v23  ;;  %v5831_v28 = vld [vmem:[#allocation18 + $0x22c] sm:$0xf]  ;;  %v5246_v29 = vld [vmem:[#allocation18 + $0x238] sm:$0xf0] }
 0x573   :  { %3414 = vmatpush.bf16.msrb.mxu0 %v5341_v20  ;;  %3453 = vmatpush.bf16.msrb.mxu3 %v5345_v21  ;;  %v5201_v20 = vor.u32 %v5819_v9, %v5198_v10  ;;  %v5244_v21 = vld [vmem:[#allocation18 + $0x228] sm:$0xf]  ;;  %v5249_v32 = vor.u32 %v5831_v28, %v5246_v29  ;;  %v5889_v10 = vld [vmem:[#allocation19 + $0xf8] sm:$0xff]  ;;  %v5874_v29 = vld [vmem:[#allocation19 + $0x80] sm:$0xff] }
 0x574   :  { %3428 = vmatpush.bf16.msrb.mxu1 %v5073_v25  ;;  %v4993_v25 = vor.u32 %v5767_v14, %v4990_v15 }
 0x577   :  { %3415 = vmatpush.bf16.msrb.mxu0 %v5325_v17  ;;  %3454 = vmatpush.bf16.msrb.mxu3 %v5329_v31  ;;  %v5245_v17 = vor.u32 %v5833_v22, %v5244_v21  ;;  %v5185_v31 = vor.u32 %v5815_v26, %v5182_v27  ;;  %v5887_v21 = vld [vmem:[#allocation19 + $0xe8] sm:$0xff]  ;;  %v2820_v22 = vld [vmem:[%s6574_s21] sm:$0xf] }
 0x578   :  { %3429 = vmatpush.bf16.msrb.mxu1 %v5057_v33  ;;  %v5829_v33 = vld [vmem:[#allocation18 + $0x214] sm:$0xf0]  ;;  %v5886_v26 = vld [vmem:[#allocation19 + $0xe0] sm:$0xff]  ;;  %v2822_v27 = vperm.slane %v2820_v22, 0 }
 0x579   :  { %v2701_v46 = vpop.f32.mrf.mxu2  ;;  %v2714_v47 = vpop.f32.mrf.mxu3 }
 0x57a   :  { %v2702_v51 = vadd.f32 %v2701_v46, %v2380_v38  ;;  %v5230_v38 = vld [vmem:[#allocation18 + $0x218] sm:$0xf0] }
 0x57b   :  { %3416 = vmatpush.bf16.msrb.mxu0 %v5309_v39  ;;  %3455 = vmatpush.bf16.msrb.mxu3 %v5313_v40  ;;  %v5229_v39 = vor.u32 %v5829_v33, %v5228_v19  ;;  %v5169_v40 = vor.u32 %v5811_v35, %v5166_v36  ;;  %v5233_v41 = vor.u32 %v5827_v37, %v5230_v38  ;;  %v5134_v46 = vld [vmem:[#allocation18 + $0x158] sm:$0xf0]  ;;  %v5884_v33 = vld [vmem:[#allocation19 + $0xd0] sm:$0xff] }
 0x57c   :  { %v2715_v55 = vadd.f32 %v2714_v47, %v2702_v51  ;;  %3430 = vmatpush.bf16.msrb.mxu1 %v5041_v43  ;;  %v5150_v43 = vld [vmem:[#allocation18 + $0x178] sm:$0xf0]  ;;  %v5137_v47 = vor.u32 %v5803_v45, %v5134_v46  ;;  %v5121_v51 = vor.u32 %v5799_v48, %v5118_v50  ;;  %v5882_v46 = vld [vmem:[#allocation19 + $0xc0] sm:$0xff] }
 0x57d   :  { %v5153_v44 = vor.u32 %v5807_v42, %v5150_v43  ;;  %v5883_v42 = vld [vmem:[#allocation19 + $0xc8] sm:$0xff] }
 0x57e   :  { %v2720_v61 = vmax.f32 %v2715_v55, 0.0 }
 0x57f   :  { %3417 = vmatpush.bf16.msrb.mxu0 %v5293_v52  ;;  %3456 = vmatpush.bf16.msrb.mxu3 %v5297_v53  ;;  %v5795_v52 = vld [vmem:[#allocation18 + $0x10c] sm:$0xf]  ;;  %v5102_v53 = vld [vmem:[#allocation18 + $0x118] sm:$0xf0] }
 0x580   :  { %v6533_v0 = vpack.c.bf16 %v2720_v61, %v2720_v61  ;;  %3431 = vmatpush.bf16.msrb.mxu1 %v5025_v57  ;;  %v5105_v55 = vor.u32 %v5795_v52, %v5102_v53  ;;  %v5872_v57 = vld [vmem:[#allocation19 + $0x70] sm:$0xff]  ;;  %v5869_v61 = vld [vmem:[#allocation19 + $0x58] sm:$0xff]  ;;  %v2824_v52 = vperm.slane %v2820_v22, 2 }
 0x581   :  { %v2703_v5 = vpop.f32.mrf.mxu2  ;;  %v2716_v6 = vpop.f32.mrf.mxu3 }
 0x582   :  { %3344 = vmatmul.bf16.vlgmr.msrb.gmra.mxu2 %v6533_v0  ;;  %3370 = vmatmul.bf16.vlgmr.msra.gmra.mxu0 %v6525_v18  ;;  %v5858_v5 = vld [vmem:[#allocation19] sm:$0xff]  ;;  %v5879_v6 = vld [vmem:[#allocation19 + $0xa8] sm:$0xff] }
 0x583   :  { %3383 = vmatmul.bf16.vlgmr.msra.gmra.mxu1 %v6533_v0  ;;  %3409 = vmatmul.bf16.vlgmr.msra.gmra.mxu3 %v6525_v18 }
 0x584   :  { %3418 = vmatpush.bf16.msrb.mxu0 %v5277_v12  ;;  %3440 = vmatpush.bf16.msrb.mxu2 %v5217_v1  ;;  %v5881_v12 = vld [vmem:[#allocation19 + $0xb8] sm:$0xff]  ;;  %v5859_v1 = vld [vmem:[#allocation19 + $0x8] sm:$0xff] }
 0x585   :  { %3457 = vmatpush.bf16.msrb.mxu3 %v5281_v7  ;;  %3432 = vmatpush.bf16.msrb.mxu1 %v5009_v8  ;;  %v5878_v8 = vld [vmem:[#allocation19 + $0xa0] sm:$0xff] }
 0x588   :  { %3419 = vmatpush.bf16.msrb.mxu0 %v5261_v16  ;;  %3441 = vmatpush.bf16.msrb.mxu2 %v5201_v20  ;;  %v5876_v16 = vld [vmem:[#allocation19 + $0x90] sm:$0xff] }
 0x589   :  { %3458 = vmatpush.bf16.msrb.mxu3 %v5265_v24  ;;  %3433 = vmatpush.bf16.msrb.mxu1 %v4993_v25  ;;  %v5875_v24 = vld [vmem:[#allocation19 + $0x88] sm:$0xff]  ;;  %v2823_v25 = vperm.slane %v2820_v22, 1 }
 0x58c   :  { %3420 = vmatpush.bf16.msrb.mxu0 %v5245_v17  ;;  %3442 = vmatpush.bf16.msrb.mxu2 %v5185_v31  ;;  %v5885_v17 = vld [vmem:[#allocation19 + $0xd8] sm:$0xff] }
 0x58d   :  { %3459 = vmatpush.bf16.msrb.mxu3 %v5249_v32  ;;  %3434 = vmatpush.bf16.msrb.mxu1 %v4977_v34 }
 0x590   :  { %3421 = vmatpush.bf16.msrb.mxu0 %v5229_v39  ;;  %3443 = vmatpush.bf16.msrb.mxu2 %v5169_v40 }
 0x591   :  { %3460 = vmatpush.bf16.msrb.mxu3 %v5233_v41  ;;  %3747 = vmatpush.bf16.msra.mxu1 %v5873_v56 }
 0x592   :  { %3396 = vmatmul.bf16.vlgmr.msra.gmra.mxu2 %v6528_v23 }
 0x593   :  { %3422 = vmatmul.bf16.vlgmr.msrb.gmra.mxu0 %v6533_v0  ;;  %3435 = vmatmul.bf16.vlgmr.msrb.gmra.mxu1 %v6528_v23  ;;  %v5864_v23 = vld [vmem:[#allocation19 + $0x30] sm:$0xff] }
 0x594   :  { %3461 = vmatmul.bf16.vlgmr.msrb.gmra.mxu3 %v6533_v0  ;;  %3444 = vmatpush.bf16.msrb.mxu2 %v5153_v44  ;;  %v5867_v0 = vld [vmem:[#allocation19 + $0x48] sm:$0xff] }
 0x595   :  { %3734 = vmatpush.bf16.msra.mxu0 %v5865_v49  ;;  %3748 = vmatpush.bf16.msra.mxu1 %v5872_v57 }
 0x596   :  { %3773 = vmatpush.bf16.msra.mxu3 %v5889_v10  ;;  %v5913_v10 = vld [vmem:[%s6576_s23] ss:$0 sm:$0xff] }
 0x598   :  { %3445 = vmatpush.bf16.msrb.mxu2 %v5137_v47 }
 0x599   :  { %3735 = vmatpush.bf16.msra.mxu0 %v5864_v23  ;;  %3749 = vmatpush.bf16.msra.mxu1 %v5871_v54 }
 0x59a   :  { %3774 = vmatpush.bf16.msra.mxu3 %v5888_v13 }
 0x59c   :  { %3446 = vmatpush.bf16.msrb.mxu2 %v5121_v51 }
 0x59d   :  { %3736 = vmatpush.bf16.msra.mxu0 %v5863_v58  ;;  %3750 = vmatpush.bf16.msra.mxu1 %v5870_v59 }
 0x59e   :  { %3775 = vmatpush.bf16.msra.mxu3 %v5887_v21 }
 0x5a0   :  { %3447 = vmatpush.bf16.msrb.mxu2 %v5105_v55 }
 0x5a1   :  { %3737 = vmatpush.bf16.msra.mxu0 %v5862_v60  ;;  %3751 = vmatpush.bf16.msra.mxu1 %v5869_v61 }
 0x5a2   :  { %3776 = vmatpush.bf16.msra.mxu3 %v5886_v26 }
 0x5a3   :  { %3448 = vmatmul.bf16.vlgmr.msrb.gmra.mxu2 %v6525_v18  ;;  %v5868_v18 = vld [vmem:[#allocation19 + $0x50] sm:$0xff] }
 0x5a4   :  { %3760 = vmatpush.bf16.msra.mxu2 %v5881_v12 }
 0x5a5   :  { %3738 = vmatpush.bf16.msra.mxu0 %v5861_v62  ;;  %3752 = vmatpush.bf16.msra.mxu1 %v5868_v18  ;;  %v2825_v62 = vperm.slane %v2820_v22, 3 }
 0x5a6   :  { %3777 = vmatpush.bf16.msra.mxu3 %v5885_v17 }
 0x5a8   :  { %3761 = vmatpush.bf16.msra.mxu2 %v5880_v3 }
 0x5a9   :  { %3739 = vmatpush.bf16.msra.mxu0 %v5860_v63  ;;  %3753 = vmatpush.bf16.msra.mxu1 %v5867_v0 }
 0x5aa   :  { %3778 = vmatpush.bf16.msra.mxu3 %v5884_v33 }
 0x5ac   :  { %3762 = vmatpush.bf16.msra.mxu2 %v5879_v6 }
 0x5ad   :  { %3740 = vmatpush.bf16.msra.mxu0 %v5859_v1  ;;  %3754 = vmatpush.bf16.msra.mxu1 %v5866_v2 }
 0x5ae   :  { %3779 = vmatpush.bf16.msra.mxu3 %v5883_v42 }
 0x5b0   :  { %3763 = vmatpush.bf16.msra.mxu2 %v5878_v8 }
 0x5b1   :  { %3741 = vmatpush.bf16.msra.mxu0 %v5858_v5 }
 0x5b2   :  { %3780 = vmatpush.bf16.msra.mxu3 %v5882_v46 }
 0x5b4   :  { %3764 = vmatpush.bf16.msra.mxu2 %v5877_v11 }
 0x5b8   :  { %3765 = vmatpush.bf16.msra.mxu2 %v5876_v16 }
 0x5bc   :  { %3766 = vmatpush.bf16.msra.mxu2 %v5875_v24 }
 0x5c0   :  { %3767 = vmatpush.bf16.msra.mxu2 %v5874_v29 }
 0x5ea   :  { %v3332_v7 = vpop.f32.mrf.mxu1 }
 0x5ef   :  { %v3319_v9 = vpop.f32.mrf.mxu0 }
 0x5f0   :  { %v3320_v31 = vadd.f32 %v3319_v9, %v2822_v27 }
 0x5f2   :  { %v3334_v14 = vpop.f32.mrf.mxu1  ;;  %v3333_v36 = vadd.f32 %v3332_v7, %v3320_v31 }
 0x5f5   :  { %v3358_v15 = vpop.f32.mrf.mxu3 }
 0x5f6   :  { %v3359_v30 = vadd.f32 %v3358_v15, %v2823_v25 }
 0x5f7   :  { %v3321_v20 = vpop.f32.mrf.mxu0 }
 0x5fd   :  { %v3360_v28 = vpop.f32.mrf.mxu3 }
 0x5ff   :  { %v3371_v4 = vpop.f32.mrf.mxu0 }
 0x600   :  { %v3372_v19 = vadd.f32 %v3371_v4, %v3359_v30  ;;  %v3384_v32 = vpop.f32.mrf.mxu1 }
 0x602   :  { %v3385_v34 = vadd.f32 %v3384_v32, %v3372_v19 }
 0x604   :  { %v3467_v35 = vmax.f32 %v3385_v34, 0.0 }
 0x605   :  { %v3345_v37 = vpop.f32.mrf.mxu2 }
 0x606   :  { %v3471_v38 = vpack.c.bf16 %v3467_v35, %v3467_v35  ;;  %v3346_v39 = vadd.f32 %v3345_v37, %v3333_v36  ;;  %v3410_v40 = vpop.f32.mrf.mxu3 }
 0x607   :  { %v3373_v41 = vpop.f32.mrf.mxu0 }
 0x608   :  { %v3466_v43 = vmax.f32 %v3346_v39, 0.0  ;;  %v3386_v44 = vpop.f32.mrf.mxu1  ;;  %3755 = vmatmul.bf16.vlgmr.msra.gmra.mxu1 %v3471_v38 }
 0x60a   :  { %v3470_v45 = vpack.c.bf16 %v3466_v43, %v3466_v43 }
 0x60c   :  { %3742 = vmatmul.bf16.vlgmr.msra.gmra.mxu0 %v3470_v45 }
 0x60d   :  { %v3347_v47 = vpop.f32.mrf.mxu2 }
 0x60e   :  { %v3412_v48 = vpop.f32.mrf.mxu3 }
 0x610   :  { %v3423_v50 = vpop.f32.mrf.mxu0  ;;  %v3436_v51 = vpop.f32.mrf.mxu1 }
 0x611   :  { %v3437_v18 = vadd.f32 %v3436_v51, %v2825_v62 }
 0x615   :  { %v3397_v53 = vpop.f32.mrf.mxu2 }
 0x616   :  { %v3398_v55 = vadd.f32 %v3397_v53, %v2824_v52 }
 0x617   :  { %v3462_v56 = vpop.f32.mrf.mxu3 }
 0x618   :  { %v3411_v49 = vadd.f32 %v3410_v40, %v3398_v55  ;;  %v3425_v57 = vpop.f32.mrf.mxu0  ;;  %v3438_v23 = vpop.f32.mrf.mxu1 }
 0x61a   :  { %v3424_v54 = vadd.f32 %v3423_v50, %v3411_v49 }
 0x61c   :  { %v3468_v58 = vmax.f32 %v3424_v54, 0.0 }
 0x61d   :  { %v3399_v59 = vpop.f32.mrf.mxu2 }
 0x61e   :  { %v3472_v60 = vpack.c.bf16 %v3468_v58, %v3468_v58 }
 0x61f   :  { %v3464_v61 = vpop.f32.mrf.mxu3 }
 0x620   :  { %3768 = vmatmul.bf16.vlgmr.msra.gmra.mxu2 %v3472_v60 }
 0x626   :  { %v3449_v63 = vpop.f32.mrf.mxu2 }
 0x627   :  { %v3450_v0 = vadd.f32 %v3449_v63, %v3437_v18 }
 0x629   :  { %v3463_v12 = vadd.f32 %v3462_v56, %v3450_v0 }
 0x62b   :  { %v3469_v1 = vmax.f32 %v3463_v12, 0.0 }
 0x62d   :  { %v3473_v2 = vpack.c.bf16 %v3469_v1, %v3469_v1 }
 0x62e   :  { %v3451_v3 = vpop.f32.mrf.mxu2 }
 0x62f   :  { %3781 = vmatmul.bf16.vlgmr.msra.gmra.mxu3 %v3473_v2 }
 0x685   :  { %v3756_v5 = vpop.f32.mrf.mxu1 }
 0x689   :  { %v3743_v6 = vpop.f32.mrf.mxu0 }
 0x68a   :  { %v3744_v11 = vadd.f32 %v5913_v10, %v3743_v6 }
 0x68c   :  { %v3757_v14 = vadd.f32 %v3756_v5, %v3744_v11 }
 0x68d   :  { %v3758_v7 = vpop.f32.mrf.mxu1 }
 0x691   :  { %v3745_v8 = vpop.f32.mrf.mxu0 }
 0x6a3   :  { %v3769_v9 = vpop.f32.mrf.mxu2 }
 0x6a4   :  { %v3770_v15 = vadd.f32 %v3769_v9, %v3757_v14 }
 0x6ab   :  { %v3771_v13 = vpop.f32.mrf.mxu2 }
 0x6b2   :  { %v3782_v16 = vpop.f32.mrf.mxu3 }
 0x6b3   :  { %v3783_v20 = vadd.f32 %v3782_v16, %v3770_v15 }
 0x6b5   :  { %3786 = vst [vmem:[%s6578_s25] sm:$0xff] %v3783_v20 }
 0x6ba   :  { %v3784_v21 = vpop.f32.mrf.mxu3 }
 0x6bb   :  { %3803 = vsyncpa [#allocation3], 1 }
 0x6bc   :  { %3804 = vsyncpa [#allocation5], 1 }
 0x6bd   :  { %3805 = vsyncpa [#allocation8], 1 }
 0x6be   :  { %3806 = vsyncpa [#allocation11], 1 }
 0x6bf   :  { %3807 = vsyncpa [#allocation14], 1 }
 0x6c0   :  { %3808 = vsyncpa [#allocation17], 1 }
 0x6c1   :  { %3809 = vsyncpa [#allocation20], 1 }

</bundles_post_ra>
